<compile_context>
chip_gen: v6e
topology: v6e:2x2x1
jax: 0.10.0
libtpu: 0.0.40
codegen_flags: <defaults>
</compile_context>

<pallas_src>
import functools

import jax
import jax.numpy as jnp
from jax.experimental import pallas as pl
from jax.experimental.pallas import tpu as pltpu


# ----------------------------------------------------------------------------
# helpers
# ----------------------------------------------------------------------------

def _round_up(x, m):
    return (x + m - 1) // m * m


def _mm_dtype(k):
    """Matmul operand dtype: bf16 (f32 MXU accumulation) for well-formed
    contraction dims, f32 fallback for tiny channel counts."""
    return jnp.bfloat16 if k % 16 == 0 else jnp.float32


@functools.lru_cache(maxsize=1)
def _is_v5e():
    try:
        kind = jax.devices()[0].device_kind.lower()
    except Exception:
        return False
    return ("v5e" in kind) or ("v5 lite" in kind) or ("v5lite" in kind)


def _pick_tn(coutp):
    # v5e's MXU is 128x128: a 256-wide N tile only inflates VMEM/DMA there.
    if coutp % 256 == 0 and not _is_v5e():
        return 256
    return 128


def _pick_nb(n, m):
    """Pack nb images per grid step so nb*Ho*Wo approaches the MXU row depth
    (~256) without blowing up the accumulator for large images."""
    cap = min(n, max(1, 256 // m))
    for nb in range(cap, 0, -1):
        if n % nb == 0:
            return nb
    return 1


def _make_phases(x_pad, stride, ksize):
    """Decompose a spatially zero-padded NHWC tensor into stride*stride phase
    grids so every conv tap becomes a unit-stride shifted window (the kernel
    then only needs static contiguous slices).

    Returns (x_ph, taps, Ho, Wo) with x_ph: (N, s*s, Hq, Wq, C) and
    taps[t] = (phase, dy, dx) in ky-major / kx-minor order (matches the
    weight reshape (KH*KW, Cin, Cout))."""
    N, Hp, Wp, C = x_pad.shape
    Ho = (Hp - ksize) // stride + 1
    Wo = (Wp - ksize) // stride + 1
    Hq = Ho + (ksize - 1) // stride
    Wq = Wo + (ksize - 1) // stride
    if stride == 1:
        x_ph = x_pad[:, None]                                   # (N, 1, Hp, Wp, C)
    else:
        phases = []
        for ry in range(stride):
            for rx in range(stride):
                ph = x_pad[:, ry::stride, rx::stride, :][:, :Hq, :Wq, :]
                ph = jnp.pad(ph, ((0, 0), (0, Hq - ph.shape[1]),
                                  (0, Wq - ph.shape[2]), (0, 0)))
                phases.append(ph)
        x_ph = jnp.stack(phases, axis=1)                        # (N, s*s, Hq, Wq, C)
    taps = tuple(((ky % stride) * stride + (kx % stride), ky // stride, kx // stride)
                 for ky in range(ksize) for kx in range(ksize))
    return x_ph, taps, Ho, Wo


# ----------------------------------------------------------------------------
# Pallas kernel
# ----------------------------------------------------------------------------

def _conv_kernel(*refs, taps, Ho, Wo, nb, mm_dtype, prologue, epilogue):
    """Direct conv over `taps` shifted windows of a phase-decomposed,
    zero-padded activation block.

    Optional fused bn+relu prologue (with halo mask) and fused bn+relu /
    residual-add epilogue.  Taps accumulate into a local f32 value; the
    output tile is stored exactly once (lane-dense)."""
    x_ref, w_ref = refs[0], refs[1]
    o_ref = refs[-1]
    i = 2
    cin = x_ref.shape[-1]
    tn = o_ref.shape[-1]
    M = Ho * Wo

    if prologue:
        # fused bn1 + relu1; `msk` re-zeroes the halo after the affine shift so
        # the convolution still sees zero padding of relu(bn1(x)).
        s1 = refs[2][...].reshape(1, 1, 1, 1, cin)
        b1 = refs[3][...].reshape(1, 1, 1, 1, cin)
        msk = refs[4][...]                                      # (1, P, Hq, Wq, 1)
        i = 5
        a = x_ref[...]                                          # (nb, P, Hq, Wq, Cin)
        a = (jnp.maximum(a.astype(jnp.float32) * s1 + b1, 0.0) * msk).astype(mm_dtype)

        def win(p, dy, dx):
            return a[:, p, dy:dy + Ho, dx:dx + Wo, :]
    else:
        # input already carries genuine zero padding and the matmul dtype.
        def win(p, dy, dx):
            return x_ref[:, p, dy:dy + Ho, dx:dx + Wo, :]

    acc = None
    for t, (p, dy, dx) in enumerate(taps):
        xw = win(p, dy, dx).reshape(nb * M, cin)                # (nb*M, Cin)
        c = jnp.dot(xw, w_ref[t], preferred_element_type=jnp.float32)
        acc = c if acc is None else acc + c

    if epilogue == "bn_relu":                                   # fused bn2 + relu2
        acc = jnp.maximum(acc * refs[i][...] + refs[i + 1][...], 0.0)
    acc = acc.reshape(nb, M, tn)
    if epilogue == "add":                                       # fused residual add
        acc = acc + refs[i][...].astype(jnp.float32)
    o_ref[...] = acc.astype(o_ref.dtype)


# ----------------------------------------------------------------------------
# Pallas wrapper
# ----------------------------------------------------------------------------

def conv_pallas(x_ph, w, taps, Ho, Wo, *, mask=None, bn_in=None, bn_out=None,
                shortcut=None, out_dtype=jnp.float32):
    """Fused direct convolution.

    x_ph : (N, P, Hq, Wq, Cin) phase-decomposed, zero-padded activation
           (already in the matmul dtype)
    w    : (T, Cin, Coutp) weights (Coutp padded to a multiple of 128)
    taps : tuple of (phase, dy, dx) per tap (matches w's leading axis)
    bn_in=(s1,b1), mask  -> fused bn+relu prologue with halo re-zeroing
    bn_out=(s2,b2)       -> fused bn+relu epilogue
    shortcut             -> fused residual add, written in place over shortcut
    Output: (N, Ho*Wo, Coutp) in out_dtype (lane-dense).
    """
    N, P, Hq, Wq, Cin = x_ph.shape
    T, _, Coutp = w.shape
    M = Ho * Wo
    tn = _pick_tn(Coutp)
    nb = _pick_nb(N, M)

    # If every tap reads the same phase (1x1 shortcut), only DMA that phase.
    phases_used = sorted({p for p, _, _ in taps})
    if len(phases_used) == 1:
        phase_idx = phases_used[0]
        taps = tuple((0, dy, dx) for _, dy, dx in taps)
        pblk = 1
    else:
        phase_idx = 0
        pblk = P

    in_specs = [
        pl.BlockSpec((nb, pblk, Hq, Wq, Cin), lambda n, j: (n, phase_idx, 0, 0, 0)),
        pl.BlockSpec((T, Cin, tn), lambda n, j: (0, 0, j)),
    ]
    args = [x_ph, w]

    prologue = bn_in is not None
    if prologue:
        s1, b1 = bn_in
        in_specs += [
            pl.BlockSpec((1, Cin), lambda n, j: (0, 0)),
            pl.BlockSpec((1, Cin), lambda n, j: (0, 0)),
            pl.BlockSpec((1, pblk, Hq, Wq, 1), lambda n, j: (0, phase_idx, 0, 0, 0)),
        ]
        args += [s1.reshape(1, Cin).astype(jnp.float32),
                 b1.reshape(1, Cin).astype(jnp.float32),
                 mask]

    io_aliases = {}
    if bn_out is not None:
        epilogue = "bn_relu"
        s2, b2 = bn_out
        in_specs += [pl.BlockSpec((1, tn), lambda n, j: (0, j)),
                     pl.BlockSpec((1, tn), lambda n, j: (0, j))]
        args += [s2.reshape(1, Coutp).astype(jnp.float32),
                 b2.reshape(1, Coutp).astype(jnp.float32)]
    elif shortcut is not None:
        epilogue = "add"
        in_specs += [pl.BlockSpec((nb, M, tn), lambda n, j: (n, 0, j))]
        args += [shortcut]
        io_aliases = {len(args) - 1: 0}                 # in place over shortcut
    else:
        epilogue = "none"

    kern = functools.partial(_conv_kernel, taps=taps, Ho=Ho, Wo=Wo, nb=nb,
                             mm_dtype=w.dtype, prologue=prologue,
                             epilogue=epilogue)
    return pl.pallas_call(
        kern,
        out_shape=jax.ShapeDtypeStruct((N, M, Coutp), out_dtype),
        grid=(N // nb, Coutp // tn),
        in_specs=in_specs,
        out_specs=pl.BlockSpec((nb, M, tn), lambda n, j: (n, 0, j)),
        input_output_aliases=io_aliases,
        compiler_params=pltpu.CompilerParams(
            dimension_semantics=("parallel", "parallel")),
    )(*args)


# ----------------------------------------------------------------------------
# BasicBlock forward (inference; dropRate = 0.0 so dropout is a no-op)
# ----------------------------------------------------------------------------

@functools.partial(jax.jit, static_argnames=("stride", "equal_in_out"))
def basic_block_forward(x_nchw, params, stride, equal_in_out):
    x = jnp.transpose(x_nchw, (0, 2, 3, 1)).astype(jnp.float32)     # NCHW -> NHWC
    N, H, W, Cin = x.shape
    Cout = params["conv1_w"].shape[-1]
    Coutp = _round_up(Cout, 128)
    pc = Coutp - Cout
    mmdt1 = _mm_dtype(Cin)            # conv1 / shortcut contract over Cin
    mmdt2 = _mm_dtype(Cout)           # conv2 contracts over Cout

    # Raw x in the matmul dtype, zero-padded halo, phase-decomposed.  bn1+relu
    # runs inside the conv kernels; `mask` goes through the identical pad/phase
    # pipeline and re-zeroes the halo after the affine BN shift.
    x_pp, taps1, Ho, Wo = _make_phases(
        jnp.pad(x.astype(mmdt1), ((0, 0), (1, 1), (1, 1), (0, 0))), stride, 3)
    mask = _make_phases(
        jnp.pad(jnp.ones((1, H, W, 1), jnp.float32),
                ((0, 0), (1, 1), (1, 1), (0, 0))), stride, 3)[0]
    bn1 = (params["bn1_scale"], params["bn1_bias"])

    # --- conv1 (3x3 / stride): fused bn1+relu prologue, bn2+relu epilogue ----
    w1 = jnp.pad(params["conv1_w"].reshape(9, Cin, Cout),
                 ((0, 0), (0, 0), (0, pc))).astype(mmdt1)
    s2 = jnp.pad(params["bn2_scale"], (0, pc))
    b2 = jnp.pad(params["bn2_bias"], (0, pc))
    out1 = conv_pallas(x_pp, w1, taps1, Ho, Wo, mask=mask, bn_in=bn1,
                       bn_out=(s2, b2), out_dtype=mmdt2)   # (N, Ho*Wo, Coutp)

    # --- shortcut: identity (raw x) or bn1+relu -> 1x1 conv (single phase) ---
    if equal_in_out:
        shortcut = jnp.pad(x.reshape(N, H * W, Cin),
                           ((0, 0), (0, 0), (0, Coutp - Cin)))
    else:
        wsc = jnp.pad(params["convsc_w"].reshape(1, Cin, Cout),
                      ((0, 0), (0, 0), (0, pc))).astype(mmdt1)
        sc_tap = ((1 % stride) * stride + (1 % stride), 1 // stride, 1 // stride)
        shortcut = conv_pallas(x_pp, wsc, (sc_tap,), Ho, Wo, mask=mask,
                               bn_in=bn1, out_dtype=jnp.float32)

    # --- conv2 (3x3 / 1) with fused residual-add epilogue --------------------
    # out1's halo pad holds genuine zeros (bn2+relu already applied), so conv2
    # needs no prologue/mask.
    out1_pp, taps2, Ho2, Wo2 = _make_phases(
        jnp.pad(out1.reshape(N, Ho, Wo, Coutp),
                ((0, 0), (1, 1), (1, 1), (0, 0))), 1, 3)
    w2 = jnp.pad(params["conv2_w"].reshape(9, Cout, Cout),
                 ((0, 0), (0, pc), (0, pc))).astype(mmdt2)
    y = conv_pallas(out1_pp, w2, taps2, Ho2, Wo2, shortcut=shortcut,
                    out_dtype=jnp.float32)

    # TODO(synk): F.dropout with dropRate > 0 not implemented (module default 0.0).
    y = y[:, :, :Cout].reshape(N, Ho, Wo, Cout)
    return jnp.transpose(y, (0, 3, 1, 2))                          # NHWC -> NCHW


# ----------------------------------------------------------------------------
# Deterministic parameters + pure-JAX reference (same operand precision)
# ----------------------------------------------------------------------------

def make_params(key, in_planes, out_planes):
    # BatchNorm folded to inference scale/bias from running stats.
    ks = jax.random.split(key, 10)
    eps = 1e-5
    g1 = 1.0 + 0.1 * jax.random.normal(ks[0], (in_planes,), jnp.float32)
    b1 = 0.1 * jax.random.normal(ks[1], (in_planes,), jnp.float32)
    m1 = 0.1 * jax.random.normal(ks[2], (in_planes,), jnp.float32)
    v1 = 0.5 + jax.random.uniform(ks[3], (in_planes,), jnp.float32)
    g2 = 1.0 + 0.1 * jax.random.normal(ks[4], (out_planes,), jnp.float32)
    b2 = 0.1 * jax.random.normal(ks[5], (out_planes,), jnp.float32)
    m2 = 0.1 * jax.random.normal(ks[6], (out_planes,), jnp.float32)
    v2 = 0.5 + jax.random.uniform(ks[7], (out_planes,), jnp.float32)
    s1 = g1 / jnp.sqrt(v1 + eps)
    s2 = g2 / jnp.sqrt(v2 + eps)
    p = {
        "bn1_scale": s1, "bn1_bias": b1 - m1 * s1,
        "bn2_scale": s2, "bn2_bias": b2 - m2 * s2,
        "conv1_w": 0.1 * jax.random.normal(ks[8], (3, 3, in_planes, out_planes), jnp.float32),
        "conv2_w": 0.1 * jax.random.normal(ks[9], (3, 3, out_planes, out_planes), jnp.float32),
    }
    if in_planes != out_planes:
        p["convsc_w"] = 0.1 * jax.random.normal(
            jax.random.fold_in(key, 123), (1, 1, in_planes, out_planes), jnp.float32)
    return p


def _conv_ref(x, w, stride, padding, dt):
    return jax.lax.conv_general_dilated(
        x.astype(dt), w.astype(dt),
        window_strides=(stride, stride),
        padding=[(padding, padding), (padding, padding)],
        dimension_numbers=("NHWC", "HWIO", "NHWC"),
        preferred_element_type=jnp.float32)


def basic_block_ref(x_nchw, params, stride, equal_in_out):
    x = jnp.transpose(x_nchw, (0, 2, 3, 1)).astype(jnp.float32)
    Cin = x.shape[-1]
    Cout = params["conv1_w"].shape[-1]
    dt1, dt2 = _mm_dtype(Cin), _mm_dtype(Cout)
    xa = x.astype(dt1).astype(jnp.float32)
    a = jnp.maximum(xa * params["bn1_scale"] + params["bn1_bias"], 0.0)
    out = _conv_ref(a, params["conv1_w"], stride, 1, dt1)
    out = jnp.maximum(out * params["bn2_scale"] + params["bn2_bias"], 0.0)
    out = out.astype(dt2).astype(jnp.float32)
    out = _conv_ref(out, params["conv2_w"], 1, 1, dt2)
    shortcut = x if equal_in_out else _conv_ref(a, params["convsc_w"], stride, 0, dt1)
    return jnp.transpose(shortcut + out, (0, 3, 1, 2))


# ----------------------------------------------------------------------------

if __name__ == "__main__":
    key = jax.random.PRNGKey(0)
    kx, kp1, kp2, kp3 = jax.random.split(key, 4)

    x_small = jax.random.normal(kx, (2, 4, 16, 16), jnp.float32)               # NCHW
    x_wide = jax.random.normal(jax.random.fold_in(kx, 1), (2, 16, 16, 16), jnp.float32)

    configs = [
        # (input, in_planes, out_planes, stride, equal_in_out, key, expected shape)
        (x_small, 4, 4, 1, True, kp1, (2, 4, 16, 16)),    # identity shortcut
        (x_small, 4, 8, 2, False, kp2, (2, 8, 8, 8)),     # 1x1 conv shortcut, stride 2
        (x_wide, 16, 32, 2, False, kp3, (2, 32, 8, 8)),   # exercises bf16 MXU path
    ]

    ok = True
    for xin, cin, cout, stride, eio, kp, oshape in configs:
        p = make_params(kp, cin, cout)
        y = basic_block_forward(xin, p, stride=stride, equal_in_out=eio)
        jax.block_until_ready(y)
        r = basic_block_ref(xin, p, stride=stride, equal_in_out=eio)
        assert y.shape == oshape, (y.shape, oshape)
        ok &= bool(jnp.allclose(y, r, rtol=5e-3, atol=5e-3))

    print("KERNEL_OK" if ok else "KERNEL_MISMATCH")
</pallas_src>

<mosaic_0001>
module attributes {stable_mosaic.version = 11 : i64} {
  func.func @_conv_kernel(%arg0: i32, %arg1: i32, %arg2: memref<1x1x18x18x4xf32, #tpu.memory_space<vmem>>, %arg3: memref<9x4x128xf32, #tpu.memory_space<vmem>>, %arg4: memref<1x4xf32, #tpu.memory_space<vmem>>, %arg5: memref<1x4xf32, #tpu.memory_space<vmem>>, %arg6: memref<1x1x18x18x1xf32, #tpu.memory_space<vmem>>, %arg7: memref<1x128xf32, #tpu.memory_space<vmem>>, %arg8: memref<1x128xf32, #tpu.memory_space<vmem>>, %arg9: memref<1x256x128xf32, #tpu.memory_space<vmem>>) attributes {dimension_semantics = [#tpu.dimension_semantics<parallel>, #tpu.dimension_semantics<parallel>], iteration_bounds = array<i64: 2, 1>, scalar_prefetch = 0 : i64, scratch_operands = 0 : i64, tpu.core_type = #tpu.core_type<tc>, window_params = [{transform_indices = @transform_0, window_bounds = array<i64: 1, 1, 18, 18, 4>}, {transform_indices = @transform_1, window_bounds = array<i64: 9, 4, 128>}, {pipeline_mode = #tpu.pipeline_mode<synchronous>, transform_indices = @transform_2, window_bounds = array<i64: 1, 4>}, {pipeline_mode = #tpu.pipeline_mode<synchronous>, transform_indices = @transform_3, window_bounds = array<i64: 1, 4>}, {pipeline_mode = #tpu.pipeline_mode<synchronous>, transform_indices = @transform_4, window_bounds = array<i64: 1, 1, 18, 18, 1>}, {transform_indices = @transform_5, window_bounds = array<i64: 1, 128>}, {transform_indices = @transform_6, window_bounds = array<i64: 1, 128>}, {transform_indices = @transform_7, window_bounds = array<i64: 1, 256, 128>}]} {
    %c0 = arith.constant 0 : index
    %c0_0 = arith.constant 0 : index
    %0 = vector.load %arg4[%c0, %c0_0] : memref<1x4xf32, #tpu.memory_space<vmem>>, vector<1x4xf32>
    %1 = vector.shape_cast %0 : vector<1x4xf32> to vector<1x1x1x1x4xf32>
    %c0_1 = arith.constant 0 : index
    %c0_2 = arith.constant 0 : index
    %2 = vector.load %arg5[%c0_1, %c0_2] : memref<1x4xf32, #tpu.memory_space<vmem>>, vector<1x4xf32>
    %3 = vector.shape_cast %2 : vector<1x4xf32> to vector<1x1x1x1x4xf32>
    %c0_3 = arith.constant 0 : index
    %c0_4 = arith.constant 0 : index
    %c0_5 = arith.constant 0 : index
    %c0_6 = arith.constant 0 : index
    %c0_7 = arith.constant 0 : index
    %4 = vector.load %arg6[%c0_3, %c0_4, %c0_5, %c0_6, %c0_7] : memref<1x1x18x18x1xf32, #tpu.memory_space<vmem>>, vector<1x1x18x18x1xf32>
    %c0_8 = arith.constant 0 : index
    %c0_9 = arith.constant 0 : index
    %c0_10 = arith.constant 0 : index
    %c0_11 = arith.constant 0 : index
    %c0_12 = arith.constant 0 : index
    %5 = vector.load %arg2[%c0_8, %c0_9, %c0_10, %c0_11, %c0_12] : memref<1x1x18x18x4xf32, #tpu.memory_space<vmem>>, vector<1x1x18x18x4xf32>
    %6 = vector.broadcast %1 : vector<1x1x1x1x4xf32> to vector<1x1x18x18x4xf32>
    %7 = arith.mulf %5, %6 : vector<1x1x18x18x4xf32>
    %8 = vector.broadcast %3 : vector<1x1x1x1x4xf32> to vector<1x1x18x18x4xf32>
    %9 = arith.addf %7, %8 : vector<1x1x18x18x4xf32>
    %cst = arith.constant 0.000000e+00 : f32
    %10 = vector.broadcast %cst : f32 to vector<1x1x18x18x4xf32>
    %11 = arith.maximumf %9, %10 : vector<1x1x18x18x4xf32>
    %12 = vector.broadcast %4 : vector<1x1x18x18x1xf32> to vector<1x1x18x18x4xf32>
    %13 = arith.mulf %11, %12 : vector<1x1x18x18x4xf32>
    %14 = vector.extract_strided_slice %13 {offsets = [0, 0, 0, 0, 0], sizes = [1, 1, 16, 16, 4], strides = [1, 1, 1, 1, 1]} : vector<1x1x18x18x4xf32> to vector<1x1x16x16x4xf32>
    %15 = vector.shape_cast %14 : vector<1x1x16x16x4xf32> to vector<1x16x16x4xf32>
    %16 = vector.shape_cast %15 : vector<1x16x16x4xf32> to vector<256x4xf32>
    %c0_13 = arith.constant 0 : index
    %c0_14 = arith.constant 0 : index
    %c0_15 = arith.constant 0 : index
    %17 = vector.load %arg3[%c0_13, %c0_14, %c0_15] : memref<9x4x128xf32, #tpu.memory_space<vmem>>, vector<1x4x128xf32>
    %18 = vector.shape_cast %17 : vector<1x4x128xf32> to vector<4x128xf32>
    %cst_16 = arith.constant dense<0.000000e+00> : vector<256x128xf32>
    %19 = tpu.matmul %16, %18, %cst_16 {dimension_numbers = #tpu.dot_dimension_numbers<[1], [0], [0], [1], [0, 0, 1, 1], [], []>} : vector<256x4xf32>, vector<4x128xf32>, vector<256x128xf32> -> vector<256x128xf32>
    %20 = vector.extract_strided_slice %13 {offsets = [0, 0, 0, 1, 0], sizes = [1, 1, 16, 16, 4], strides = [1, 1, 1, 1, 1]} : vector<1x1x18x18x4xf32> to vector<1x1x16x16x4xf32>
    %21 = vector.shape_cast %20 : vector<1x1x16x16x4xf32> to vector<1x16x16x4xf32>
    %22 = vector.shape_cast %21 : vector<1x16x16x4xf32> to vector<256x4xf32>
    %c1 = arith.constant 1 : index
    %c0_17 = arith.constant 0 : index
    %c0_18 = arith.constant 0 : index
    %23 = vector.load %arg3[%c1, %c0_17, %c0_18] : memref<9x4x128xf32, #tpu.memory_space<vmem>>, vector<1x4x128xf32>
    %24 = vector.shape_cast %23 : vector<1x4x128xf32> to vector<4x128xf32>
    %cst_19 = arith.constant dense<0.000000e+00> : vector<256x128xf32>
    %25 = tpu.matmul %22, %24, %cst_19 {dimension_numbers = #tpu.dot_dimension_numbers<[1], [0], [0], [1], [0, 0, 1, 1], [], []>} : vector<256x4xf32>, vector<4x128xf32>, vector<256x128xf32> -> vector<256x128xf32>
    %26 = arith.addf %19, %25 : vector<256x128xf32>
    %27 = vector.extract_strided_slice %13 {offsets = [0, 0, 0, 2, 0], sizes = [1, 1, 16, 16, 4], strides = [1, 1, 1, 1, 1]} : vector<1x1x18x18x4xf32> to vector<1x1x16x16x4xf32>
    %28 = vector.shape_cast %27 : vector<1x1x16x16x4xf32> to vector<1x16x16x4xf32>
    %29 = vector.shape_cast %28 : vector<1x16x16x4xf32> to vector<256x4xf32>
    %c2 = arith.constant 2 : index
    %c0_20 = arith.constant 0 : index
    %c0_21 = arith.constant 0 : index
    %30 = vector.load %arg3[%c2, %c0_20, %c0_21] : memref<9x4x128xf32, #tpu.memory_space<vmem>>, vector<1x4x128xf32>
    %31 = vector.shape_cast %30 : vector<1x4x128xf32> to vector<4x128xf32>
    %cst_22 = arith.constant dense<0.000000e+00> : vector<256x128xf32>
    %32 = tpu.matmul %29, %31, %cst_22 {dimension_numbers = #tpu.dot_dimension_numbers<[1], [0], [0], [1], [0, 0, 1, 1], [], []>} : vector<256x4xf32>, vector<4x128xf32>, vector<256x128xf32> -> vector<256x128xf32>
    %33 = arith.addf %26, %32 : vector<256x128xf32>
    %34 = vector.extract_strided_slice %13 {offsets = [0, 0, 1, 0, 0], sizes = [1, 1, 16, 16, 4], strides = [1, 1, 1, 1, 1]} : vector<1x1x18x18x4xf32> to vector<1x1x16x16x4xf32>
    %35 = vector.shape_cast %34 : vector<1x1x16x16x4xf32> to vector<1x16x16x4xf32>
    %36 = vector.shape_cast %35 : vector<1x16x16x4xf32> to vector<256x4xf32>
    %c3 = arith.constant 3 : index
    %c0_23 = arith.constant 0 : index
    %c0_24 = arith.constant 0 : index
    %37 = vector.load %arg3[%c3, %c0_23, %c0_24] : memref<9x4x128xf32, #tpu.memory_space<vmem>>, vector<1x4x128xf32>
    %38 = vector.shape_cast %37 : vector<1x4x128xf32> to vector<4x128xf32>
    %cst_25 = arith.constant dense<0.000000e+00> : vector<256x128xf32>
    %39 = tpu.matmul %36, %38, %cst_25 {dimension_numbers = #tpu.dot_dimension_numbers<[1], [0], [0], [1], [0, 0, 1, 1], [], []>} : vector<256x4xf32>, vector<4x128xf32>, vector<256x128xf32> -> vector<256x128xf32>
    %40 = arith.addf %33, %39 : vector<256x128xf32>
    %41 = vector.extract_strided_slice %13 {offsets = [0, 0, 1, 1, 0], sizes = [1, 1, 16, 16, 4], strides = [1, 1, 1, 1, 1]} : vector<1x1x18x18x4xf32> to vector<1x1x16x16x4xf32>
    %42 = vector.shape_cast %41 : vector<1x1x16x16x4xf32> to vector<1x16x16x4xf32>
    %43 = vector.shape_cast %42 : vector<1x16x16x4xf32> to vector<256x4xf32>
    %c4 = arith.constant 4 : index
    %c0_26 = arith.constant 0 : index
    %c0_27 = arith.constant 0 : index
    %44 = vector.load %arg3[%c4, %c0_26, %c0_27] : memref<9x4x128xf32, #tpu.memory_space<vmem>>, vector<1x4x128xf32>
    %45 = vector.shape_cast %44 : vector<1x4x128xf32> to vector<4x128xf32>
    %cst_28 = arith.constant dense<0.000000e+00> : vector<256x128xf32>
    %46 = tpu.matmul %43, %45, %cst_28 {dimension_numbers = #tpu.dot_dimension_numbers<[1], [0], [0], [1], [0, 0, 1, 1], [], []>} : vector<256x4xf32>, vector<4x128xf32>, vector<256x128xf32> -> vector<256x128xf32>
    %47 = arith.addf %40, %46 : vector<256x128xf32>
    %48 = vector.extract_strided_slice %13 {offsets = [0, 0, 1, 2, 0], sizes = [1, 1, 16, 16, 4], strides = [1, 1, 1, 1, 1]} : vector<1x1x18x18x4xf32> to vector<1x1x16x16x4xf32>
    %49 = vector.shape_cast %48 : vector<1x1x16x16x4xf32> to vector<1x16x16x4xf32>
    %50 = vector.shape_cast %49 : vector<1x16x16x4xf32> to vector<256x4xf32>
    %c5 = arith.constant 5 : index
    %c0_29 = arith.constant 0 : index
    %c0_30 = arith.constant 0 : index
    %51 = vector.load %arg3[%c5, %c0_29, %c0_30] : memref<9x4x128xf32, #tpu.memory_space<vmem>>, vector<1x4x128xf32>
    %52 = vector.shape_cast %51 : vector<1x4x128xf32> to vector<4x128xf32>
    %cst_31 = arith.constant dense<0.000000e+00> : vector<256x128xf32>
    %53 = tpu.matmul %50, %52, %cst_31 {dimension_numbers = #tpu.dot_dimension_numbers<[1], [0], [0], [1], [0, 0, 1, 1], [], []>} : vector<256x4xf32>, vector<4x128xf32>, vector<256x128xf32> -> vector<256x128xf32>
    %54 = arith.addf %47, %53 : vector<256x128xf32>
    %55 = vector.extract_strided_slice %13 {offsets = [0, 0, 2, 0, 0], sizes = [1, 1, 16, 16, 4], strides = [1, 1, 1, 1, 1]} : vector<1x1x18x18x4xf32> to vector<1x1x16x16x4xf32>
    %56 = vector.shape_cast %55 : vector<1x1x16x16x4xf32> to vector<1x16x16x4xf32>
    %57 = vector.shape_cast %56 : vector<1x16x16x4xf32> to vector<256x4xf32>
    %c6 = arith.constant 6 : index
    %c0_32 = arith.constant 0 : index
    %c0_33 = arith.constant 0 : index
    %58 = vector.load %arg3[%c6, %c0_32, %c0_33] : memref<9x4x128xf32, #tpu.memory_space<vmem>>, vector<1x4x128xf32>
    %59 = vector.shape_cast %58 : vector<1x4x128xf32> to vector<4x128xf32>
    %cst_34 = arith.constant dense<0.000000e+00> : vector<256x128xf32>
    %60 = tpu.matmul %57, %59, %cst_34 {dimension_numbers = #tpu.dot_dimension_numbers<[1], [0], [0], [1], [0, 0, 1, 1], [], []>} : vector<256x4xf32>, vector<4x128xf32>, vector<256x128xf32> -> vector<256x128xf32>
    %61 = arith.addf %54, %60 : vector<256x128xf32>
    %62 = vector.extract_strided_slice %13 {offsets = [0, 0, 2, 1, 0], sizes = [1, 1, 16, 16, 4], strides = [1, 1, 1, 1, 1]} : vector<1x1x18x18x4xf32> to vector<1x1x16x16x4xf32>
    %63 = vector.shape_cast %62 : vector<1x1x16x16x4xf32> to vector<1x16x16x4xf32>
    %64 = vector.shape_cast %63 : vector<1x16x16x4xf32> to vector<256x4xf32>
    %c7 = arith.constant 7 : index
    %c0_35 = arith.constant 0 : index
    %c0_36 = arith.constant 0 : index
    %65 = vector.load %arg3[%c7, %c0_35, %c0_36] : memref<9x4x128xf32, #tpu.memory_space<vmem>>, vector<1x4x128xf32>
    %66 = vector.shape_cast %65 : vector<1x4x128xf32> to vector<4x128xf32>
    %cst_37 = arith.constant dense<0.000000e+00> : vector<256x128xf32>
    %67 = tpu.matmul %64, %66, %cst_37 {dimension_numbers = #tpu.dot_dimension_numbers<[1], [0], [0], [1], [0, 0, 1, 1], [], []>} : vector<256x4xf32>, vector<4x128xf32>, vector<256x128xf32> -> vector<256x128xf32>
    %68 = arith.addf %61, %67 : vector<256x128xf32>
    %69 = vector.extract_strided_slice %13 {offsets = [0, 0, 2, 2, 0], sizes = [1, 1, 16, 16, 4], strides = [1, 1, 1, 1, 1]} : vector<1x1x18x18x4xf32> to vector<1x1x16x16x4xf32>
    %70 = vector.shape_cast %69 : vector<1x1x16x16x4xf32> to vector<1x16x16x4xf32>
    %71 = vector.shape_cast %70 : vector<1x16x16x4xf32> to vector<256x4xf32>
    %c8 = arith.constant 8 : index
    %c0_38 = arith.constant 0 : index
    %c0_39 = arith.constant 0 : index
    %72 = vector.load %arg3[%c8, %c0_38, %c0_39] : memref<9x4x128xf32, #tpu.memory_space<vmem>>, vector<1x4x128xf32>
    %73 = vector.shape_cast %72 : vector<1x4x128xf32> to vector<4x128xf32>
    %cst_40 = arith.constant dense<0.000000e+00> : vector<256x128xf32>
    %74 = tpu.matmul %71, %73, %cst_40 {dimension_numbers = #tpu.dot_dimension_numbers<[1], [0], [0], [1], [0, 0, 1, 1], [], []>} : vector<256x4xf32>, vector<4x128xf32>, vector<256x128xf32> -> vector<256x128xf32>
    %75 = arith.addf %68, %74 : vector<256x128xf32>
    %c0_41 = arith.constant 0 : index
    %c0_42 = arith.constant 0 : index
    %76 = vector.load %arg7[%c0_41, %c0_42] : memref<1x128xf32, #tpu.memory_space<vmem>>, vector<1x128xf32>
    %77 = vector.broadcast %76 : vector<1x128xf32> to vector<256x128xf32>
    %78 = arith.mulf %75, %77 : vector<256x128xf32>
    %c0_43 = arith.constant 0 : index
    %c0_44 = arith.constant 0 : index
    %79 = vector.load %arg8[%c0_43, %c0_44] : memref<1x128xf32, #tpu.memory_space<vmem>>, vector<1x128xf32>
    %80 = vector.broadcast %79 : vector<1x128xf32> to vector<256x128xf32>
    %81 = arith.addf %78, %80 : vector<256x128xf32>
    %cst_45 = arith.constant 0.000000e+00 : f32
    %82 = vector.broadcast %cst_45 : f32 to vector<256x128xf32>
    %83 = arith.maximumf %81, %82 : vector<256x128xf32>
    %84 = vector.shape_cast %83 : vector<256x128xf32> to vector<1x256x128xf32>
    %c0_46 = arith.constant 0 : index
    %c0_47 = arith.constant 0 : index
    %c0_48 = arith.constant 0 : index
    %85 = vector.load %arg9[%c0_46, %c0_47, %c0_48] : memref<1x256x128xf32, #tpu.memory_space<vmem>>, vector<1x256x128xf32>
    tpu.vector_store %arg9[%c0_46, %c0_47, %c0_48], %84 {strides = array<i32>} : memref<1x256x128xf32, #tpu.memory_space<vmem>>, vector<1x256x128xf32>,
    return
  }
  func.func @transform_0(%arg0: i32, %arg1: i32) -> (i32, i32, i32, i32, i32) {
    %c0_i32 = arith.constant 0 : i32
    %c0_i32_0 = arith.constant 0 : i32
    %c0_i32_1 = arith.constant 0 : i32
    %c0_i32_2 = arith.constant 0 : i32
    %c0_i32_3 = arith.constant 0 : i32
    return %arg0, %c0_i32, %c0_i32_0, %c0_i32_1, %c0_i32_2 : i32, i32, i32, i32, i32
  }
  func.func @transform_1(%arg0: i32, %arg1: i32) -> (i32, i32, i32) {
    %c0_i32 = arith.constant 0 : i32
    %c0_i32_0 = arith.constant 0 : i32
    %c0_i32_1 = arith.constant 0 : i32
    return %c0_i32, %c0_i32_0, %arg1 : i32, i32, i32
  }
  func.func @transform_2(%arg0: i32, %arg1: i32) -> (i32, i32) {
    %c0_i32 = arith.constant 0 : i32
    %c0_i32_0 = arith.constant 0 : i32
    %c0_i32_1 = arith.constant 0 : i32
    return %c0_i32, %c0_i32_0 : i32, i32
  }
  func.func @transform_3(%arg0: i32, %arg1: i32) -> (i32, i32) {
    %c0_i32 = arith.constant 0 : i32
    %c0_i32_0 = arith.constant 0 : i32
    %c0_i32_1 = arith.constant 0 : i32
    return %c0_i32, %c0_i32_0 : i32, i32
  }
  func.func @transform_4(%arg0: i32, %arg1: i32) -> (i32, i32, i32, i32, i32) {
    %c0_i32 = arith.constant 0 : i32
    %c0_i32_0 = arith.constant 0 : i32
    %c0_i32_1 = arith.constant 0 : i32
    %c0_i32_2 = arith.constant 0 : i32
    %c0_i32_3 = arith.constant 0 : i32
    %c0_i32_4 = arith.constant 0 : i32
    return %c0_i32, %c0_i32_0, %c0_i32_1, %c0_i32_2, %c0_i32_3 : i32, i32, i32, i32, i32
  }
  func.func @transform_5(%arg0: i32, %arg1: i32) -> (i32, i32) {
    %c0_i32 = arith.constant 0 : i32
    %c0_i32_0 = arith.constant 0 : i32
    return %c0_i32, %arg1 : i32, i32
  }
  func.func @transform_6(%arg0: i32, %arg1: i32) -> (i32, i32) {
    %c0_i32 = arith.constant 0 : i32
    %c0_i32_0 = arith.constant 0 : i32
    return %c0_i32, %arg1 : i32, i32
  }
  func.func @transform_7(%arg0: i32, %arg1: i32) -> (i32, i32, i32) {
    %c0_i32 = arith.constant 0 : i32
    %c0_i32_0 = arith.constant 0 : i32
    return %arg0, %c0_i32, %arg1 : i32, i32, i32
  }
}

module attributes {stable_mosaic.version = 11 : i64} {
  func.func @_conv_kernel(%arg0: i32, %arg1: i32, %arg2: memref<1x1x18x18x128xf32, #tpu.memory_space<vmem>>, %arg3: memref<9x128x128xf32, #tpu.memory_space<vmem>>, %arg4: memref<1x256x128xf32, #tpu.memory_space<vmem>>, %arg5: memref<1x256x128xf32, #tpu.memory_space<vmem>>) attributes {dimension_semantics = [#tpu.dimension_semantics<parallel>, #tpu.dimension_semantics<parallel>], iteration_bounds = array<i64: 2, 1>, scalar_prefetch = 0 : i64, scratch_operands = 0 : i64, tpu.core_type = #tpu.core_type<tc>, window_params = [{transform_indices = @transform_0, window_bounds = array<i64: 1, 1, 18, 18, 128>}, {transform_indices = @transform_1, window_bounds = array<i64: 9, 128, 128>}, {transform_indices = @transform_2, window_bounds = array<i64: 1, 256, 128>}, {transform_indices = @transform_3, window_bounds = array<i64: 1, 256, 128>}]} {
    %c0 = arith.constant 0 : index
    %c0_0 = arith.constant 0 : index
    %c0_1 = arith.constant 0 : index
    %c0_2 = arith.constant 0 : index
    %c0_3 = arith.constant 0 : index
    %0 = vector.load %arg2[%c0, %c0_0, %c0_1, %c0_2, %c0_3] : memref<1x1x18x18x128xf32, #tpu.memory_space<vmem>>, vector<1x1x16x16x128xf32>
    %1 = vector.shape_cast %0 : vector<1x1x16x16x128xf32> to vector<1x16x16x128xf32>
    %2 = vector.shape_cast %1 : vector<1x16x16x128xf32> to vector<256x128xf32>
    %c0_4 = arith.constant 0 : index
    %c0_5 = arith.constant 0 : index
    %c0_6 = arith.constant 0 : index
    %3 = vector.load %arg3[%c0_4, %c0_5, %c0_6] : memref<9x128x128xf32, #tpu.memory_space<vmem>>, vector<1x128x128xf32>
    %4 = vector.shape_cast %3 : vector<1x128x128xf32> to vector<128x128xf32>
    %cst = arith.constant dense<0.000000e+00> : vector<256x128xf32>
    %5 = tpu.matmul %2, %4, %cst {dimension_numbers = #tpu.dot_dimension_numbers<[1], [0], [0], [1], [0, 0, 1, 1], [], []>} : vector<256x128xf32>, vector<128x128xf32>, vector<256x128xf32> -> vector<256x128xf32>
    %c0_7 = arith.constant 0 : index
    %c0_8 = arith.constant 0 : index
    %c0_9 = arith.constant 0 : index
    %c1 = arith.constant 1 : index
    %c0_10 = arith.constant 0 : index
    %6 = vector.load %arg2[%c0_7, %c0_8, %c0_9, %c1, %c0_10] : memref<1x1x18x18x128xf32, #tpu.memory_space<vmem>>, vector<1x1x16x16x128xf32>
    %7 = vector.shape_cast %6 : vector<1x1x16x16x128xf32> to vector<1x16x16x128xf32>
    %8 = vector.shape_cast %7 : vector<1x16x16x128xf32> to vector<256x128xf32>
    %c1_11 = arith.constant 1 : index
    %c0_12 = arith.constant 0 : index
    %c0_13 = arith.constant 0 : index
    %9 = vector.load %arg3[%c1_11, %c0_12, %c0_13] : memref<9x128x128xf32, #tpu.memory_space<vmem>>, vector<1x128x128xf32>
    %10 = vector.shape_cast %9 : vector<1x128x128xf32> to vector<128x128xf32>
    %cst_14 = arith.constant dense<0.000000e+00> : vector<256x128xf32>
    %11 = tpu.matmul %8, %10, %cst_14 {dimension_numbers = #tpu.dot_dimension_numbers<[1], [0], [0], [1], [0, 0, 1, 1], [], []>} : vector<256x128xf32>, vector<128x128xf32>, vector<256x128xf32> -> vector<256x128xf32>
    %12 = arith.addf %5, %11 : vector<256x128xf32>
    %c0_15 = arith.constant 0 : index
    %c0_16 = arith.constant 0 : index
    %c0_17 = arith.constant 0 : index
    %c2 = arith.constant 2 : index
    %c0_18 = arith.constant 0 : index
    %13 = vector.load %arg2[%c0_15, %c0_16, %c0_17, %c2, %c0_18] : memref<1x1x18x18x128xf32, #tpu.memory_space<vmem>>, vector<1x1x16x16x128xf32>
    %14 = vector.shape_cast %13 : vector<1x1x16x16x128xf32> to vector<1x16x16x128xf32>
    %15 = vector.shape_cast %14 : vector<1x16x16x128xf32> to vector<256x128xf32>
    %c2_19 = arith.constant 2 : index
    %c0_20 = arith.constant 0 : index
    %c0_21 = arith.constant 0 : index
    %16 = vector.load %arg3[%c2_19, %c0_20, %c0_21] : memref<9x128x128xf32, #tpu.memory_space<vmem>>, vector<1x128x128xf32>
    %17 = vector.shape_cast %16 : vector<1x128x128xf32> to vector<128x128xf32>
    %cst_22 = arith.constant dense<0.000000e+00> : vector<256x128xf32>
    %18 = tpu.matmul %15, %17, %cst_22 {dimension_numbers = #tpu.dot_dimension_numbers<[1], [0], [0], [1], [0, 0, 1, 1], [], []>} : vector<256x128xf32>, vector<128x128xf32>, vector<256x128xf32> -> vector<256x128xf32>
    %19 = arith.addf %12, %18 : vector<256x128xf32>
    %c0_23 = arith.constant 0 : index
    %c0_24 = arith.constant 0 : index
    %c1_25 = arith.constant 1 : index
    %c0_26 = arith.constant 0 : index
    %c0_27 = arith.constant 0 : index
    %20 = vector.load %arg2[%c0_23, %c0_24, %c1_25, %c0_26, %c0_27] : memref<1x1x18x18x128xf32, #tpu.memory_space<vmem>>, vector<1x1x16x16x128xf32>
    %21 = vector.shape_cast %20 : vector<1x1x16x16x128xf32> to vector<1x16x16x128xf32>
    %22 = vector.shape_cast %21 : vector<1x16x16x128xf32> to vector<256x128xf32>
    %c3 = arith.constant 3 : index
    %c0_28 = arith.constant 0 : index
    %c0_29 = arith.constant 0 : index
    %23 = vector.load %arg3[%c3, %c0_28, %c0_29] : memref<9x128x128xf32, #tpu.memory_space<vmem>>, vector<1x128x128xf32>
    %24 = vector.shape_cast %23 : vector<1x128x128xf32> to vector<128x128xf32>
    %cst_30 = arith.constant dense<0.000000e+00> : vector<256x128xf32>
    %25 = tpu.matmul %22, %24, %cst_30 {dimension_numbers = #tpu.dot_dimension_numbers<[1], [0], [0], [1], [0, 0, 1, 1], [], []>} : vector<256x128xf32>, vector<128x128xf32>, vector<256x128xf32> -> vector<256x128xf32>
    %26 = arith.addf %19, %25 : vector<256x128xf32>
    %c0_31 = arith.constant 0 : index
    %c0_32 = arith.constant 0 : index
    %c1_33 = arith.constant 1 : index
    %c1_34 = arith.constant 1 : index
    %c0_35 = arith.constant 0 : index
    %27 = vector.load %arg2[%c0_31, %c0_32, %c1_33, %c1_34, %c0_35] : memref<1x1x18x18x128xf32, #tpu.memory_space<vmem>>, vector<1x1x16x16x128xf32>
    %28 = vector.shape_cast %27 : vector<1x1x16x16x128xf32> to vector<1x16x16x128xf32>
    %29 = vector.shape_cast %28 : vector<1x16x16x128xf32> to vector<256x128xf32>
    %c4 = arith.constant 4 : index
    %c0_36 = arith.constant 0 : index
    %c0_37 = arith.constant 0 : index
    %30 = vector.load %arg3[%c4, %c0_36, %c0_37] : memref<9x128x128xf32, #tpu.memory_space<vmem>>, vector<1x128x128xf32>
    %31 = vector.shape_cast %30 : vector<1x128x128xf32> to vector<128x128xf32>
    %cst_38 = arith.constant dense<0.000000e+00> : vector<256x128xf32>
    %32 = tpu.matmul %29, %31, %cst_38 {dimension_numbers = #tpu.dot_dimension_numbers<[1], [0], [0], [1], [0, 0, 1, 1], [], []>} : vector<256x128xf32>, vector<128x128xf32>, vector<256x128xf32> -> vector<256x128xf32>
    %33 = arith.addf %26, %32 : vector<256x128xf32>
    %c0_39 = arith.constant 0 : index
    %c0_40 = arith.constant 0 : index
    %c1_41 = arith.constant 1 : index
    %c2_42 = arith.constant 2 : index
    %c0_43 = arith.constant 0 : index
    %34 = vector.load %arg2[%c0_39, %c0_40, %c1_41, %c2_42, %c0_43] : memref<1x1x18x18x128xf32, #tpu.memory_space<vmem>>, vector<1x1x16x16x128xf32>
    %35 = vector.shape_cast %34 : vector<1x1x16x16x128xf32> to vector<1x16x16x128xf32>
    %36 = vector.shape_cast %35 : vector<1x16x16x128xf32> to vector<256x128xf32>
    %c5 = arith.constant 5 : index
    %c0_44 = arith.constant 0 : index
    %c0_45 = arith.constant 0 : index
    %37 = vector.load %arg3[%c5, %c0_44, %c0_45] : memref<9x128x128xf32, #tpu.memory_space<vmem>>, vector<1x128x128xf32>
    %38 = vector.shape_cast %37 : vector<1x128x128xf32> to vector<128x128xf32>
    %cst_46 = arith.constant dense<0.000000e+00> : vector<256x128xf32>
    %39 = tpu.matmul %36, %38, %cst_46 {dimension_numbers = #tpu.dot_dimension_numbers<[1], [0], [0], [1], [0, 0, 1, 1], [], []>} : vector<256x128xf32>, vector<128x128xf32>, vector<256x128xf32> -> vector<256x128xf32>
    %40 = arith.addf %33, %39 : vector<256x128xf32>
    %c0_47 = arith.constant 0 : index
    %c0_48 = arith.constant 0 : index
    %c2_49 = arith.constant 2 : index
    %c0_50 = arith.constant 0 : index
    %c0_51 = arith.constant 0 : index
    %41 = vector.load %arg2[%c0_47, %c0_48, %c2_49, %c0_50, %c0_51] : memref<1x1x18x18x128xf32, #tpu.memory_space<vmem>>, vector<1x1x16x16x128xf32>
    %42 = vector.shape_cast %41 : vector<1x1x16x16x128xf32> to vector<1x16x16x128xf32>
    %43 = vector.shape_cast %42 : vector<1x16x16x128xf32> to vector<256x128xf32>
    %c6 = arith.constant 6 : index
    %c0_52 = arith.constant 0 : index
    %c0_53 = arith.constant 0 : index
    %44 = vector.load %arg3[%c6, %c0_52, %c0_53] : memref<9x128x128xf32, #tpu.memory_space<vmem>>, vector<1x128x128xf32>
    %45 = vector.shape_cast %44 : vector<1x128x128xf32> to vector<128x128xf32>
    %cst_54 = arith.constant dense<0.000000e+00> : vector<256x128xf32>
    %46 = tpu.matmul %43, %45, %cst_54 {dimension_numbers = #tpu.dot_dimension_numbers<[1], [0], [0], [1], [0, 0, 1, 1], [], []>} : vector<256x128xf32>, vector<128x128xf32>, vector<256x128xf32> -> vector<256x128xf32>
    %47 = arith.addf %40, %46 : vector<256x128xf32>
    %c0_55 = arith.constant 0 : index
    %c0_56 = arith.constant 0 : index
    %c2_57 = arith.constant 2 : index
    %c1_58 = arith.constant 1 : index
    %c0_59 = arith.constant 0 : index
    %48 = vector.load %arg2[%c0_55, %c0_56, %c2_57, %c1_58, %c0_59] : memref<1x1x18x18x128xf32, #tpu.memory_space<vmem>>, vector<1x1x16x16x128xf32>
    %49 = vector.shape_cast %48 : vector<1x1x16x16x128xf32> to vector<1x16x16x128xf32>
    %50 = vector.shape_cast %49 : vector<1x16x16x128xf32> to vector<256x128xf32>
    %c7 = arith.constant 7 : index
    %c0_60 = arith.constant 0 : index
    %c0_61 = arith.constant 0 : index
    %51 = vector.load %arg3[%c7, %c0_60, %c0_61] : memref<9x128x128xf32, #tpu.memory_space<vmem>>, vector<1x128x128xf32>
    %52 = vector.shape_cast %51 : vector<1x128x128xf32> to vector<128x128xf32>
    %cst_62 = arith.constant dense<0.000000e+00> : vector<256x128xf32>
    %53 = tpu.matmul %50, %52, %cst_62 {dimension_numbers = #tpu.dot_dimension_numbers<[1], [0], [0], [1], [0, 0, 1, 1], [], []>} : vector<256x128xf32>, vector<128x128xf32>, vector<256x128xf32> -> vector<256x128xf32>
    %54 = arith.addf %47, %53 : vector<256x128xf32>
    %c0_63 = arith.constant 0 : index
    %c0_64 = arith.constant 0 : index
    %c2_65 = arith.constant 2 : index
    %c2_66 = arith.constant 2 : index
    %c0_67 = arith.constant 0 : index
    %55 = vector.load %arg2[%c0_63, %c0_64, %c2_65, %c2_66, %c0_67] : memref<1x1x18x18x128xf32, #tpu.memory_space<vmem>>, vector<1x1x16x16x128xf32>
    %56 = vector.shape_cast %55 : vector<1x1x16x16x128xf32> to vector<1x16x16x128xf32>
    %57 = vector.shape_cast %56 : vector<1x16x16x128xf32> to vector<256x128xf32>
    %c8 = arith.constant 8 : index
    %c0_68 = arith.constant 0 : index
    %c0_69 = arith.constant 0 : index
    %58 = vector.load %arg3[%c8, %c0_68, %c0_69] : memref<9x128x128xf32, #tpu.memory_space<vmem>>, vector<1x128x128xf32>
    %59 = vector.shape_cast %58 : vector<1x128x128xf32> to vector<128x128xf32>
    %cst_70 = arith.constant dense<0.000000e+00> : vector<256x128xf32>
    %60 = tpu.matmul %57, %59, %cst_70 {dimension_numbers = #tpu.dot_dimension_numbers<[1], [0], [0], [1], [0, 0, 1, 1], [], []>} : vector<256x128xf32>, vector<128x128xf32>, vector<256x128xf32> -> vector<256x128xf32>
    %61 = arith.addf %54, %60 : vector<256x128xf32>
    %62 = vector.shape_cast %61 : vector<256x128xf32> to vector<1x256x128xf32>
    %c0_71 = arith.constant 0 : index
    %c0_72 = arith.constant 0 : index
    %c0_73 = arith.constant 0 : index
    %63 = vector.load %arg4[%c0_71, %c0_72, %c0_73] : memref<1x256x128xf32, #tpu.memory_space<vmem>>, vector<1x256x128xf32>
    %64 = arith.addf %62, %63 : vector<1x256x128xf32>
    %c0_74 = arith.constant 0 : index
    %c0_75 = arith.constant 0 : index
    %c0_76 = arith.constant 0 : index
    %65 = vector.load %arg5[%c0_74, %c0_75, %c0_76] : memref<1x256x128xf32, #tpu.memory_space<vmem>>, vector<1x256x128xf32>
    tpu.vector_store %arg5[%c0_74, %c0_75, %c0_76], %64 {strides = array<i32>} : memref<1x256x128xf32, #tpu.memory_space<vmem>>, vector<1x256x128xf32>,
    return
  }
  func.func @transform_0(%arg0: i32, %arg1: i32) -> (i32, i32, i32, i32, i32) {
    %c0_i32 = arith.constant 0 : i32
    %c0_i32_0 = arith.constant 0 : i32
    %c0_i32_1 = arith.constant 0 : i32
    %c0_i32_2 = arith.constant 0 : i32
    %c0_i32_3 = arith.constant 0 : i32
    return %arg0, %c0_i32, %c0_i32_0, %c0_i32_1, %c0_i32_2 : i32, i32, i32, i32, i32
  }
  func.func @transform_1(%arg0: i32, %arg1: i32) -> (i32, i32, i32) {
    %c0_i32 = arith.constant 0 : i32
    %c0_i32_0 = arith.constant 0 : i32
    %c0_i32_1 = arith.constant 0 : i32
    return %c0_i32, %c0_i32_0, %arg1 : i32, i32, i32
  }
  func.func @transform_2(%arg0: i32, %arg1: i32) -> (i32, i32, i32) {
    %c0_i32 = arith.constant 0 : i32
    %c0_i32_0 = arith.constant 0 : i32
    return %arg0, %c0_i32, %arg1 : i32, i32, i32
  }
  func.func @transform_3(%arg0: i32, %arg1: i32) -> (i32, i32, i32) {
    %c0_i32 = arith.constant 0 : i32
    %c0_i32_0 = arith.constant 0 : i32
    return %arg0, %c0_i32, %arg1 : i32, i32, i32
  }
}

</mosaic_0001>

<bundles_post_ra>
// kernel: basic_block_forward.3
= control target key start
LH: loop header
LB: loop body
LE: loop exit
PB: predicated region body
PF: predicated region fallthrough
CT: control target
= control target key end

     0   :  { %s4725_s12 = smov 0   ;;  %s4727_s13 = smov 0   ;;  %s6409_s0 = inlined_call_operand.vmem [shape: f32[2,1,18,18,128], index: 0, kind: input, shape index: {}]   ;;  %s6410_s1 = inlined_call_operand.vmem [shape: f32[9,128,128], index: 1, kind: input, shape index: {}]   ;;  %s6411_s2 = inlined_call_operand.vmem [shape: f32[2,256,128], index: 2, kind: input, shape index: {}, may-alias: {2,3}]   ;;  %s6412_s3 = inlined_call_operand.vmem [shape: f32[2,256,128], index: 3, kind: output, shape index: {}, may-alias: {2,3}]  }
   0x1   :  { %s4729_s14 = smov 0  }
   0x2 LB: > { %s25_s15 = sadd.s32 1, %s4699_s13  ;;  %p3142_p0 = scmp.ge.s32.totalorder %s4703_s14, 1  ;;  %s4703_s14 = sphi %s4729_s14, %s13_s14   ;;  %s4699_s13 = sphi %s4727_s13, %s6644_s13   ;;  %s4695_s12 = sphi %s4725_s12, %s6643_s12  }
   0x3   : > { %p27_p1 = scmp.ge.s32.totalorder %s25_s15, 2  ;;  %p175_p2 = scmp.lt.s32.totalorder %s4703_s14, 3 }
   0x5   : > { %s6646_s15 = smov (%p27_p1, %s25_s15), 0  ;;  %p176_p3 = pnand %p3142_p0, %p175_p2 }
   0x7   : > { %179 = sbr.rel (%p176_p3) target bundleno = 547 (0x223), region = 32 }
   0xc   : > { %v3163_v0 = vld [vmem:[%s6410_s1 + $0xf8] sm:$0xff]  ;;  %v3162_v1 = vld [vmem:[%s6410_s1 + $0xf0] sm:$0xff]  ;;  %v3161_v2 = vld [vmem:[%s6410_s1 + $0xe8] sm:$0xff]  ;;  %p214_p4 = scmp.lt.s32.totalorder %s4695_s12, 1 }
   0xd   : > { %4624 = vmatprep.subr.mxu1 %v3163_v0  ;;  %3904 = vmatprep.subr.mxu0 %v3163_v0  ;;  %v3160_v3 = vld [vmem:[%s6410_s1 + $0xe0] sm:$0xff]  ;;  %v3159_v4 = vld [vmem:[%s6410_s1 + $0xd8] sm:$0xff]  ;;  %v3158_v5 = vld [vmem:[%s6410_s1 + $0xd0] sm:$0xff] }
   0xe   : > { %4640 = vmatpush3.msra.mxu1 %v3163_v0  ;;  %3905 = vmatpush3.msra.mxu0 %v3163_v0  ;;  %v3157_v6 = vld [vmem:[%s6410_s1 + $0xc8] sm:$0xff]  ;;  %v3156_v7 = vld [vmem:[%s6410_s1 + $0xc0] sm:$0xff]  ;;  %v3155_v8 = vld [vmem:[%s6410_s1 + $0xb8] sm:$0xff]  ;;  %s6648_s12 = smov (!%p214_p4, %s4695_s12), 1 }
   0xf   : > { %4625 = vmatprep.subr.mxu1 %v3162_v1  ;;  %3906 = vmatprep.subr.mxu0 %v3162_v1  ;;  %v3154_v9 = vld [vmem:[%s6410_s1 + $0xb0] sm:$0xff]  ;;  %v3153_v10 = vld [vmem:[%s6410_s1 + $0xa8] sm:$0xff]  ;;  %v3152_v11 = vld [vmem:[%s6410_s1 + $0xa0] sm:$0xff]  ;;  %s4656_s19 = smul.u32 432, %s6648_s12 }
  0x10   : > { %4641 = vmatpush3.msra.mxu1 %v3162_v1  ;;  %3907 = vmatpush3.msra.mxu0 %v3162_v1  ;;  %v3151_v12 = vld [vmem:[%s6410_s1 + $0x98] sm:$0xff]  ;;  %v3150_v13 = vld [vmem:[%s6410_s1 + $0x90] sm:$0xff]  ;;  %v3149_v14 = vld [vmem:[%s6410_s1 + $0x88] sm:$0xff] }
  0x11   : > { %4626 = vmatprep.subr.mxu1 %v3161_v2  ;;  %3908 = vmatprep.subr.mxu0 %v3161_v2  ;;  %s4798_s26 = scalar_lea.vmem %s6409_s0, %s4656_s19  ;;  %v3148_v15 = vld [vmem:[%s6410_s1 + $0x80] sm:$0xff]  ;;  %v286_v19 = vld [vmem:[%s6410_s1 + $0x78] sm:$0xff]  ;;  %v285_v22 = vld [vmem:[%s6410_s1 + $0x70] sm:$0xff] }
  0x12   : > { %4642 = vmatpush3.msra.mxu1 %v3161_v2  ;;  %3909 = vmatpush3.msra.mxu0 %v3161_v2  ;;  %v4804_v16 = vld [vmem:[%s4798_s26 + $0xc1] sm:$0xff]  ;;  %v4808_v18 = vld [vmem:[%s4798_s26 + $0xc9] sm:$0xff]  ;;  %v3179_v21 = vld [vmem:[%s6410_s1 + $0x178] sm:$0xff] }
  0x13   : > { %4627 = vmatprep.subr.mxu1 %v3160_v3  ;;  %3910 = vmatprep.subr.mxu0 %v3160_v3  ;;  %v287_v17 = vld [vmem:[%s4798_s26 + $0x1] sm:$0xff]  ;;  %v288_v20 = vld [vmem:[%s4798_s26 + $0x9] sm:$0xff]  ;;  %v4823_v23 = vld [vmem:[%s4798_s26 + $0xd9] sm:$0xff] }
  0x14   : > { %4643 = vmatpush3.msra.mxu1 %v3160_v3  ;;  %3911 = vmatpush3.msra.mxu0 %v3160_v3  ;;  %v3178_v24 = vld [vmem:[%s6410_s1 + $0x170] sm:$0xff]  ;;  %v4829_v25 = vld [vmem:[%s4798_s26 + $0x19] sm:$0xff]  ;;  %v4832_v26 = vld [vmem:[%s4798_s26 + $0xe1] sm:$0xff] }
  0x15   : > { %4628 = vmatprep.subr.mxu1 %v3159_v4  ;;  %3912 = vmatprep.subr.mxu0 %v3159_v4  ;;  %v284_v27 = vld [vmem:[%s6410_s1 + $0x68] sm:$0xff]  ;;  %v283_v30 = vld [vmem:[%s6410_s1 + $0x60] sm:$0xff]  ;;  %v4850_v31 = vld [vmem:[%s4798_s26 + $0xf1] sm:$0xff] }
  0x16   : > { %4644 = vmatpush3.msra.mxu1 %v3159_v4  ;;  %3913 = vmatpush3.msra.mxu0 %v3159_v4  ;;  %v4839_v28 = vld [vmem:[%s4798_s26 + $0x21] sm:$0xff]  ;;  %v4857_v33 = vld [vmem:[%s4798_s26 + $0x31] sm:$0xff]  ;;  %v4860_v34 = vld [vmem:[%s4798_s26 + $0xf9] sm:$0xff] }
  0x17   : > { %4629 = vmatprep.subr.mxu1 %v3158_v5  ;;  %3914 = vmatprep.subr.mxu0 %v3158_v5  ;;  %v3177_v29 = vld [vmem:[%s6410_s1 + $0x168] sm:$0xff]  ;;  %v3176_v32 = vld [vmem:[%s6410_s1 + $0x160] sm:$0xff]  ;;  %v282_v35 = vld [vmem:[%s6410_s1 + $0x58] sm:$0xff] }
  0x18   : > { %4645 = vmatpush3.msra.mxu1 %v3158_v5  ;;  %3915 = vmatpush3.msra.mxu0 %v3158_v5  ;;  %v4867_v36 = vld [vmem:[%s4798_s26 + $0x39] sm:$0xff]  ;;  %v281_v38 = vld [vmem:[%s6410_s1 + $0x50] sm:$0xff]  ;;  %v280_v43 = vld [vmem:[%s6410_s1 + $0x48] sm:$0xff] }
  0x19   : > { %4630 = vmatprep.subr.mxu1 %v3157_v6  ;;  %3916 = vmatprep.subr.mxu0 %v3157_v6  ;;  %v3175_v37 = vld [vmem:[%s6410_s1 + $0x158] sm:$0xff]  ;;  %v4878_v39 = vld [vmem:[%s4798_s26 + $0x109] sm:$0xff]  ;;  %v279_v46 = vld [vmem:[%s6410_s1 + $0x40] sm:$0xff] }
  0x1a   : > { %4646 = vmatpush3.msra.mxu1 %v3157_v6  ;;  %3917 = vmatpush3.msra.mxu0 %v3157_v6  ;;  %v3174_v40 = vld [vmem:[%s6410_s1 + $0x150] sm:$0xff]  ;;  %v3173_v45 = vld [vmem:[%s6410_s1 + $0x148] sm:$0xff]  ;;  %v3172_v48 = vld [vmem:[%s6410_s1 + $0x140] sm:$0xff] }
  0x1b   : > { %4631 = vmatprep.subr.mxu1 %v3156_v7  ;;  %3918 = vmatprep.subr.mxu0 %v3156_v7  ;;  %v4885_v41 = vld [vmem:[%s4798_s26 + $0x49] sm:$0xff]  ;;  %v4888_v42 = vld [vmem:[%s4798_s26 + $0x111] sm:$0xff]  ;;  %v4906_v47 = vld [vmem:[%s4798_s26 + $0x121] sm:$0xff] }
  0x1c   : > { %4647 = vmatpush3.msra.mxu1 %v3156_v7  ;;  %3919 = vmatpush3.msra.mxu0 %v3156_v7  ;;  %v4895_v44 = vld [vmem:[%s4798_s26 + $0x51] sm:$0xff]  ;;  %v4913_v49 = vld [vmem:[%s4798_s26 + $0x61] sm:$0xff]  ;;  %v4916_v50 = vld [vmem:[%s4798_s26 + $0x129] sm:$0xff] }
  0x1d   : > { %4632 = vmatprep.subr.mxu1 %v3155_v8  ;;  %3920 = vmatprep.subr.mxu0 %v3155_v8  ;;  %v278_v51 = vld [vmem:[%s6410_s1 + $0x38] sm:$0xff]  ;;  %v4923_v52 = vld [vmem:[%s4798_s26 + $0x69] sm:$0xff]  ;;  %v4944_v58 = vld [vmem:[%s4798_s26 + $0x141] sm:$0xff] }
  0x1e   : > { %4648 = vmatpush3.msra.mxu1 %v3155_v8  ;;  %3921 = vmatpush3.msra.mxu0 %v3155_v8  ;;  %v3171_v53 = vld [vmem:[%s6410_s1 + $0x138] sm:$0xff]  ;;  %v277_v54 = vld [vmem:[%s6410_s1 + $0x30] sm:$0xff]  ;;  %v276_v59 = vld [vmem:[%s6410_s1 + $0x28] sm:$0xff] }
  0x1f   : > { %4633 = vmatprep.subr.mxu1 %v3154_v9  ;;  %3922 = vmatprep.subr.mxu0 %v3154_v9  ;;  %v4934_v55 = vld [vmem:[%s4798_s26 + $0x139] sm:$0xff]  ;;  %v3170_v56 = vld [vmem:[%s6410_s1 + $0x130] sm:$0xff]  ;;  %v4951_v60 = vld [vmem:[%s4798_s26 + $0x81] sm:$0xff] }
  0x20   : > { %4649 = vmatpush3.msra.mxu1 %v3154_v9  ;;  %3923 = vmatpush3.msra.mxu0 %v3154_v9  ;;  %v4941_v57 = vld [vmem:[%s4798_s26 + $0x79] sm:$0xff]  ;;  %v3169_v61 = vld [vmem:[%s6410_s1 + $0x128] sm:$0xff]  ;;  %v4962_v63 = vld [vmem:[%s4798_s26 + $0x151] sm:$0xff] }
  0x21   : > { %4634 = vmatprep.subr.mxu1 %v3153_v10  ;;  %3924 = vmatprep.subr.mxu0 %v3153_v10  ;;  %v275_v62 = vld [vmem:[%s6410_s1 + $0x20] sm:$0xff]  ;;  %v4969_v1 = vld [vmem:[%s4798_s26 + $0x91] sm:$0xff]  ;;  %v4990_v7 = vld [vmem:[%s4798_s26 + $0x169] sm:$0xff] }
  0x22   : > { %4650 = vmatpush3.msra.mxu1 %v3153_v10  ;;  %3925 = vmatpush3.msra.mxu0 %v3153_v10  ;;  %v3168_v0 = vld [vmem:[%s6410_s1 + $0x120] sm:$0xff]  ;;  %v274_v3 = vld [vmem:[%s6410_s1 + $0x18] sm:$0xff]  ;;  %v273_v6 = vld [vmem:[%s6410_s1 + $0x10] sm:$0xff]  ;;  %6444 = vst [vmem:[#allocation3_spill] sm:$0xff] %v4990_v7 }
  0x23   : > { %4635 = vmatprep.subr.mxu1 %v3152_v11  ;;  %3926 = vmatprep.subr.mxu0 %v3152_v11  ;;  %v4972_v2 = vld [vmem:[%s4798_s26 + $0x159] sm:$0xff]  ;;  %v3166_v8 = vld [vmem:[%s6410_s1 + $0x110] sm:$0xff] }
  0x24   : > { %4651 = vmatpush3.msra.mxu1 %v3152_v11  ;;  %3927 = vmatpush3.msra.mxu0 %v3152_v11  ;;  %6443 = vst [vmem:[#allocation2_spill] sm:$0xff] %v4972_v2  ;;  %v4979_v4 = vld [vmem:[%s4798_s26 + $0x99] sm:$0xff]  ;;  %v4997_v9 = vld [vmem:[%s4798_s26 + $0xa9] sm:$0xff]  ;;  %v5000_v10 = vld [vmem:[%s4798_s26 + $0x171] sm:$0xff] }
  0x25   : > { %4636 = vmatprep.subr.mxu1 %v3151_v12  ;;  %3928 = vmatprep.subr.mxu0 %v3151_v12  ;;  %v3167_v5 = vld [vmem:[%s6410_s1 + $0x118] sm:$0xff]  ;;  %6445 = vst [vmem:[#allocation4_spill] sm:$0xff] %v5000_v10  ;;  %v272_v11 = vld [vmem:[%s6410_s1 + $0x8] sm:$0xff] }
  0x26   : > { %4652 = vmatpush3.msra.mxu1 %v3151_v12  ;;  %3929 = vmatpush3.msra.mxu0 %v3151_v12  ;;  %v5007_v12 = vld [vmem:[%s4798_s26 + $0xb1] sm:$0xff] }
  0x27   : > { %4637 = vmatprep.subr.mxu1 %v3150_v13  ;;  %3930 = vmatprep.subr.mxu0 %v3150_v13 }
  0x28   : > { %4653 = vmatpush3.msra.mxu1 %v3150_v13  ;;  %3931 = vmatpush3.msra.mxu0 %v3150_v13  ;;  %v3165_v13 = vld [vmem:[%s6410_s1 + $0x108] sm:$0xff] }
  0x29   : > { %4638 = vmatprep.subr.mxu1 %v3149_v14  ;;  %3932 = vmatprep.subr.mxu0 %v3149_v14 }
  0x2a   : > { %4654 = vmatpush3.msra.mxu1 %v3149_v14  ;;  %3933 = vmatpush3.msra.mxu0 %v3149_v14  ;;  %v271_v14 = vld [vmem:[%s6410_s1] sm:$0xff] }
  0x2b   : > { %4639 = vmatprep.subr.mxu1 %v3148_v15  ;;  %3934 = vmatprep.subr.mxu0 %v3148_v15 }
  0x2c   : > { %4655 = vmatpush3.msra.mxu1 %v3148_v15  ;;  %3960 = vmatprep.mubr.f32.mxu1 %v4804_v16 }
  0x2d   : > { %3935 = vmatpush3.msra.mxu0 %v3148_v15  ;;  %3936 = vmatprep.mubr.f32.mxu0 %v287_v17  ;;  %v239_v15 = vld [vmem:[%s4798_s26] sm:$0xff] }
  0x2e   : > { %3961 = vmatmul.mubr.f32.vlgmr.msra.gmra.mxu1 %v4808_v18  ;;  %3984 = vmatprep.subr.mxu1 %v286_v19  ;;  %v3164_v17 = vld [vmem:[%s6410_s1 + $0x100] sm:$0xff] }
  0x2f   : > { %3937 = vmatmul.mubr.f32.vlgmr.msra.gmra.mxu0 %v288_v20  ;;  %3985 = vmatpush3.msra.mxu1 %v286_v19  ;;  %v240_v19 = vld [vmem:[%s4798_s26 + $0x8] sm:$0xff] }
  0x30   : > { %4064 = vmatprep.subr.mxu0 %v3179_v21  ;;  %3986 = vmatprep.subr.mxu1 %v285_v22  ;;  %v786_v20 = vld [vmem:[%s4798_s26 + $0x2] sm:$0xff] }
  0x31   : > { %4065 = vmatpush3.msra.mxu0 %v3179_v21  ;;  %3963 = vmatprep.mubr.f32.mxu1 %v4823_v23  ;;  %v3227_v21 = vld [vmem:[%s6410_s1 + $0x1f8] sm:$0xff] }
  0x32   : > { %3987 = vmatpush3.msra.mxu1 %v285_v22  ;;  %4066 = vmatprep.subr.mxu0 %v3178_v24  ;;  %v787_v22 = vld [vmem:[%s4798_s26 + $0xa] sm:$0xff] }
  0x33   : > { %3939 = vmatprep.mubr.f32.mxu0 %v4829_v25  ;;  %3964 = vmatmul.mubr.f32.gmra.mxu1 %v4832_v26 }
  0x34   : > { %3988 = vmatprep.subr.mxu1 %v284_v27  ;;  %4067 = vmatpush3.msra.mxu0 %v3178_v24  ;;  %v3275_v24 = vld [vmem:[%s6410_s1 + $0x278] sm:$0xff] }
  0x35   : > { %3940 = vmatmul.mubr.f32.gmra.mxu0 %v4839_v28  ;;  %3989 = vmatpush3.msra.mxu1 %v284_v27  ;;  %v5032_v27 = vld [vmem:[%s4798_s26 + $0x18] sm:$0xff] }
  0x36   : > { %4068 = vmatprep.subr.mxu0 %v3177_v29  ;;  %3990 = vmatprep.subr.mxu1 %v283_v30 }
  0x37   : > { %4069 = vmatpush3.msra.mxu0 %v3177_v29  ;;  %3966 = vmatprep.mubr.f32.mxu1 %v4850_v31  ;;  %v5035_v29 = vld [vmem:[%s4798_s26 + $0x20] sm:$0xff] }
  0x38   : > { %3991 = vmatpush3.msra.mxu1 %v283_v30  ;;  %4070 = vmatprep.subr.mxu0 %v3176_v32  ;;  %v5038_v30 = vld [vmem:[%s4798_s26 + $0x1a] sm:$0xff] }
  0x39   : > { %3942 = vmatprep.mubr.f32.mxu0 %v4857_v33  ;;  %3967 = vmatmul.mubr.f32.gmra.mxu1 %v4860_v34  ;;  %6446 = vst [vmem:[#allocation5_spill] sm:$0xff] %v5038_v30 }
  0x3a   : > { %3992 = vmatprep.subr.mxu1 %v282_v35  ;;  %4071 = vmatpush3.msra.mxu0 %v3176_v32  ;;  %v3226_v32 = vld [vmem:[%s6410_s1 + $0x1f0] sm:$0xff] }
  0x3b   : > { %3943 = vmatmul.mubr.f32.gmra.mxu0 %v4867_v36  ;;  %3993 = vmatpush3.msra.mxu1 %v282_v35  ;;  %v5045_v35 = vld [vmem:[%s4798_s26 + $0x22] sm:$0xff] }
  0x3c   : > { %4072 = vmatprep.subr.mxu0 %v3175_v37  ;;  %3994 = vmatprep.subr.mxu1 %v281_v38  ;;  %6447 = vst [vmem:[#allocation6_spill] sm:$0xff] %v5045_v35 }
  0x3d   : > { %4073 = vmatpush3.msra.mxu0 %v3175_v37  ;;  %3969 = vmatprep.mubr.f32.mxu1 %v4878_v39  ;;  %v3274_v37 = vld [vmem:[%s6410_s1 + $0x270] sm:$0xff] }
  0x3e   : > { %3995 = vmatpush3.msra.mxu1 %v281_v38  ;;  %4074 = vmatprep.subr.mxu0 %v3174_v40  ;;  %v5052_v38 = vld [vmem:[%s4798_s26 + $0x30] sm:$0xff] }
  0x3f   : > { %3945 = vmatprep.mubr.f32.mxu0 %v4885_v41  ;;  %3970 = vmatmul.mubr.f32.gmra.mxu1 %v4888_v42 }
  0x40   : > { %3996 = vmatprep.subr.mxu1 %v280_v43  ;;  %4075 = vmatpush3.msra.mxu0 %v3174_v40  ;;  %v5056_v40 = vld [vmem:[%s4798_s26 + $0x38] sm:$0xff] }
  0x41   : > { %3946 = vmatmul.mubr.f32.gmra.mxu0 %v4895_v44  ;;  %3997 = vmatpush3.msra.mxu1 %v280_v43  ;;  %v5060_v43 = vld [vmem:[%s4798_s26 + $0x32] sm:$0xff] }
  0x42   : > { %4076 = vmatprep.subr.mxu0 %v3173_v45  ;;  %3998 = vmatprep.subr.mxu1 %v279_v46  ;;  %6448 = vst [vmem:[#allocation7_spill] sm:$0xff] %v5060_v43 }
  0x43   : > { %4077 = vmatpush3.msra.mxu0 %v3173_v45  ;;  %3972 = vmatprep.mubr.f32.mxu1 %v4906_v47  ;;  %v3225_v45 = vld [vmem:[%s6410_s1 + $0x1e8] sm:$0xff] }
  0x44   : > { %3999 = vmatpush3.msra.mxu1 %v279_v46  ;;  %4078 = vmatprep.subr.mxu0 %v3172_v48  ;;  %v5067_v46 = vld [vmem:[%s4798_s26 + $0x3a] sm:$0xff] }
  0x45   : > { %3948 = vmatprep.mubr.f32.mxu0 %v4913_v49  ;;  %3973 = vmatmul.mubr.f32.gmra.mxu1 %v4916_v50  ;;  %6449 = vst [vmem:[#allocation8_spill] sm:$0xff] %v5067_v46 }
  0x46   : > { %4000 = vmatprep.subr.mxu1 %v278_v51  ;;  %4079 = vmatpush3.msra.mxu0 %v3172_v48  ;;  %v3273_v48 = vld [vmem:[%s6410_s1 + $0x268] sm:$0xff] }
  0x47   : > { %3949 = vmatmul.mubr.f32.gmra.mxu0 %v4923_v52  ;;  %4001 = vmatpush3.msra.mxu1 %v278_v51  ;;  %v5074_v51 = vld [vmem:[%s4798_s26 + $0x48] sm:$0xff] }
  0x48   : > { %4080 = vmatprep.subr.mxu0 %v3171_v53  ;;  %4002 = vmatprep.subr.mxu1 %v277_v54 }
  0x49   : > { %4081 = vmatpush3.msra.mxu0 %v3171_v53  ;;  %3975 = vmatprep.mubr.f32.mxu1 %v4934_v55  ;;  %v5078_v53 = vld [vmem:[%s4798_s26 + $0x50] sm:$0xff] }
  0x4a   : > { %4003 = vmatpush3.msra.mxu1 %v277_v54  ;;  %4082 = vmatprep.subr.mxu0 %v3170_v56  ;;  %v5082_v54 = vld [vmem:[%s4798_s26 + $0x4a] sm:$0xff] }
  0x4b   : > { %3951 = vmatprep.mubr.f32.mxu0 %v4941_v57  ;;  %3976 = vmatmul.mubr.f32.gmra.mxu1 %v4944_v58  ;;  %6450 = vst [vmem:[#allocation9_spill] sm:$0xff] %v5082_v54 }
  0x4c   : > { %4004 = vmatprep.subr.mxu1 %v276_v59  ;;  %4083 = vmatpush3.msra.mxu0 %v3170_v56  ;;  %v3224_v56 = vld [vmem:[%s6410_s1 + $0x1e0] sm:$0xff] }
  0x4d   : > { %3952 = vmatmul.mubr.f32.gmra.mxu0 %v4951_v60  ;;  %4005 = vmatpush3.msra.mxu1 %v276_v59  ;;  %v5089_v59 = vld [vmem:[%s4798_s26 + $0x52] sm:$0xff] }
  0x4e   : > { %4084 = vmatprep.subr.mxu0 %v3169_v61  ;;  %4006 = vmatprep.subr.mxu1 %v275_v62  ;;  %6451 = vst [vmem:[#allocation10_spill] sm:$0xff] %v5089_v59 }
  0x4f   : > { %4085 = vmatpush3.msra.mxu0 %v3169_v61  ;;  %3978 = vmatprep.mubr.f32.mxu1 %v4962_v63  ;;  %v3272_v61 = vld [vmem:[%s6410_s1 + $0x260] sm:$0xff] }
  0x50   : > { %4007 = vmatpush3.msra.mxu1 %v275_v62  ;;  %4086 = vmatprep.subr.mxu0 %v3168_v0  ;;  %v5096_v62 = vld [vmem:[%s4798_s26 + $0x60] sm:$0xff] }
  0x51   : > { %3954 = vmatprep.mubr.f32.mxu0 %v4969_v1  ;;  %3979 = vmatmul.mubr.f32.gmra.mxu1 %v4972_v2  ;;  %v5353_v2 = vld [vmem:[%s4798_s26 + $0x172] sm:$0xff] }
  0x52   : > { %4008 = vmatprep.subr.mxu1 %v274_v3  ;;  %4087 = vmatpush3.msra.mxu0 %v3168_v0  ;;  %v5100_v0 = vld [vmem:[%s4798_s26 + $0x68] sm:$0xff] }
  0x53   : > { %3955 = vmatmul.mubr.f32.gmra.mxu0 %v4979_v4  ;;  %4009 = vmatpush3.msra.mxu1 %v274_v3  ;;  %v5104_v3 = vld [vmem:[%s4798_s26 + $0x62] sm:$0xff] }
  0x54   : > { %4088 = vmatprep.subr.mxu0 %v3167_v5  ;;  %4010 = vmatprep.subr.mxu1 %v273_v6  ;;  %6452 = vst [vmem:[#allocation11_spill] sm:$0xff] %v5104_v3 }
  0x55   : > { %4089 = vmatpush3.msra.mxu0 %v3167_v5  ;;  %3981 = vmatprep.mubr.f32.mxu1 %v4990_v7  ;;  %v3223_v5 = vld [vmem:[%s6410_s1 + $0x1d8] sm:$0xff]  ;;  %v5346_v7 = vld [vmem:[%s4798_s26 + $0x16a] sm:$0xff] }
  0x56   : > { %4011 = vmatpush3.msra.mxu1 %v273_v6  ;;  %4090 = vmatprep.subr.mxu0 %v3166_v8  ;;  %v5111_v6 = vld [vmem:[%s4798_s26 + $0x6a] sm:$0xff] }
  0x57   : > { %3957 = vmatprep.mubr.f32.mxu0 %v4997_v9  ;;  %3982 = vmatmul.mubr.f32.gmra.mxu1 %v5000_v10  ;;  %6453 = vst [vmem:[#allocation12_spill] sm:$0xff] %v5111_v6  ;;  %v5331_v10 = vld [vmem:[%s4798_s26 + $0x15a] sm:$0xff] }
  0x58   : > { %4012 = vmatprep.subr.mxu1 %v272_v11  ;;  %4091 = vmatpush3.msra.mxu0 %v3166_v8  ;;  %v3271_v8 = vld [vmem:[%s6410_s1 + $0x258] sm:$0xff] }
  0x59   : > { %3958 = vmatmul.mubr.f32.gmra.mxu0 %v5007_v12  ;;  %4013 = vmatpush3.msra.mxu1 %v272_v11  ;;  %v5118_v11 = vld [vmem:[%s4798_s26 + $0x78] sm:$0xff] }
  0x5a   : > { %4092 = vmatprep.subr.mxu0 %v3165_v13  ;;  %4014 = vmatprep.subr.mxu1 %v271_v14 }
  0x5b   : > { %4093 = vmatpush3.msra.mxu0 %v3165_v13  ;;  %4015 = vmatpush3.msra.mxu1 %v271_v14  ;;  %v5122_v13 = vld [vmem:[%s4798_s26 + $0x80] sm:$0xff] }
  0x5c   : > { %4016 = vmatprep.mubr.f32.mxu1 %v239_v15  ;;  %4094 = vmatprep.subr.mxu0 %v3164_v17  ;;  %v5126_v14 = vld [vmem:[%s4798_s26 + $0x7a] sm:$0xff]  ;;  %v3222_v15 = vld [vmem:[%s6410_s1 + $0x1d0] sm:$0xff] }
  0x5d   : > { %4017 = vmatmul.mubr.f32.vlgmr.msra.gmra.mxu1 %v240_v19  ;;  %4095 = vmatpush3.msra.mxu0 %v3164_v17  ;;  %6454 = vst [vmem:[#allocation13_spill] sm:$0xff] %v5126_v14  ;;  %v5133_v17 = vld [vmem:[%s4798_s26 + $0x82] sm:$0xff]  ;;  %v3270_v19 = vld [vmem:[%s6410_s1 + $0x250] sm:$0xff] }
  0x5e   : > { %4096 = vmatprep.mubr.f32.mxu0 %v786_v20  ;;  %4144 = vmatprep.subr.mxu1 %v3227_v21  ;;  %6455 = vst [vmem:[#allocation14_spill] sm:$0xff] %v5133_v17  ;;  %v5140_v20 = vld [vmem:[%s4798_s26 + $0x90] sm:$0xff] }
  0x5f   : > { %4097 = vmatmul.mubr.f32.vlgmr.msra.gmra.mxu0 %v787_v22  ;;  %4145 = vmatpush3.msra.mxu1 %v3227_v21  ;;  %v5144_v21 = vld [vmem:[%s4798_s26 + $0x98] sm:$0xff] }
  0x60   : > { %4224 = vmatprep.subr.mxu0 %v3275_v24  ;;  %4019 = vmatprep.mubr.f32.mxu1 %v5032_v27  ;;  %v5148_v22 = vld [vmem:[%s4798_s26 + $0x92] sm:$0xff] }
  0x61   : > { %4225 = vmatpush3.msra.mxu0 %v3275_v24  ;;  %4020 = vmatmul.mubr.f32.gmra.mxu1 %v5035_v29  ;;  %6456 = vst [vmem:[#allocation15_spill] sm:$0xff] %v5148_v22  ;;  %v3221_v24 = vld [vmem:[%s6410_s1 + $0x1c8] sm:$0xff] }
  0x62   : > { %4099 = vmatprep.mubr.f32.mxu0 %v5038_v30  ;;  %4146 = vmatprep.subr.mxu1 %v3226_v32  ;;  %v3213_v30 = vld [vmem:[%s6410_s1 + $0x188] sm:$0xff] }
  0x63   : > { %4100 = vmatmul.mubr.f32.gmra.mxu0 %v5045_v35  ;;  %4147 = vmatpush3.msra.mxu1 %v3226_v32  ;;  %v5155_v32 = vld [vmem:[%s4798_s26 + $0x9a] sm:$0xff]  ;;  %v5309_v35 = vld [vmem:[%s4798_s26 + $0x142] sm:$0xff] }
  0x64   : > { %4226 = vmatprep.subr.mxu0 %v3274_v37  ;;  %4022 = vmatprep.mubr.f32.mxu1 %v5052_v38  ;;  %6457 = vst [vmem:[#allocation16_spill] sm:$0xff] %v5155_v32  ;;  %6471 = vst [vmem:[#allocation30_spill] sm:$0xff] %v5309_v35 }
  0x65   : > { %4227 = vmatpush3.msra.mxu0 %v3274_v37  ;;  %4023 = vmatmul.mubr.f32.gmra.mxu1 %v5056_v40  ;;  %v3269_v37 = vld [vmem:[%s6410_s1 + $0x248] sm:$0xff] }
  0x66   : > { %4102 = vmatprep.mubr.f32.mxu0 %v5060_v43  ;;  %4148 = vmatprep.subr.mxu1 %v3225_v45  ;;  %v3214_v43 = vld [vmem:[%s6410_s1 + $0x190] sm:$0xff] }
  0x67   : > { %4103 = vmatmul.mubr.f32.gmra.mxu0 %v5067_v46  ;;  %4149 = vmatpush3.msra.mxu1 %v3225_v45  ;;  %v5162_v45 = vld [vmem:[%s4798_s26 + $0xa8] sm:$0xff] }
  0x68   : > { %4228 = vmatprep.subr.mxu0 %v3273_v48  ;;  %4025 = vmatprep.mubr.f32.mxu1 %v5074_v51  ;;  %v5287_v46 = vld [vmem:[%s4798_s26 + $0x12a] sm:$0xff] }
  0x69   : > { %4229 = vmatpush3.msra.mxu0 %v3273_v48  ;;  %4026 = vmatmul.mubr.f32.gmra.mxu1 %v5078_v53  ;;  %v5166_v48 = vld [vmem:[%s4798_s26 + $0xb0] sm:$0xff]  ;;  %6469 = vst [vmem:[#allocation28_spill] sm:$0xff] %v5287_v46 }
  0x6a   : > { %4105 = vmatprep.mubr.f32.mxu0 %v5082_v54  ;;  %4150 = vmatprep.subr.mxu1 %v3224_v56  ;;  %v3215_v54 = vld [vmem:[%s6410_s1 + $0x198] sm:$0xff] }
  0x6b   : > { %4106 = vmatmul.mubr.f32.gmra.mxu0 %v5089_v59  ;;  %4151 = vmatpush3.msra.mxu1 %v3224_v56  ;;  %v5170_v56 = vld [vmem:[%s4798_s26 + $0xaa] sm:$0xff]  ;;  %v5265_v59 = vld [vmem:[%s4798_s26 + $0x112] sm:$0xff] }
  0x6c   : > { %4230 = vmatprep.subr.mxu0 %v3272_v61  ;;  %4028 = vmatprep.mubr.f32.mxu1 %v5096_v62  ;;  %6458 = vst [vmem:[#allocation17_spill] sm:$0xff] %v5170_v56  ;;  %6467 = vst [vmem:[#allocation26_spill] sm:$0xff] %v5265_v59 }
  0x6d   : > { %4231 = vmatpush3.msra.mxu0 %v3272_v61  ;;  %4029 = vmatmul.mubr.f32.gmra.mxu1 %v5100_v0  ;;  %v3220_v61 = vld [vmem:[%s6410_s1 + $0x1c0] sm:$0xff] }
  0x6e   : > { %4108 = vmatprep.mubr.f32.mxu0 %v5104_v3  ;;  %4152 = vmatprep.subr.mxu1 %v3223_v5  ;;  %v3216_v3 = vld [vmem:[%s6410_s1 + $0x1a0] sm:$0xff] }
  0x6f   : > { %4109 = vmatmul.mubr.f32.gmra.mxu0 %v5111_v6  ;;  %4153 = vmatpush3.msra.mxu1 %v3223_v5  ;;  %v5177_v5 = vld [vmem:[%s4798_s26 + $0xb2] sm:$0xff]  ;;  %v5243_v6 = vld [vmem:[%s4798_s26 + $0xfa] sm:$0xff] }
  0x70   : > { %4232 = vmatprep.subr.mxu0 %v3271_v8  ;;  %4031 = vmatprep.mubr.f32.mxu1 %v5118_v11  ;;  %6459 = vst [vmem:[#allocation18_spill] sm:$0xff] %v5177_v5  ;;  %6465 = vst [vmem:[#allocation24_spill] sm:$0xff] %v5243_v6 }
  0x71   : > { %4233 = vmatpush3.msra.mxu0 %v3271_v8  ;;  %4032 = vmatmul.mubr.f32.gmra.mxu1 %v5122_v13  ;;  %v3268_v8 = vld [vmem:[%s6410_s1 + $0x240] sm:$0xff] }
  0x72   : > { %4111 = vmatprep.mubr.f32.mxu0 %v5126_v14  ;;  %4154 = vmatprep.subr.mxu1 %v3222_v15  ;;  %v3217_v14 = vld [vmem:[%s6410_s1 + $0x1a8] sm:$0xff] }
  0x73   : > { %4112 = vmatmul.mubr.f32.gmra.mxu0 %v5133_v17  ;;  %4155 = vmatpush3.msra.mxu1 %v3222_v15  ;;  %v5184_v15 = vld [vmem:[%s4798_s26 + $0xc0] sm:$0xff] }
  0x74   : > { %4234 = vmatprep.subr.mxu0 %v3270_v19  ;;  %4034 = vmatprep.mubr.f32.mxu1 %v5140_v20  ;;  %v5221_v17 = vld [vmem:[%s4798_s26 + $0xe2] sm:$0xff] }
  0x75   : > { %4235 = vmatpush3.msra.mxu0 %v3270_v19  ;;  %4035 = vmatmul.mubr.f32.gmra.mxu1 %v5144_v21  ;;  %v5188_v19 = vld [vmem:[%s4798_s26 + $0xc8] sm:$0xff]  ;;  %6463 = vst [vmem:[#allocation22_spill] sm:$0xff] %v5221_v17 }
  0x76   : > { %4114 = vmatprep.mubr.f32.mxu0 %v5148_v22  ;;  %4156 = vmatprep.subr.mxu1 %v3221_v24  ;;  %v3218_v22 = vld [vmem:[%s6410_s1 + $0x1b0] sm:$0xff] }
  0x77   : > { %4115 = vmatmul.mubr.f32.gmra.mxu0 %v5155_v32  ;;  %4157 = vmatpush3.msra.mxu1 %v3221_v24  ;;  %v5192_v24 = vld [vmem:[%s4798_s26 + $0xc2] sm:$0xff]  ;;  %v5199_v32 = vld [vmem:[%s4798_s26 + $0xca] sm:$0xff] }
  0x78   : > { %4236 = vmatprep.subr.mxu0 %v3269_v37  ;;  %4037 = vmatprep.mubr.f32.mxu1 %v5162_v45  ;;  %6460 = vst [vmem:[#allocation19_spill] sm:$0xff] %v5192_v24  ;;  %6461 = vst [vmem:[#allocation20_spill] sm:$0xff] %v5199_v32 }
  0x79   : > { %4237 = vmatpush3.msra.mxu0 %v3269_v37  ;;  %4038 = vmatmul.mubr.f32.gmra.mxu1 %v5166_v48  ;;  %v3219_v37 = vld [vmem:[%s6410_s1 + $0x1b8] sm:$0xff] }
  0x7a   : > { %4117 = vmatprep.mubr.f32.mxu0 %v5170_v56  ;;  %4158 = vmatprep.subr.mxu1 %v3220_v61  ;;  %v5210_v56 = vld [vmem:[%s4798_s26 + $0xe0] sm:$0xff] }
  0x7b   : > { %4118 = vmatmul.mubr.f32.gmra.mxu0 %v5177_v5  ;;  %4159 = vmatpush3.msra.mxu1 %v3220_v61  ;;  %v3267_v61 = vld [vmem:[%s6410_s1 + $0x238] sm:$0xff] }
  0x7c   : > { %4238 = vmatprep.subr.mxu0 %v3268_v8  ;;  %4040 = vmatprep.mubr.f32.mxu1 %v5184_v15  ;;  %v5206_v5 = vld [vmem:[%s4798_s26 + $0xd8] sm:$0xff] }
  0x7d   : > { %4239 = vmatpush3.msra.mxu0 %v3268_v8  ;;  %4041 = vmatmul.mubr.f32.gmra.mxu1 %v5188_v19  ;;  %v5214_v8 = vld [vmem:[%s4798_s26 + $0xda] sm:$0xff] }
  0x7e   : > { %4120 = vmatprep.mubr.f32.mxu0 %v5192_v24  ;;  %4160 = vmatprep.subr.mxu1 %v3219_v37  ;;  %6462 = vst [vmem:[#allocation21_spill] sm:$0xff] %v5214_v8  ;;  %v5232_v24 = vld [vmem:[%s4798_s26 + $0xf8] sm:$0xff] }
  0x7f   : > { %4121 = vmatmul.mubr.f32.gmra.mxu0 %v5199_v32  ;;  %4161 = vmatpush3.msra.mxu1 %v3219_v37  ;;  %v3266_v37 = vld [vmem:[%s6410_s1 + $0x230] sm:$0xff] }
  0x80   : > { %4240 = vmatprep.subr.mxu0 %v3267_v61  ;;  %4043 = vmatprep.mubr.f32.mxu1 %v5206_v5  ;;  %v5228_v32 = vld [vmem:[%s4798_s26 + $0xf0] sm:$0xff] }
  0x81   : > { %4241 = vmatpush3.msra.mxu0 %v3267_v61  ;;  %4044 = vmatmul.mubr.f32.gmra.mxu1 %v5210_v56  ;;  %v5236_v61 = vld [vmem:[%s4798_s26 + $0xf2] sm:$0xff] }
  0x82   : > { %4123 = vmatprep.mubr.f32.mxu0 %v5214_v8  ;;  %4162 = vmatprep.subr.mxu1 %v3218_v22  ;;  %6464 = vst [vmem:[#allocation23_spill] sm:$0xff] %v5236_v61  ;;  %v5254_v8 = vld [vmem:[%s4798_s26 + $0x110] sm:$0xff] }
  0x83   : > { %4124 = vmatmul.mubr.f32.gmra.mxu0 %v5221_v17  ;;  %4163 = vmatpush3.msra.mxu1 %v3218_v22  ;;  %v3265_v22 = vld [vmem:[%s6410_s1 + $0x228] sm:$0xff] }
  0x84   : > { %4242 = vmatprep.subr.mxu0 %v3266_v37  ;;  %4046 = vmatprep.mubr.f32.mxu1 %v5228_v32  ;;  %v5250_v17 = vld [vmem:[%s4798_s26 + $0x108] sm:$0xff] }
  0x85   : > { %4243 = vmatpush3.msra.mxu0 %v3266_v37  ;;  %4047 = vmatmul.mubr.f32.gmra.mxu1 %v5232_v24  ;;  %v5258_v37 = vld [vmem:[%s4798_s26 + $0x10a] sm:$0xff] }
  0x86   : > { %4126 = vmatprep.mubr.f32.mxu0 %v5236_v61  ;;  %4164 = vmatprep.subr.mxu1 %v3217_v14  ;;  %6466 = vst [vmem:[#allocation25_spill] sm:$0xff] %v5258_v37  ;;  %v5276_v61 = vld [vmem:[%s4798_s26 + $0x128] sm:$0xff] }
  0x87   : > { %4127 = vmatmul.mubr.f32.gmra.mxu0 %v5243_v6  ;;  %4165 = vmatpush3.msra.mxu1 %v3217_v14  ;;  %v3264_v14 = vld [vmem:[%s6410_s1 + $0x220] sm:$0xff] }
  0x88   : > { %4244 = vmatprep.subr.mxu0 %v3265_v22  ;;  %4049 = vmatprep.mubr.f32.mxu1 %v5250_v17  ;;  %v5272_v6 = vld [vmem:[%s4798_s26 + $0x120] sm:$0xff] }
  0x89   : > { %4245 = vmatpush3.msra.mxu0 %v3265_v22  ;;  %4050 = vmatmul.mubr.f32.gmra.mxu1 %v5254_v8  ;;  %v5280_v22 = vld [vmem:[%s4798_s26 + $0x122] sm:$0xff] }
  0x8a   : > { %4129 = vmatprep.mubr.f32.mxu0 %v5258_v37  ;;  %4166 = vmatprep.subr.mxu1 %v3216_v3  ;;  %6468 = vst [vmem:[#allocation27_spill] sm:$0xff] %v5280_v22  ;;  %v5298_v37 = vld [vmem:[%s4798_s26 + $0x140] sm:$0xff] }
  0x8b   : > { %4130 = vmatmul.mubr.f32.gmra.mxu0 %v5265_v59  ;;  %4167 = vmatpush3.msra.mxu1 %v3216_v3  ;;  %v3263_v3 = vld [vmem:[%s6410_s1 + $0x218] sm:$0xff] }
  0x8c   : > { %4246 = vmatprep.subr.mxu0 %v3264_v14  ;;  %4052 = vmatprep.mubr.f32.mxu1 %v5272_v6  ;;  %v5294_v59 = vld [vmem:[%s4798_s26 + $0x138] sm:$0xff] }
  0x8d   : > { %4247 = vmatpush3.msra.mxu0 %v3264_v14  ;;  %4053 = vmatmul.mubr.f32.gmra.mxu1 %v5276_v61  ;;  %v5302_v14 = vld [vmem:[%s4798_s26 + $0x13a] sm:$0xff] }
  0x8e   : > { %4132 = vmatprep.mubr.f32.mxu0 %v5280_v22  ;;  %4168 = vmatprep.subr.mxu1 %v3215_v54  ;;  %6470 = vst [vmem:[#allocation29_spill] sm:$0xff] %v5302_v14  ;;  %v5320_v22 = vld [vmem:[%s4798_s26 + $0x158] sm:$0xff] }
  0x8f   : > { %4133 = vmatmul.mubr.f32.gmra.mxu0 %v5287_v46  ;;  %4169 = vmatpush3.msra.mxu1 %v3215_v54  ;;  %v3262_v54 = vld [vmem:[%s6410_s1 + $0x210] sm:$0xff] }
  0x90   : > { %4248 = vmatprep.subr.mxu0 %v3263_v3  ;;  %4055 = vmatprep.mubr.f32.mxu1 %v5294_v59  ;;  %v5316_v46 = vld [vmem:[%s4798_s26 + $0x150] sm:$0xff] }
  0x91   : > { %4249 = vmatpush3.msra.mxu0 %v3263_v3  ;;  %4056 = vmatmul.mubr.f32.gmra.mxu1 %v5298_v37  ;;  %v5324_v3 = vld [vmem:[%s4798_s26 + $0x152] sm:$0xff] }
  0x92   : > { %4135 = vmatprep.mubr.f32.mxu0 %v5302_v14  ;;  %4170 = vmatprep.subr.mxu1 %v3214_v43  ;;  %6472 = vst [vmem:[#allocation31_spill] sm:$0xff] %v5324_v3  ;;  %v5342_v14 = vld [vmem:[%s4798_s26 + $0x170] sm:$0xff] }
  0x93   : > { %4136 = vmatmul.mubr.f32.gmra.mxu0 %v5309_v35  ;;  %4171 = vmatpush3.msra.mxu1 %v3214_v43  ;;  %v3261_v35 = vld [vmem:[%s6410_s1 + $0x208] sm:$0xff] }
  0x94   : > { %4250 = vmatprep.subr.mxu0 %v3262_v54  ;;  %4058 = vmatprep.mubr.f32.mxu1 %v5316_v46  ;;  %v5338_v43 = vld [vmem:[%s4798_s26 + $0x168] sm:$0xff] }
  0x95   : > { %4251 = vmatpush3.msra.mxu0 %v3262_v54  ;;  %4059 = vmatmul.mubr.f32.gmra.mxu1 %v5320_v22  ;;  %v3212_v54 = vld [vmem:[%s6410_s1 + $0x180] sm:$0xff] }
  0x96   : > { %4138 = vmatprep.mubr.f32.mxu0 %v5324_v3  ;;  %4172 = vmatprep.subr.mxu1 %v3213_v30  ;;  %v3260_v3 = vld [vmem:[%s6410_s1 + $0x200] sm:$0xff] }
  0x97   : > { %4139 = vmatmul.mubr.f32.gmra.mxu0 %v5331_v10  ;;  %4173 = vmatpush3.msra.mxu1 %v3213_v30  ;;  %v3323_v30 = vld [vmem:[%s6410_s1 + $0x2f8] sm:$0xff] }
  0x98   : > { %4252 = vmatprep.subr.mxu0 %v3261_v35  ;;  %4061 = vmatprep.mubr.f32.mxu1 %v5338_v43 }
  0x99   : > { %4253 = vmatpush3.msra.mxu0 %v3261_v35  ;;  %4062 = vmatmul.mubr.f32.gmra.mxu1 %v5342_v14  ;;  %v3371_v35 = vld [vmem:[%s6410_s1 + $0x378] sm:$0xff] }
  0x9a   : > { %4141 = vmatprep.mubr.f32.mxu0 %v5346_v7  ;;  %4174 = vmatprep.subr.mxu1 %v3212_v54 }
  0x9b   : > { %4142 = vmatmul.mubr.f32.gmra.mxu0 %v5353_v2  ;;  %4175 = vmatpush3.msra.mxu1 %v3212_v54  ;;  %v3322_v54 = vld [vmem:[%s6410_s1 + $0x2f0] sm:$0xff] }
  0x9c   : > { %4254 = vmatprep.subr.mxu0 %v3260_v3  ;;  %4176 = vmatprep.mubr.f32.mxu1 %v5032_v27  ;;  %v3370_v27 = vld [vmem:[%s6410_s1 + $0x370] sm:$0xff] }
  0x9d   : > { %4255 = vmatpush3.msra.mxu0 %v3260_v3  ;;  %4177 = vmatmul.mubr.f32.vlgmr.msra.gmra.mxu1 %v5035_v29  ;;  %v5510_v29 = vld [vmem:[%s4798_s26 + $0x180] sm:$0xff]  ;;  %v6474_v3 = vld [vmem:[#allocation3_spill] sm:$0xff] }
  0x9e   : > { %4256 = vmatprep.mubr.f32.mxu0 %v4829_v25  ;;  %4304 = vmatprep.subr.mxu1 %v3323_v30  ;;  %v3321_v25 = vld [vmem:[%s6410_s1 + $0x2e8] sm:$0xff] }
  0x9f   : > { %4257 = vmatmul.mubr.f32.vlgmr.msra.gmra.mxu0 %v4839_v28  ;;  %4305 = vmatpush3.msra.mxu1 %v3323_v30  ;;  %v3369_v28 = vld [vmem:[%s6410_s1 + $0x368] sm:$0xff] }
  0xa0   : > { %4384 = vmatprep.subr.mxu0 %v3371_v35  ;;  %4179 = vmatprep.mubr.f32.mxu1 %v5052_v38  ;;  %v5514_v30 = vld [vmem:[%s4798_s26 + $0x188] sm:$0xff] }
  0xa1   : > { %4385 = vmatpush3.msra.mxu0 %v3371_v35  ;;  %4180 = vmatmul.mubr.f32.gmra.mxu1 %v5056_v40  ;;  %v6475_v35 = vld [vmem:[#allocation4_spill] sm:$0xff] }
  0xa2   : > { %4259 = vmatprep.mubr.f32.mxu0 %v4857_v33  ;;  %4306 = vmatprep.subr.mxu1 %v3322_v54  ;;  %v3320_v33 = vld [vmem:[%s6410_s1 + $0x2e0] sm:$0xff] }
  0xa3   : > { %4260 = vmatmul.mubr.f32.gmra.mxu0 %v4867_v36  ;;  %4307 = vmatpush3.msra.mxu1 %v3322_v54  ;;  %v3368_v36 = vld [vmem:[%s6410_s1 + $0x360] sm:$0xff] }
  0xa4   : > { %4386 = vmatprep.subr.mxu0 %v3370_v27  ;;  %4182 = vmatprep.mubr.f32.mxu1 %v5074_v51  ;;  %v5518_v54 = vld [vmem:[%s4798_s26 + $0x181] sm:$0xff] }
  0xa5   : > { %4387 = vmatpush3.msra.mxu0 %v3370_v27  ;;  %4183 = vmatmul.mubr.f32.gmra.mxu1 %v5078_v53  ;;  %v3308_v27 = vld [vmem:[%s6410_s1 + $0x280] sm:$0xff] }
  0xa6   : > { %4262 = vmatprep.mubr.f32.mxu0 %v4885_v41  ;;  %4308 = vmatprep.subr.mxu1 %v3321_v25  ;;  %v3319_v41 = vld [vmem:[%s6410_s1 + $0x2d8] sm:$0xff] }
  0xa7   : > { %4263 = vmatmul.mubr.f32.gmra.mxu0 %v4895_v44  ;;  %4309 = vmatpush3.msra.mxu1 %v3321_v25  ;;  %v3367_v44 = vld [vmem:[%s6410_s1 + $0x358] sm:$0xff]  ;;  %v5525_v25 = vld [vmem:[%s4798_s26 + $0x189] sm:$0xff] }
  0xa8   : > { %4388 = vmatprep.subr.mxu0 %v3369_v28  ;;  %4185 = vmatprep.mubr.f32.mxu1 %v5096_v62 }
  0xa9   : > { %4389 = vmatpush3.msra.mxu0 %v3369_v28  ;;  %4186 = vmatmul.mubr.f32.gmra.mxu1 %v5100_v0  ;;  %v3356_v28 = vld [vmem:[%s6410_s1 + $0x300] sm:$0xff] }
  0xaa   : > { %4265 = vmatprep.mubr.f32.mxu0 %v4913_v49  ;;  %4310 = vmatprep.subr.mxu1 %v3320_v33  ;;  %v3318_v49 = vld [vmem:[%s6410_s1 + $0x2d0] sm:$0xff] }
  0xab   : > { %4266 = vmatmul.mubr.f32.gmra.mxu0 %v4923_v52  ;;  %4311 = vmatpush3.msra.mxu1 %v3320_v33  ;;  %v3366_v52 = vld [vmem:[%s6410_s1 + $0x350] sm:$0xff]  ;;  %v3419_v33 = vld [vmem:[%s6410_s1 + $0x3f8] sm:$0xff] }
  0xac   : > { %4390 = vmatprep.subr.mxu0 %v3368_v36  ;;  %4188 = vmatprep.mubr.f32.mxu1 %v5118_v11 }
  0xad   : > { %4391 = vmatpush3.msra.mxu0 %v3368_v36  ;;  %4189 = vmatmul.mubr.f32.gmra.mxu1 %v5122_v13  ;;  %v6476_v36 = vld [vmem:[#allocation5_spill] sm:$0xff] }
  0xae   : > { %4268 = vmatprep.mubr.f32.mxu0 %v4941_v57  ;;  %4312 = vmatprep.subr.mxu1 %v3319_v41  ;;  %v3317_v57 = vld [vmem:[%s6410_s1 + $0x2c8] sm:$0xff] }
  0xaf   : > { %4269 = vmatmul.mubr.f32.gmra.mxu0 %v4951_v60  ;;  %4313 = vmatpush3.msra.mxu1 %v3319_v41  ;;  %v3365_v60 = vld [vmem:[%s6410_s1 + $0x348] sm:$0xff]  ;;  %v6477_v41 = vld [vmem:[#allocation6_spill] sm:$0xff] }
  0xb0   : > { %4392 = vmatprep.subr.mxu0 %v3367_v44  ;;  %4191 = vmatprep.mubr.f32.mxu1 %v5140_v20 }
  0xb1   : > { %4393 = vmatpush3.msra.mxu0 %v3367_v44  ;;  %4192 = vmatmul.mubr.f32.gmra.mxu1 %v5144_v21  ;;  %v3467_v44 = vld [vmem:[%s6410_s1 + $0x478] sm:$0xff] }
  0xb2   : > { %4271 = vmatprep.mubr.f32.mxu0 %v4969_v1  ;;  %4314 = vmatprep.subr.mxu1 %v3318_v49  ;;  %v3316_v1 = vld [vmem:[%s6410_s1 + $0x2c0] sm:$0xff] }
  0xb3   : > { %4272 = vmatmul.mubr.f32.gmra.mxu0 %v4979_v4  ;;  %4315 = vmatpush3.msra.mxu1 %v3318_v49  ;;  %v3364_v4 = vld [vmem:[%s6410_s1 + $0x340] sm:$0xff]  ;;  %v3418_v49 = vld [vmem:[%s6410_s1 + $0x3f0] sm:$0xff] }
  0xb4   : > { %4394 = vmatprep.subr.mxu0 %v3366_v52  ;;  %4194 = vmatprep.mubr.f32.mxu1 %v5162_v45 }
  0xb5   : > { %4395 = vmatpush3.msra.mxu0 %v3366_v52  ;;  %4195 = vmatmul.mubr.f32.gmra.mxu1 %v5166_v48  ;;  %v6478_v52 = vld [vmem:[#allocation7_spill] sm:$0xff] }
  0xb6   : > { %4274 = vmatprep.mubr.f32.mxu0 %v4997_v9  ;;  %4316 = vmatprep.subr.mxu1 %v3317_v57  ;;  %v3315_v9 = vld [vmem:[%s6410_s1 + $0x2b8] sm:$0xff] }
  0xb7   : > { %4275 = vmatmul.mubr.f32.gmra.mxu0 %v5007_v12  ;;  %4317 = vmatpush3.msra.mxu1 %v3317_v57  ;;  %v3363_v12 = vld [vmem:[%s6410_s1 + $0x338] sm:$0xff]  ;;  %v6479_v57 = vld [vmem:[#allocation8_spill] sm:$0xff] }
  0xb8   : > { %4396 = vmatprep.subr.mxu0 %v3365_v60  ;;  %4197 = vmatprep.mubr.f32.mxu1 %v5184_v15 }
  0xb9   : > { %4397 = vmatpush3.msra.mxu0 %v3365_v60  ;;  %4198 = vmatmul.mubr.f32.gmra.mxu1 %v5188_v19  ;;  %v3466_v60 = vld [vmem:[%s6410_s1 + $0x470] sm:$0xff] }
  0xba   : > { %4277 = vmatprep.mubr.f32.mxu0 %v4804_v16  ;;  %4318 = vmatprep.subr.mxu1 %v3316_v1  ;;  %v3314_v16 = vld [vmem:[%s6410_s1 + $0x2b0] sm:$0xff] }
  0xbb   : > { %4278 = vmatmul.mubr.f32.gmra.mxu0 %v4808_v18  ;;  %4319 = vmatpush3.msra.mxu1 %v3316_v1  ;;  %v3362_v18 = vld [vmem:[%s6410_s1 + $0x330] sm:$0xff]  ;;  %v6481_v1 = vld [vmem:[#allocation10_spill] sm:$0xff] }
  0xbc   : > { %4398 = vmatprep.subr.mxu0 %v3364_v4  ;;  %4200 = vmatprep.mubr.f32.mxu1 %v5206_v5 }
  0xbd   : > { %4399 = vmatpush3.msra.mxu0 %v3364_v4  ;;  %4201 = vmatmul.mubr.f32.gmra.mxu1 %v5210_v56  ;;  %v3465_v4 = vld [vmem:[%s6410_s1 + $0x468] sm:$0xff] }
  0xbe   : > { %4280 = vmatprep.mubr.f32.mxu0 %v4823_v23  ;;  %4320 = vmatprep.subr.mxu1 %v3315_v9  ;;  %v3313_v23 = vld [vmem:[%s6410_s1 + $0x2a8] sm:$0xff] }
  0xbf   : > { %4281 = vmatmul.mubr.f32.gmra.mxu0 %v4832_v26  ;;  %4321 = vmatpush3.msra.mxu1 %v3315_v9  ;;  %v3361_v26 = vld [vmem:[%s6410_s1 + $0x328] sm:$0xff]  ;;  %v6483_v9 = vld [vmem:[#allocation12_spill] sm:$0xff] }
  0xc0   : > { %4400 = vmatprep.subr.mxu0 %v3363_v12  ;;  %4203 = vmatprep.mubr.f32.mxu1 %v5228_v32 }
  0xc1   : > { %4401 = vmatpush3.msra.mxu0 %v3363_v12  ;;  %4204 = vmatmul.mubr.f32.gmra.mxu1 %v5232_v24  ;;  %v3464_v12 = vld [vmem:[%s6410_s1 + $0x460] sm:$0xff] }
  0xc2   : > { %4283 = vmatprep.mubr.f32.mxu0 %v4850_v31  ;;  %4322 = vmatprep.subr.mxu1 %v3314_v16  ;;  %v3312_v31 = vld [vmem:[%s6410_s1 + $0x2a0] sm:$0xff] }
  0xc3   : > { %4284 = vmatmul.mubr.f32.gmra.mxu0 %v4860_v34  ;;  %4323 = vmatpush3.msra.mxu1 %v3314_v16  ;;  %v3360_v34 = vld [vmem:[%s6410_s1 + $0x320] sm:$0xff] }
  0xc4   : > { %4402 = vmatprep.subr.mxu0 %v3362_v18  ;;  %4206 = vmatprep.mubr.f32.mxu1 %v5250_v17  ;;  %v6485_v16 = vld [vmem:[#allocation14_spill] sm:$0xff] }
  0xc5   : > { %4403 = vmatpush3.msra.mxu0 %v3362_v18  ;;  %4207 = vmatmul.mubr.f32.gmra.mxu1 %v5254_v8  ;;  %v3463_v18 = vld [vmem:[%s6410_s1 + $0x458] sm:$0xff] }
  0xc6   : > { %4286 = vmatprep.mubr.f32.mxu0 %v4878_v39  ;;  %4324 = vmatprep.subr.mxu1 %v3313_v23  ;;  %v3311_v39 = vld [vmem:[%s6410_s1 + $0x298] sm:$0xff] }
  0xc7   : > { %4287 = vmatmul.mubr.f32.gmra.mxu0 %v4888_v42  ;;  %4325 = vmatpush3.msra.mxu1 %v3313_v23  ;;  %v3359_v42 = vld [vmem:[%s6410_s1 + $0x318] sm:$0xff] }
  0xc8   : > { %4404 = vmatprep.subr.mxu0 %v3361_v26  ;;  %4209 = vmatprep.mubr.f32.mxu1 %v5272_v6 }
  0xc9   : > { %4405 = vmatpush3.msra.mxu0 %v3361_v26  ;;  %4210 = vmatmul.mubr.f32.gmra.mxu1 %v5276_v61  ;;  %v6486_v26 = vld [vmem:[#allocation15_spill] sm:$0xff] }
  0xca   : > { %4289 = vmatprep.mubr.f32.mxu0 %v4906_v47  ;;  %4326 = vmatprep.subr.mxu1 %v3312_v31  ;;  %v3310_v47 = vld [vmem:[%s6410_s1 + $0x290] sm:$0xff] }
  0xcb   : > { %4290 = vmatmul.mubr.f32.gmra.mxu0 %v4916_v50  ;;  %4327 = vmatpush3.msra.mxu1 %v3312_v31  ;;  %v3358_v50 = vld [vmem:[%s6410_s1 + $0x310] sm:$0xff] }
  0xcc   : > { %4406 = vmatprep.subr.mxu0 %v3360_v34  ;;  %4212 = vmatprep.mubr.f32.mxu1 %v5294_v59 }
  0xcd   : > { %4407 = vmatpush3.msra.mxu0 %v3360_v34  ;;  %4213 = vmatmul.mubr.f32.gmra.mxu1 %v5298_v37  ;;  %v6487_v34 = vld [vmem:[#allocation16_spill] sm:$0xff] }
  0xce   : > { %4292 = vmatprep.mubr.f32.mxu0 %v4934_v55  ;;  %4328 = vmatprep.subr.mxu1 %v3311_v39  ;;  %v6473_v55 = vld [vmem:[#allocation2_spill] sm:$0xff] }
  0xcf   : > { %4293 = vmatmul.mubr.f32.gmra.mxu0 %v4944_v58  ;;  %4329 = vmatpush3.msra.mxu1 %v3311_v39  ;;  %v3309_v58 = vld [vmem:[%s6410_s1 + $0x288] sm:$0xff] }
  0xd0   : > { %4408 = vmatprep.subr.mxu0 %v3359_v42  ;;  %4215 = vmatprep.mubr.f32.mxu1 %v5316_v46  ;;  %v3413_v39 = vld [vmem:[%s6410_s1 + $0x3c8] sm:$0xff] }
  0xd1   : > { %4409 = vmatpush3.msra.mxu0 %v3359_v42  ;;  %4216 = vmatmul.mubr.f32.gmra.mxu1 %v5320_v22 }
  0xd2   : > { %4295 = vmatprep.mubr.f32.mxu0 %v4962_v63  ;;  %4330 = vmatprep.subr.mxu1 %v3310_v47  ;;  %v3357_v63 = vld [vmem:[%s6410_s1 + $0x308] sm:$0xff] }
  0xd3   : > { %4296 = vmatmul.mubr.f32.gmra.mxu0 %v6473_v55  ;;  %4331 = vmatpush3.msra.mxu1 %v3310_v47  ;;  %v6488_v47 = vld [vmem:[#allocation17_spill] sm:$0xff] }
  0xd4   : > { %4410 = vmatprep.subr.mxu0 %v3358_v50  ;;  %4218 = vmatprep.mubr.f32.mxu1 %v5338_v43 }
  0xd5   : > { %4411 = vmatpush3.msra.mxu0 %v3358_v50  ;;  %4219 = vmatmul.mubr.f32.gmra.mxu1 %v5342_v14  ;;  %v6489_v50 = vld [vmem:[#allocation18_spill] sm:$0xff] }
  0xd6   : > { %4298 = vmatprep.mubr.f32.mxu0 %v6474_v3  ;;  %4332 = vmatprep.subr.mxu1 %v3309_v58  ;;  %v6490_v3 = vld [vmem:[#allocation19_spill] sm:$0xff] }
  0xd7   : > { %4299 = vmatmul.mubr.f32.gmra.mxu0 %v6475_v35  ;;  %4333 = vmatpush3.msra.mxu1 %v3309_v58  ;;  %v3412_v58 = vld [vmem:[%s6410_s1 + $0x3c0] sm:$0xff]  ;;  %v6491_v35 = vld [vmem:[#allocation20_spill] sm:$0xff] }
  0xd8   : > { %4412 = vmatprep.subr.mxu0 %v3357_v63  ;;  %4221 = vmatprep.mubr.f32.mxu1 %v5510_v29 }
  0xd9   : > { %4413 = vmatpush3.msra.mxu0 %v3357_v63  ;;  %4222 = vmatmul.mubr.f32.gmra.mxu1 %v5514_v30 }
  0xda   : > { %4301 = vmatprep.mubr.f32.mxu0 %v5518_v54  ;;  %4334 = vmatprep.subr.mxu1 %v3308_v27 }
  0xdb   : > { %4302 = vmatmul.mubr.f32.gmra.mxu0 %v5525_v25  ;;  %4335 = vmatpush3.msra.mxu1 %v3308_v27 }
  0xdc   : > { %4414 = vmatprep.subr.mxu0 %v3356_v28  ;;  %4336 = vmatprep.mubr.f32.mxu1 %v6476_v36  ;;  %v6492_v36 = vld [vmem:[#allocation21_spill] sm:$0xff] }
  0xdd   : > { %4415 = vmatpush3.msra.mxu0 %v3356_v28  ;;  %4337 = vmatmul.mubr.f32.vlgmr.msra.gmra.mxu1 %v6477_v41  ;;  %v6493_v41 = vld [vmem:[#allocation22_spill] sm:$0xff] }
  0xde   : > { %4416 = vmatprep.mubr.f32.mxu0 %v5052_v38  ;;  %4464 = vmatprep.subr.mxu1 %v3419_v33  ;;  %v3417_v38 = vld [vmem:[%s6410_s1 + $0x3e8] sm:$0xff] }
  0xdf   : > { %4417 = vmatmul.mubr.f32.vlgmr.msra.gmra.mxu0 %v5056_v40  ;;  %4465 = vmatpush3.msra.mxu1 %v3419_v33  ;;  %v6480_v40 = vld [vmem:[#allocation9_spill] sm:$0xff] }
  0xe0   : > { %4544 = vmatprep.subr.mxu0 %v3467_v44  ;;  %4339 = vmatprep.mubr.f32.mxu1 %v6478_v52  ;;  %v6494_v52 = vld [vmem:[#allocation23_spill] sm:$0xff] }
  0xe1   : > { %4545 = vmatpush3.msra.mxu0 %v3467_v44  ;;  %4340 = vmatmul.mubr.f32.gmra.mxu1 %v6479_v57  ;;  %v3410_v44 = vld [vmem:[%s6410_s1 + $0x3b0] sm:$0xff] }
  0xe2   : > { %4419 = vmatprep.mubr.f32.mxu0 %v5074_v51  ;;  %4466 = vmatprep.subr.mxu1 %v3418_v49  ;;  %v3416_v51 = vld [vmem:[%s6410_s1 + $0x3e0] sm:$0xff]  ;;  %v6495_v57 = vld [vmem:[#allocation24_spill] sm:$0xff] }
  0xe3   : > { %4420 = vmatmul.mubr.f32.gmra.mxu0 %v5078_v53  ;;  %4467 = vmatpush3.msra.mxu1 %v3418_v49  ;;  %v6482_v53 = vld [vmem:[#allocation11_spill] sm:$0xff] }
  0xe4   : > { %4546 = vmatprep.subr.mxu0 %v3466_v60  ;;  %4342 = vmatprep.mubr.f32.mxu1 %v6480_v40 }
  0xe5   : > { %4547 = vmatpush3.msra.mxu0 %v3466_v60  ;;  %4343 = vmatmul.mubr.f32.gmra.mxu1 %v6481_v1  ;;  %v6496_v1 = vld [vmem:[#allocation25_spill] sm:$0xff] }
  0xe6   : > { %4422 = vmatprep.mubr.f32.mxu0 %v5096_v62  ;;  %4468 = vmatprep.subr.mxu1 %v3417_v38  ;;  %v3415_v62 = vld [vmem:[%s6410_s1 + $0x3d8] sm:$0xff] }
  0xe7   : > { %4423 = vmatmul.mubr.f32.gmra.mxu0 %v5100_v0  ;;  %4469 = vmatpush3.msra.mxu1 %v3417_v38  ;;  %v6484_v0 = vld [vmem:[#allocation13_spill] sm:$0xff]  ;;  %v3409_v38 = vld [vmem:[%s6410_s1 + $0x3a8] sm:$0xff] }
  0xe8   : > { %4548 = vmatprep.subr.mxu0 %v3465_v4  ;;  %4345 = vmatprep.mubr.f32.mxu1 %v6482_v53 }
  0xe9   : > { %4549 = vmatpush3.msra.mxu0 %v3465_v4  ;;  %4346 = vmatmul.mubr.f32.gmra.mxu1 %v6483_v9  ;;  %v6497_v4 = vld [vmem:[#allocation26_spill] sm:$0xff] }
  0xea   : > { %4425 = vmatprep.mubr.f32.mxu0 %v5118_v11  ;;  %4470 = vmatprep.subr.mxu1 %v3416_v51 }
  0xeb   : > { %4426 = vmatmul.mubr.f32.gmra.mxu0 %v5122_v13  ;;  %4471 = vmatpush3.msra.mxu1 %v3416_v51  ;;  %v3414_v13 = vld [vmem:[%s6410_s1 + $0x3d0] sm:$0xff] }
  0xec   : > { %4550 = vmatprep.subr.mxu0 %v3464_v12  ;;  %4348 = vmatprep.mubr.f32.mxu1 %v6484_v0  ;;  %v3407_v0 = vld [vmem:[%s6410_s1 + $0x398] sm:$0xff] }
  0xed   : > { %4551 = vmatpush3.msra.mxu0 %v3464_v12  ;;  %4349 = vmatmul.mubr.f32.gmra.mxu1 %v6485_v16  ;;  %v6498_v12 = vld [vmem:[#allocation27_spill] sm:$0xff] }
  0xee   : > { %4428 = vmatprep.mubr.f32.mxu0 %v5140_v20  ;;  %4472 = vmatprep.subr.mxu1 %v3415_v62  ;;  %v5582_v11 = vpop.f32.mrf.mxu1  ;;  %v3462_v20 = vld [vmem:[%s6410_s1 + $0x450] sm:$0xff] }
  0xef   : > { %4429 = vmatmul.mubr.f32.gmra.mxu0 %v5144_v21  ;;  %4473 = vmatpush3.msra.mxu1 %v3415_v62  ;;  %v5588_v23 = vpop.f32.mrf.mxu0  ;;  %v6499_v62 = vld [vmem:[#allocation28_spill] sm:$0xff] }
  0xf0   : > { %4552 = vmatprep.subr.mxu0 %v3463_v18  ;;  %4351 = vmatprep.mubr.f32.mxu1 %v6486_v26  ;;  %v5591_v31 = vpop.f32.mrf.mxu1 }
  0xf1   : > { %4553 = vmatpush3.msra.mxu0 %v3463_v18  ;;  %4352 = vmatmul.mubr.f32.gmra.mxu1 %v6487_v34  ;;  %v5597_v21 = vpop.f32.mrf.mxu0  ;;  %v6500_v18 = vld [vmem:[#allocation29_spill] sm:$0xff]  ;;  %v3406_v34 = vld [vmem:[%s6410_s1 + $0x390] sm:$0xff] }
  0xf2   : > { %4431 = vmatprep.mubr.f32.mxu0 %v5162_v45  ;;  %4474 = vmatprep.subr.mxu1 %v3414_v13  ;;  %v3461_v45 = vld [vmem:[%s6410_s1 + $0x448] sm:$0xff] }
  0xf3   : > { %4432 = vmatmul.mubr.f32.gmra.mxu0 %v5166_v48  ;;  %4475 = vmatpush3.msra.mxu1 %v3414_v13  ;;  %v5604_v42 = vpop.f32.mrf.mxu1  ;;  %v6501_v13 = vld [vmem:[#allocation30_spill] sm:$0xff] }
  0xf4   : > { %4554 = vmatprep.subr.mxu0 %v3462_v20  ;;  %4354 = vmatprep.mubr.f32.mxu1 %v6488_v47 }
  0xf5   : > { %4555 = vmatpush3.msra.mxu0 %v3462_v20  ;;  %4355 = vmatmul.mubr.f32.gmra.mxu1 %v6489_v50  ;;  %v5611_v55 = vpop.f32.mrf.mxu0  ;;  %v5613_v48 = vpop.f32.mrf.mxu1 }
  0xf6   : > { %4434 = vmatprep.mubr.f32.mxu0 %v5184_v15  ;;  %4476 = vmatprep.subr.mxu1 %v3413_v39  ;;  %v3460_v15 = vld [vmem:[%s6410_s1 + $0x440] sm:$0xff] }
  0xf7   : > { %4435 = vmatmul.mubr.f32.gmra.mxu0 %v5188_v19  ;;  %4477 = vmatpush3.msra.mxu1 %v3413_v39  ;;  %v5620_v63 = vpop.f32.mrf.mxu0  ;;  %v3411_v19 = vld [vmem:[%s6410_s1 + $0x3b8] sm:$0xff]  ;;  %v6502_v39 = vld [vmem:[#allocation31_spill] sm:$0xff] }
  0xf8   : > { %4556 = vmatprep.subr.mxu0 %v3461_v45  ;;  %4357 = vmatprep.mubr.f32.mxu1 %v6490_v3  ;;  %v3404_v3 = vld [vmem:[%s6410_s1 + $0x380] sm:$0xff] }
  0xf9   : > { %4557 = vmatpush3.msra.mxu0 %v3461_v45  ;;  %4358 = vmatmul.mubr.f32.gmra.mxu1 %v6491_v35  ;;  %v5627_v27 = vpop.f32.mrf.mxu1  ;;  %v5738_v45 = vld [vmem:[%s4798_s26 + $0x182] sm:$0xff] }
  0xfa   : > { %4437 = vmatprep.mubr.f32.mxu0 %v5206_v5  ;;  %4478 = vmatprep.subr.mxu1 %v3412_v58  ;;  %v3459_v5 = vld [vmem:[%s6410_s1 + $0x438] sm:$0xff] }
  0xfb   : > { %4438 = vmatmul.mubr.f32.gmra.mxu0 %v5210_v56  ;;  %4479 = vmatpush3.msra.mxu1 %v3412_v58  ;;  %v5634_v28 = vpop.f32.mrf.mxu0  ;;  %v5636_v33 = vpop.f32.mrf.mxu1  ;;  %v5742_v58 = vld [vmem:[%s4798_s26 + $0x18a] sm:$0xff] }
  0xfc   : > { %4558 = vmatprep.subr.mxu0 %v3460_v15  ;;  %4360 = vmatprep.mubr.f32.mxu1 %v6492_v36  ;;  %v3373_v36 = vld [vmem:[%s4798_s26 + $0x39] sm:$0xff] }
  0xfd   : > { %4559 = vmatpush3.msra.mxu0 %v3460_v15  ;;  %4361 = vmatmul.mubr.f32.gmra.mxu1 %v6493_v41  ;;  %v5643_v56 = vpop.f32.mrf.mxu0  ;;  %v3452_v15 = vld [vmem:[%s6410_s1 + $0x400] sm:$0xff] }
  0xfe   : > { %4440 = vmatprep.mubr.f32.mxu0 %v5228_v32  ;;  %4480 = vmatprep.subr.mxu1 %v3411_v19  ;;  %v3458_v32 = vld [vmem:[%s6410_s1 + $0x430] sm:$0xff] }
  0xff   : > { %4441 = vmatmul.mubr.f32.gmra.mxu0 %v5232_v24  ;;  %4481 = vmatpush3.msra.mxu1 %v3411_v19  ;;  %v5650_v49 = vpop.f32.mrf.mxu1  ;;  %v3372_v19 = vld [vmem:[%s4798_s26 + $0x31] sm:$0xff] }
 0x100   : > { %4560 = vmatprep.subr.mxu0 %v3459_v5  ;;  %4363 = vmatprep.mubr.f32.mxu1 %v6494_v52  ;;  %v3421_v52 = vld [vmem:[%s4798_s26 + $0x3a] sm:$0xff] }
 0x101   : > { %4561 = vmatpush3.msra.mxu0 %v3459_v5  ;;  %4364 = vmatmul.mubr.f32.gmra.mxu1 %v6495_v57  ;;  %v5657_v60 = vpop.f32.mrf.mxu0  ;;  %v5659_v24 = vpop.f32.mrf.mxu1  ;;  %v3420_v5 = vld [vmem:[%s4798_s26 + $0x32] sm:$0xff] }
 0x102   : > { %4443 = vmatprep.mubr.f32.mxu0 %v5250_v17  ;;  %4482 = vmatprep.subr.mxu1 %v3410_v44  ;;  %v3457_v17 = vld [vmem:[%s6410_s1 + $0x428] sm:$0xff] }
 0x103   : > { %4444 = vmatmul.mubr.f32.gmra.mxu0 %v5254_v8  ;;  %4483 = vmatpush3.msra.mxu1 %v3410_v44  ;;  %v5666_v40 = vpop.f32.mrf.mxu0  ;;  %v3408_v8 = vld [vmem:[%s6410_s1 + $0x3a0] sm:$0xff]  ;;  %v3374_v44 = vld [vmem:[%s4798_s26 + $0x49] sm:$0xff] }
 0x104   : > { %4562 = vmatprep.subr.mxu0 %v3458_v32  ;;  %4366 = vmatprep.mubr.f32.mxu1 %v6496_v1  ;;  %v3375_v1 = vld [vmem:[%s4798_s26 + $0x51] sm:$0xff] }
 0x105   : > { %4563 = vmatpush3.msra.mxu0 %v3458_v32  ;;  %4367 = vmatmul.mubr.f32.gmra.mxu1 %v6497_v4  ;;  %v5673_v51 = vpop.f32.mrf.mxu1  ;;  %v3422_v32 = vld [vmem:[%s4798_s26 + $0x4a] sm:$0xff] }
 0x106   : > { %4446 = vmatprep.mubr.f32.mxu0 %v5272_v6  ;;  %4484 = vmatprep.subr.mxu1 %v3409_v38  ;;  %v3456_v6 = vld [vmem:[%s6410_s1 + $0x420] sm:$0xff] }
 0x107   : > { %4447 = vmatmul.mubr.f32.gmra.mxu0 %v5276_v61  ;;  %4485 = vmatpush3.msra.mxu1 %v3409_v38  ;;  %v5680_v53 = vpop.f32.mrf.mxu0  ;;  %v5682_v9 = vpop.f32.mrf.mxu1 }
 0x108   : > { %4564 = vmatprep.subr.mxu0 %v3457_v17  ;;  %4369 = vmatprep.mubr.f32.mxu1 %v6498_v12 }
 0x109   : > { %4565 = vmatpush3.msra.mxu0 %v3457_v17  ;;  %4370 = vmatmul.mubr.f32.gmra.mxu1 %v6499_v62  ;;  %v5689_v61 = vpop.f32.mrf.mxu0 }
 0x10a   : > { %4449 = vmatprep.mubr.f32.mxu0 %v5294_v59  ;;  %4486 = vmatprep.subr.mxu1 %v3408_v8  ;;  %v3455_v59 = vld [vmem:[%s6410_s1 + $0x418] sm:$0xff] }
 0x10b   : > { %4450 = vmatmul.mubr.f32.gmra.mxu0 %v5298_v37  ;;  %4487 = vmatpush3.msra.mxu1 %v3408_v8  ;;  %v5696_v16 = vpop.f32.mrf.mxu1  ;;  %v3376_v8 = vld [vmem:[%s4798_s26 + $0x61] sm:$0xff] }
 0x10c   : > { %4566 = vmatprep.subr.mxu0 %v3456_v6  ;;  %4372 = vmatprep.mubr.f32.mxu1 %v6500_v18 }
 0x10d   : > { %4567 = vmatpush3.msra.mxu0 %v3456_v6  ;;  %4373 = vmatmul.mubr.f32.gmra.mxu1 %v6501_v13  ;;  %v5703_v26 = vpop.f32.mrf.mxu0  ;;  %v5705_v37 = vpop.f32.mrf.mxu1  ;;  %v3423_v6 = vld [vmem:[%s4798_s26 + $0x52] sm:$0xff] }
 0x10e   : > { %4452 = vmatprep.mubr.f32.mxu0 %v5316_v46  ;;  %4488 = vmatprep.subr.mxu1 %v3407_v0  ;;  %v3454_v46 = vld [vmem:[%s6410_s1 + $0x410] sm:$0xff] }
 0x10f   : > { %4453 = vmatmul.mubr.f32.gmra.mxu0 %v5320_v22  ;;  %4489 = vmatpush3.msra.mxu1 %v3407_v0  ;;  %v5712_v20 = vpop.f32.mrf.mxu0  ;;  %v3405_v22 = vld [vmem:[%s6410_s1 + $0x388] sm:$0xff] }
 0x110   : > { %4568 = vmatprep.subr.mxu0 %v3455_v59  ;;  %4375 = vmatprep.mubr.f32.mxu1 %v6502_v39 }
 0x111   : > { %4569 = vmatpush3.msra.mxu0 %v3455_v59  ;;  %4376 = vmatmul.mubr.f32.gmra.mxu1 %v5331_v10  ;;  %v5719_v47 = vpop.f32.mrf.mxu1 }
 0x112   : > { %4455 = vmatprep.mubr.f32.mxu0 %v5338_v43  ;;  %4490 = vmatprep.subr.mxu1 %v3406_v34 }
 0x113   : > { %4456 = vmatmul.mubr.f32.gmra.mxu0 %v5342_v14  ;;  %4491 = vmatpush3.msra.mxu1 %v3406_v34  ;;  %v5726_v10 = vpop.f32.mrf.mxu0  ;;  %v5728_v50 = vpop.f32.mrf.mxu1  ;;  %v3453_v14 = vld [vmem:[%s6410_s1 + $0x408] sm:$0xff] }
 0x114   : > { %4570 = vmatprep.subr.mxu0 %v3454_v46  ;;  %4378 = vmatprep.mubr.f32.mxu1 %v5346_v7  ;;  %v3377_v34 = vld [vmem:[%s4798_s26 + $0x69] sm:$0xff] }
 0x115   : > { %4571 = vmatpush3.msra.mxu0 %v3454_v46  ;;  %4379 = vmatmul.mubr.f32.gmra.mxu1 %v5353_v2  ;;  %v5735_v43 = vpop.f32.mrf.mxu0  ;;  %v3354_v2 = vld [vmem:[%s4798_s26 + $0x198] sm:$0xff] }
 0x116   : > { %4458 = vmatprep.mubr.f32.mxu0 %v5510_v29  ;;  %4492 = vmatprep.subr.mxu1 %v3405_v22  ;;  %v3355_v29 = vld [vmem:[%s4798_s26 + $0x1a0] sm:$0xff] }
 0x117   : > { %4459 = vmatmul.mubr.f32.gmra.mxu0 %v5514_v30  ;;  %4493 = vmatpush3.msra.mxu1 %v3405_v22  ;;  %v5745_v7 = vpop.f32.mrf.mxu1  ;;  %v3378_v22 = vld [vmem:[%s4798_s26 + $0x79] sm:$0xff] }
 0x118   : > { %4572 = vmatprep.subr.mxu0 %v3453_v14  ;;  %4381 = vmatprep.mubr.f32.mxu1 %v5738_v45 }
 0x119   : > { %4573 = vmatpush3.msra.mxu0 %v3453_v14  ;;  %4382 = vmatmul.mubr.f32.gmra.mxu1 %v5742_v58  ;;  %v5754_v30 = vpop.f32.mrf.mxu0  ;;  %v5756_v35 = vpop.f32.mrf.mxu1 }
 0x11a   : > { %4461 = vmatprep.mubr.f32.mxu0 %v3354_v2  ;;  %4494 = vmatprep.subr.mxu1 %v3404_v3  ;;  %v3425_v2 = vld [vmem:[%s4798_s26 + $0x6a] sm:$0xff] }
 0x11b   : > { %4462 = vmatmul.mubr.f32.gmra.mxu0 %v3355_v29  ;;  %4495 = vmatpush3.msra.mxu1 %v3404_v3  ;;  %v5763_v41 = vpop.f32.mrf.mxu0 }
 0x11c   : > { %4574 = vmatprep.subr.mxu0 %v3452_v15  ;;  %4496 = vmatprep.mubr.f32.mxu1 %v3372_v19 }
 0x11d   : > { %4575 = vmatpush3.msra.mxu0 %v3452_v15  ;;  %v4018_v57 = vpop.f32.mrf.mxu1  ;;  %4497 = vmatmul.mubr.f32.vlgmr.msra.gmra.mxu1 %v3373_v36  ;;  %v3426_v15 = vld [vmem:[%s4798_s26 + $0x7a] sm:$0xff] }
 0x11e   : > { %v633_v38 = vadd.f32 %v4018_v57, %v5588_v23  ;;  %4576 = vmatprep.mubr.f32.mxu0 %v3420_v5  ;;  %4499 = vmatprep.mubr.f32.mxu1 %v3374_v44  ;;  %v3424_v23 = vld [vmem:[%s4798_s26 + $0x62] sm:$0xff] }
 0x11f   : > { %v4098_v4 = vpop.f32.mrf.mxu0  ;;  %4577 = vmatmul.mubr.f32.vlgmr.msra.gmra.mxu0 %v3421_v52  ;;  %v627_v17 = vpop.f32.mrf.mxu1  ;;  %v3379_v36 = vld [vmem:[%s4798_s26 + $0x81] sm:$0xff]  ;;  %v3380_v52 = vld [vmem:[%s4798_s26 + $0x91] sm:$0xff] }
 0x120   : > { %v5772_v12 = vadd.f32 %v4098_v4, %v633_v38  ;;  %v628_v62 = vadd.f32 %v627_v17, %v5597_v21  ;;  %4579 = vmatprep.mubr.f32.mxu0 %v3422_v32  ;;  %v3427_v32 = vld [vmem:[%s4798_s26 + $0x82] sm:$0xff]  ;;  %v3428_v4 = vld [vmem:[%s4798_s26 + $0x92] sm:$0xff] }
 0x121   : > { %v901_v0 = vpop.f32.mrf.mxu0  ;;  %v4021_v18 = vpop.f32.mrf.mxu1  ;;  %4500 = vmatmul.mubr.f32.gmra.mxu1 %v3375_v1 }
 0x122   : > { %v5777_v13 = vadd.f32 %v901_v0, %v628_v62  ;;  %v643_v59 = vadd.f32 %v4021_v18, %v5611_v55  ;;  %4502 = vmatprep.mubr.f32.mxu1 %v3376_v8  ;;  %v3381_v8 = vld [vmem:[%s4798_s26 + $0x99] sm:$0xff]  ;;  %v3382_v0 = vld [vmem:[%s4798_s26 + $0xa9] sm:$0xff] }
 0x123   : > { %v4101_v39 = vpop.f32.mrf.mxu0  ;;  %4580 = vmatmul.mubr.f32.gmra.mxu0 %v3423_v6  ;;  %v637_v46 = vpop.f32.mrf.mxu1 }
 0x124   : > { %v5782_v21 = vadd.f32 %v4101_v39, %v643_v59  ;;  %v638_v14 = vadd.f32 %v637_v46, %v5620_v63  ;;  %4582 = vmatprep.mubr.f32.mxu0 %v3424_v23  ;;  %v3429_v23 = vld [vmem:[%s4798_s26 + $0x9a] sm:$0xff]  ;;  %v3430_v39 = vld [vmem:[%s4798_s26 + $0xaa] sm:$0xff] }
 0x125   : > { %v911_v3 = vpop.f32.mrf.mxu0  ;;  %v4024_v29 = vpop.f32.mrf.mxu1  ;;  %4503 = vmatmul.mubr.f32.gmra.mxu1 %v3377_v34 }
 0x126   : > { %v5787_v55 = vadd.f32 %v911_v3, %v638_v14  ;;  %v653_v19 = vadd.f32 %v4024_v29, %v5634_v28  ;;  %4505 = vmatprep.mubr.f32.mxu1 %v3378_v22  ;;  %v3383_v22 = vld [vmem:[%s4798_s26 + $0xb1] sm:$0xff]  ;;  %v3384_v3 = vld [vmem:[%s4798_s26 + $0xc1] sm:$0xff] }
 0x127   : > { %v4104_v5 = vpop.f32.mrf.mxu0  ;;  %4583 = vmatmul.mubr.f32.gmra.mxu0 %v3425_v2  ;;  %v647_v44 = vpop.f32.mrf.mxu1 }
 0x128   : > { %v5792_v63 = vadd.f32 %v4104_v5, %v653_v19  ;;  %v648_v57 = vadd.f32 %v647_v44, %v5643_v56  ;;  %4585 = vmatprep.mubr.f32.mxu0 %v3426_v15  ;;  %v3431_v15 = vld [vmem:[%s4798_s26 + $0xb2] sm:$0xff]  ;;  %v3432_v5 = vld [vmem:[%s4798_s26 + $0xc2] sm:$0xff] }
 0x129   : > { %v921_v38 = vpop.f32.mrf.mxu0  ;;  %v4027_v1 = vpop.f32.mrf.mxu1  ;;  %4506 = vmatmul.mubr.f32.gmra.mxu1 %v3379_v36 }
 0x12a   : > { %v5797_v28 = vadd.f32 %v921_v38, %v648_v57  ;;  %v663_v17 = vadd.f32 %v4027_v1, %v5657_v60  ;;  %4508 = vmatprep.mubr.f32.mxu1 %v3380_v52  ;;  %v3385_v52 = vld [vmem:[%s4798_s26 + $0xc9] sm:$0xff]  ;;  %v3386_v38 = vld [vmem:[%s4798_s26 + $0xd9] sm:$0xff] }
 0x12b   : > { %v4107_v62 = vpop.f32.mrf.mxu0  ;;  %4586 = vmatmul.mubr.f32.gmra.mxu0 %v3427_v32  ;;  %v657_v6 = vpop.f32.mrf.mxu1 }
 0x12c   : > { %v5802_v56 = vadd.f32 %v4107_v62, %v663_v17  ;;  %v658_v18 = vadd.f32 %v657_v6, %v5666_v40  ;;  %4588 = vmatprep.mubr.f32.mxu0 %v3428_v4  ;;  %v3433_v4 = vld [vmem:[%s4798_s26 + $0xca] sm:$0xff]  ;;  %v3434_v62 = vld [vmem:[%s4798_s26 + $0xda] sm:$0xff] }
 0x12d   : > { %v931_v59 = vpop.f32.mrf.mxu0  ;;  %v4030_v34 = vpop.f32.mrf.mxu1  ;;  %4509 = vmatmul.mubr.f32.gmra.mxu1 %v3381_v8 }
 0x12e   : > { %v5807_v60 = vadd.f32 %v931_v59, %v658_v18  ;;  %v673_v46 = vadd.f32 %v4030_v34, %v5680_v53  ;;  %4511 = vmatprep.mubr.f32.mxu1 %v3382_v0  ;;  %v3387_v0 = vld [vmem:[%s4798_s26 + $0xe1] sm:$0xff]  ;;  %v3388_v59 = vld [vmem:[%s4798_s26 + $0xf1] sm:$0xff] }
 0x12f   : > { %v4110_v14 = vpop.f32.mrf.mxu0  ;;  %4589 = vmatmul.mubr.f32.gmra.mxu0 %v3429_v23  ;;  %v667_v2 = vpop.f32.mrf.mxu1 }
 0x130   : > { %v5812_v40 = vadd.f32 %v4110_v14, %v673_v46  ;;  %v668_v29 = vadd.f32 %v667_v2, %v5689_v61  ;;  %4591 = vmatprep.mubr.f32.mxu0 %v3430_v39  ;;  %v3435_v39 = vld [vmem:[%s4798_s26 + $0xe2] sm:$0xff]  ;;  %v3436_v14 = vld [vmem:[%s4798_s26 + $0xf2] sm:$0xff] }
 0x131   : > { %v941_v19 = vpop.f32.mrf.mxu0  ;;  %v4033_v36 = vpop.f32.mrf.mxu1  ;;  %4512 = vmatmul.mubr.f32.gmra.mxu1 %v3383_v22 }
 0x132   : > { %v5817_v53 = vadd.f32 %v941_v19, %v668_v29  ;;  %v683_v44 = vadd.f32 %v4033_v36, %v5703_v26  ;;  %4514 = vmatprep.mubr.f32.mxu1 %v3384_v3  ;;  %v3389_v3 = vld [vmem:[%s4798_s26 + $0xf9] sm:$0xff]  ;;  %v3390_v19 = vld [vmem:[%s4798_s26 + $0x109] sm:$0xff] }
 0x133   : > { %v4113_v57 = vpop.f32.mrf.mxu0  ;;  %4592 = vmatmul.mubr.f32.gmra.mxu0 %v3431_v15  ;;  %v677_v32 = vpop.f32.mrf.mxu1 }
 0x134   : > { %v5822_v61 = vadd.f32 %v4113_v57, %v683_v44  ;;  %v678_v1 = vadd.f32 %v677_v32, %v5712_v20  ;;  %4594 = vmatprep.mubr.f32.mxu0 %v3432_v5  ;;  %v3437_v5 = vld [vmem:[%s4798_s26 + $0xfa] sm:$0xff]  ;;  %v3438_v57 = vld [vmem:[%s4798_s26 + $0x10a] sm:$0xff] }
 0x135   : > { %v951_v17 = vpop.f32.mrf.mxu0  ;;  %v4036_v8 = vpop.f32.mrf.mxu1  ;;  %4515 = vmatmul.mubr.f32.gmra.mxu1 %v3385_v52 }
 0x136   : > { %v5827_v26 = vadd.f32 %v951_v17, %v678_v1  ;;  %v693_v6 = vadd.f32 %v4036_v8, %v5726_v10  ;;  %4517 = vmatprep.mubr.f32.mxu1 %v3386_v38  ;;  %v3391_v38 = vld [vmem:[%s4798_s26 + $0x111] sm:$0xff]  ;;  %v3392_v17 = vld [vmem:[%s4798_s26 + $0x121] sm:$0xff] }
 0x137   : > { %v4116_v18 = vpop.f32.mrf.mxu0  ;;  %4595 = vmatmul.mubr.f32.gmra.mxu0 %v3433_v4  ;;  %v687_v23 = vpop.f32.mrf.mxu1 }
 0x138   : > { %v5832_v20 = vadd.f32 %v4116_v18, %v693_v6  ;;  %v688_v34 = vadd.f32 %v687_v23, %v5735_v43  ;;  %4597 = vmatprep.mubr.f32.mxu0 %v3434_v62  ;;  %v3439_v62 = vld [vmem:[%s4798_s26 + $0x112] sm:$0xff]  ;;  %v3440_v18 = vld [vmem:[%s4798_s26 + $0x122] sm:$0xff] }
 0x139   : > { %v961_v46 = vpop.f32.mrf.mxu0  ;;  %v4039_v22 = vpop.f32.mrf.mxu1  ;;  %4518 = vmatmul.mubr.f32.gmra.mxu1 %v3387_v0 }
 0x13a   : > { %v5837_v10 = vadd.f32 %v961_v46, %v688_v34  ;;  %v703_v2 = vadd.f32 %v4039_v22, %v5754_v30  ;;  %4520 = vmatprep.mubr.f32.mxu1 %v3388_v59  ;;  %v3393_v59 = vld [vmem:[%s4798_s26 + $0x129] sm:$0xff]  ;;  %v3394_v46 = vld [vmem:[%s4798_s26 + $0x139] sm:$0xff] }
 0x13b   : > { %v4119_v29 = vpop.f32.mrf.mxu0  ;;  %4598 = vmatmul.mubr.f32.gmra.mxu0 %v3435_v39  ;;  %v697_v15 = vpop.f32.mrf.mxu1 }
 0x13c   : > { %v5842_v43 = vadd.f32 %v4119_v29, %v703_v2  ;;  %v698_v36 = vadd.f32 %v697_v15, %v5763_v41  ;;  %4600 = vmatprep.mubr.f32.mxu0 %v3436_v14  ;;  %v3441_v14 = vld [vmem:[%s4798_s26 + $0x12a] sm:$0xff]  ;;  %v3442_v29 = vld [vmem:[%s4798_s26 + $0x13a] sm:$0xff] }
 0x13d   : > { %v971_v44 = vpop.f32.mrf.mxu0  ;;  %v4042_v52 = vpop.f32.mrf.mxu1  ;;  %4521 = vmatmul.mubr.f32.gmra.mxu1 %v3389_v3 }
 0x13e   : > { %v5847_v30 = vadd.f32 %v971_v44, %v698_v36  ;;  %v713_v32 = vadd.f32 %v4042_v52, %v5582_v11  ;;  %4523 = vmatprep.mubr.f32.mxu1 %v3390_v19  ;;  %v3395_v19 = vld [vmem:[%s4798_s26 + $0x141] sm:$0xff]  ;;  %v3396_v44 = vld [vmem:[%s4798_s26 + $0x151] sm:$0xff] }
 0x13f   : > { %v4122_v1 = vpop.f32.mrf.mxu0  ;;  %4601 = vmatmul.mubr.f32.gmra.mxu0 %v3437_v5  ;;  %v707_v4 = vpop.f32.mrf.mxu1 }
 0x140   : > { %v5852_v41 = vadd.f32 %v4122_v1, %v713_v32  ;;  %v708_v8 = vadd.f32 %v707_v4, %v5591_v31  ;;  %4603 = vmatprep.mubr.f32.mxu0 %v3438_v57  ;;  %v3443_v57 = vld [vmem:[%s4798_s26 + $0x142] sm:$0xff]  ;;  %v3444_v1 = vld [vmem:[%s4798_s26 + $0x152] sm:$0xff] }
 0x141   : > { %v981_v6 = vpop.f32.mrf.mxu0  ;;  %v4045_v0 = vpop.f32.mrf.mxu1  ;;  %4524 = vmatmul.mubr.f32.gmra.mxu1 %v3391_v38 }
 0x142   : > { %v5857_v11 = vadd.f32 %v981_v6, %v708_v8  ;;  %v723_v23 = vadd.f32 %v4045_v0, %v5604_v42  ;;  %4526 = vmatprep.mubr.f32.mxu1 %v3392_v17  ;;  %v3397_v17 = vld [vmem:[%s4798_s26 + $0x159] sm:$0xff]  ;;  %v3398_v6 = vld [vmem:[%s4798_s26 + $0x169] sm:$0xff] }
 0x143   : > { %v4125_v34 = vpop.f32.mrf.mxu0  ;;  %4604 = vmatmul.mubr.f32.gmra.mxu0 %v3439_v62  ;;  %v717_v39 = vpop.f32.mrf.mxu1 }
 0x144   : > { %v5862_v31 = vadd.f32 %v4125_v34, %v723_v23  ;;  %v718_v22 = vadd.f32 %v717_v39, %v5613_v48  ;;  %4606 = vmatprep.mubr.f32.mxu0 %v3440_v18  ;;  %v3445_v18 = vld [vmem:[%s4798_s26 + $0x15a] sm:$0xff]  ;;  %v3446_v34 = vld [vmem:[%s4798_s26 + $0x16a] sm:$0xff] }
 0x145   : > { %v991_v2 = vpop.f32.mrf.mxu0  ;;  %v4048_v3 = vpop.f32.mrf.mxu1  ;;  %4527 = vmatmul.mubr.f32.gmra.mxu1 %v3393_v59 }
 0x146   : > { %v5867_v42 = vadd.f32 %v991_v2, %v718_v22  ;;  %v733_v15 = vadd.f32 %v4048_v3, %v5627_v27  ;;  %4529 = vmatprep.mubr.f32.mxu1 %v3394_v46  ;;  %v3399_v46 = vld [vmem:[%s4798_s26 + $0x171] sm:$0xff] }
 0x147   : > { %v4128_v36 = vpop.f32.mrf.mxu0  ;;  %4607 = vmatmul.mubr.f32.gmra.mxu0 %v3441_v14  ;;  %v727_v5 = vpop.f32.mrf.mxu1  ;;  %v3447_v3 = vld [vmem:[%s4798_s26 + $0x172] sm:$0xff] }
 0x148   : > { %v5872_v48 = vadd.f32 %v4128_v36, %v733_v15  ;;  %v728_v52 = vadd.f32 %v727_v5, %v5636_v33  ;;  %4609 = vmatprep.mubr.f32.mxu0 %v3442_v29 }
 0x149   : > { %v1001_v32 = vpop.f32.mrf.mxu0  ;;  %v4051_v38 = vpop.f32.mrf.mxu1  ;;  %4530 = vmatmul.mubr.f32.gmra.mxu1 %v3395_v19 }
 0x14a   : > { %v5877_v27 = vadd.f32 %v1001_v32, %v728_v52  ;;  %v743_v4 = vadd.f32 %v4051_v38, %v5650_v49  ;;  %4532 = vmatprep.mubr.f32.mxu1 %v3396_v44  ;;  %v3402_v44 = vld [vmem:[%s4798_s26 + $0x199] sm:$0xff] }
 0x14b   : > { %v4131_v8 = vpop.f32.mrf.mxu0  ;;  %4610 = vmatmul.mubr.f32.gmra.mxu0 %v3443_v57  ;;  %v737_v62 = vpop.f32.mrf.mxu1  ;;  %v3450_v38 = vld [vmem:[%s4798_s26 + $0x19a] sm:$0xff] }
 0x14c   : > { %v5882_v33 = vadd.f32 %v4131_v8, %v743_v4  ;;  %v738_v0 = vadd.f32 %v737_v62, %v5659_v24  ;;  %4612 = vmatprep.mubr.f32.mxu0 %v3444_v1  ;;  %v3403_v1 = vld [vmem:[%s4798_s26 + $0x1a1] sm:$0xff] }
 0x14d   : > { %v1011_v23 = vpop.f32.mrf.mxu0  ;;  %v4054_v59 = vpop.f32.mrf.mxu1  ;;  %4533 = vmatmul.mubr.f32.gmra.mxu1 %v3397_v17 }
 0x14e   : > { %v5887_v39 = vadd.f32 %v1011_v23, %v738_v0  ;;  %v753_v49 = vadd.f32 %v4054_v59, %v5673_v51  ;;  %4535 = vmatprep.mubr.f32.mxu1 %v3398_v6 }
 0x14f   : > { %v4134_v22 = vpop.f32.mrf.mxu0  ;;  %4613 = vmatmul.mubr.f32.gmra.mxu0 %v3445_v18  ;;  %v747_v14 = vpop.f32.mrf.mxu1 }
 0x150   : > { %v5891_v2 = vadd.f32 %v4134_v22, %v753_v49  ;;  %v748_v24 = vadd.f32 %v747_v14, %v5682_v9  ;;  %4615 = vmatprep.mubr.f32.mxu0 %v3446_v34 }
 0x151   : > { %v1021_v29 = vpop.f32.mrf.mxu0  ;;  %v4057_v15 = vpop.f32.mrf.mxu1  ;;  %4536 = vmatmul.mubr.f32.gmra.mxu1 %v3399_v46 }
 0x152   : > { %v5895_v19 = vadd.f32 %v1021_v29, %v748_v24  ;;  %v763_v51 = vadd.f32 %v4057_v15, %v5696_v16  ;;  %4538 = vmatprep.mubr.f32.mxu1 %v5518_v54 }
 0x153   : > { %v4137_v36 = vpop.f32.mrf.mxu0  ;;  %4616 = vmatmul.mubr.f32.gmra.mxu0 %v3447_v3  ;;  %v757_v5 = vpop.f32.mrf.mxu1 }
 0x154   : > { %v5900_v52 = vadd.f32 %v4137_v36, %v763_v51  ;;  %v758_v9 = vadd.f32 %v757_v5, %v5705_v37  ;;  %4618 = vmatprep.mubr.f32.mxu0 %v5738_v45  ;;  %v3451_v45 = vld [vmem:[%s4798_s26 + $0x1a2] sm:$0xff]  ;;  %s3470_s26 = sshll.u32 %s6648_s12, 8 }
 0x155   : > { %v1031_v57 = vpop.f32.mrf.mxu0  ;;  %v4060_v32 = vpop.f32.mrf.mxu1  ;;  %4539 = vmatmul.mubr.f32.gmra.mxu1 %v5525_v25  ;;  %s6149_s22 = scalar_lea.vmem %s6411_s2, %s3470_s26  ;;  %s6248_s25 = scalar_lea.vmem %s6412_s3, %s3470_s26 }
 0x156   : > { %v5906_v16 = vadd.f32 %v1031_v57, %v758_v9  ;;  %v773_v54 = vadd.f32 %v4060_v32, %v5719_v47  ;;  %4541 = vmatprep.mubr.f32.mxu1 %v3402_v44 }
 0x157   : > { %v4140_v4 = vpop.f32.mrf.mxu0  ;;  %4619 = vmatmul.mubr.f32.gmra.mxu0 %v5742_v58  ;;  %v767_v17 = vpop.f32.mrf.mxu1 }
 0x158   : > { %v5911_v8 = vadd.f32 %v4140_v4, %v773_v54  ;;  %v768_v37 = vadd.f32 %v767_v17, %v5728_v50  ;;  %4621 = vmatprep.mubr.f32.mxu0 %v3450_v38 }
 0x159   : > { %v1041_v62 = vpop.f32.mrf.mxu0  ;;  %v4063_v6 = vpop.f32.mrf.mxu1  ;;  %4542 = vmatmul.mubr.f32.gmra.mxu1 %v3403_v1 }
 0x15a   : > { %v5915_v25 = vadd.f32 %v1041_v62, %v768_v37  ;;  %v783_v0 = vadd.f32 %v4063_v6, %v5745_v7 }
 0x15b   : > { %v4143_v47 = vpop.f32.mrf.mxu0  ;;  %4622 = vmatmul.mubr.f32.gmra.mxu0 %v3451_v45  ;;  %v777_v18 = vpop.f32.mrf.mxu1 }
 0x15c   : > { %v5918_v23 = vadd.f32 %v4143_v47, %v783_v0  ;;  %v778_v58 = vadd.f32 %v777_v18, %v5756_v35 }
 0x15d   : > { %v1051_v59 = vpop.f32.mrf.mxu0  ;;  %v4178_v34 = vpop.f32.mrf.mxu1 }
 0x15e   : > { %v5921_v49 = vadd.f32 %v1051_v59, %v778_v58  ;;  %v1368_v50 = vadd.f32 %v4178_v34, %v5772_v12 }
 0x15f   : > { %v4258_v46 = vpop.f32.mrf.mxu0  ;;  %v1208_v22 = vpop.f32.mrf.mxu1 }
 0x160   : > { %v5924_v14 = vadd.f32 %v4258_v46, %v1368_v50  ;;  %v1367_v24 = vadd.f32 %v1208_v22, %v5777_v13 }
 0x161   : > { %v1514_v7 = vpop.f32.mrf.mxu0  ;;  %v4181_v3 = vpop.f32.mrf.mxu1 }
 0x162   : > { %v5927_v29 = vadd.f32 %v1514_v7, %v1367_v24  ;;  %v1370_v15 = vadd.f32 %v4181_v3, %v5782_v21 }
 0x163   : > { %v4261_v51 = vpop.f32.mrf.mxu0  ;;  %v1218_v35 = vpop.f32.mrf.mxu1 }
 0x164   : > { %v5930_v36 = vadd.f32 %v4261_v51, %v1370_v15  ;;  %v1369_v5 = vadd.f32 %v1218_v35, %v5787_v55 }
 0x165   : > { %v1524_v44 = vpop.f32.mrf.mxu0  ;;  %v4184_v12 = vpop.f32.mrf.mxu1 }
 0x166   : > { %v5933_v9 = vadd.f32 %v1524_v44, %v1369_v5  ;;  %v1372_v57 = vadd.f32 %v4184_v12, %v5792_v63 }
 0x167   : > { %v4264_v32 = vpop.f32.mrf.mxu0  ;;  %v1228_v13 = vpop.f32.mrf.mxu1 }
 0x168   : > { %v5936_v38 = vadd.f32 %v4264_v32, %v1372_v57  ;;  %v1371_v54 = vadd.f32 %v1228_v13, %v5797_v28 }
 0x169   : > { %v1534_v1 = vpop.f32.mrf.mxu0  ;;  %v4187_v21 = vpop.f32.mrf.mxu1 }
 0x16a   : > { %v5939_v4 = vadd.f32 %v1534_v1, %v1371_v54  ;;  %v1374_v17 = vadd.f32 %v4187_v21, %v5802_v56 }
 0x16b   : > { %v4267_v37 = vpop.f32.mrf.mxu0  ;;  %v1238_v55 = vpop.f32.mrf.mxu1 }
 0x16c   : > { %v5942_v45 = vadd.f32 %v4267_v37, %v1374_v17  ;;  %v1373_v62 = vadd.f32 %v1238_v55, %v5807_v60 }
 0x16d   : > { %v1544_v6 = vpop.f32.mrf.mxu0  ;;  %v4190_v63 = vpop.f32.mrf.mxu1 }
 0x16e   : > { %v5945_v0 = vadd.f32 %v1544_v6, %v1373_v62  ;;  %v1376_v47 = vadd.f32 %v4190_v63, %v5812_v40 }
 0x16f   : > { %v4270_v18 = vpop.f32.mrf.mxu0  ;;  %v1248_v28 = vpop.f32.mrf.mxu1 }
 0x170   : > { %v5948_v58 = vadd.f32 %v4270_v18, %v1376_v47  ;;  %v1375_v59 = vadd.f32 %v1248_v28, %v5817_v53 }
 0x171   : > { %v1554_v34 = vpop.f32.mrf.mxu0  ;;  %v4193_v56 = vpop.f32.mrf.mxu1 }
 0x172   : > { %v5951_v50 = vadd.f32 %v1554_v34, %v1375_v59  ;;  %v1378_v46 = vadd.f32 %v4193_v56, %v5822_v61 }
 0x173   : > { %v4273_v22 = vpop.f32.mrf.mxu0  ;;  %v1258_v60 = vpop.f32.mrf.mxu1 }
 0x174   : > { %v5954_v24 = vadd.f32 %v4273_v22, %v1378_v46  ;;  %v1377_v7 = vadd.f32 %v1258_v60, %v5827_v26 }
 0x175   : > { %v1564_v3 = vpop.f32.mrf.mxu0  ;;  %v4196_v40 = vpop.f32.mrf.mxu1 }
 0x176   : > { %v5957_v15 = vadd.f32 %v1564_v3, %v1377_v7  ;;  %v1380_v51 = vadd.f32 %v4196_v40, %v5832_v20 }
 0x177   : > { %v4276_v35 = vpop.f32.mrf.mxu0  ;;  %v1268_v53 = vpop.f32.mrf.mxu1 }
 0x178   : > { %v5960_v5 = vadd.f32 %v4276_v35, %v1380_v51  ;;  %v1379_v44 = vadd.f32 %v1268_v53, %v5837_v10 }
 0x179   : > { %v1574_v12 = vpop.f32.mrf.mxu0  ;;  %v4199_v61 = vpop.f32.mrf.mxu1 }
 0x17a   : > { %v5963_v57 = vadd.f32 %v1574_v12, %v1379_v44  ;;  %v1382_v32 = vadd.f32 %v4199_v61, %v5842_v43 }
 0x17b   : > { %v4279_v13 = vpop.f32.mrf.mxu0  ;;  %v1278_v26 = vpop.f32.mrf.mxu1 }
 0x17c   : > { %v5966_v54 = vadd.f32 %v4279_v13, %v1382_v32  ;;  %v1381_v1 = vadd.f32 %v1278_v26, %v5847_v30 }
 0x17d   : > { %v1584_v21 = vpop.f32.mrf.mxu0  ;;  %v4202_v20 = vpop.f32.mrf.mxu1 }
 0x17e   : > { %v5969_v17 = vadd.f32 %v1584_v21, %v1381_v1  ;;  %v1384_v37 = vadd.f32 %v4202_v20, %v5852_v41 }
 0x17f   : > { %v4282_v55 = vpop.f32.mrf.mxu0  ;;  %v1288_v10 = vpop.f32.mrf.mxu1 }
 0x180   : > { %v5972_v62 = vadd.f32 %v4282_v55, %v1384_v37  ;;  %v1383_v6 = vadd.f32 %v1288_v10, %v5857_v11 }
 0x181   : > { %v1594_v63 = vpop.f32.mrf.mxu0  ;;  %v4205_v43 = vpop.f32.mrf.mxu1 }
 0x182   : > { %v5975_v47 = vadd.f32 %v1594_v63, %v1383_v6  ;;  %v1386_v18 = vadd.f32 %v4205_v43, %v5862_v31 }
 0x183   : > { %v4285_v28 = vpop.f32.mrf.mxu0  ;;  %v1298_v30 = vpop.f32.mrf.mxu1 }
 0x184   : > { %6503 = vst [vmem:[#allocation2_spill] sm:$0xff] %v5975_v47  ;;  %v5978_v59 = vadd.f32 %v4285_v28, %v1386_v18  ;;  %v1385_v34 = vadd.f32 %v1298_v30, %v5867_v42  ;;  %v6211_v47 = vld [vmem:[%s6149_s22 + $0x90] sm:$0xff] }
 0x185   : > { %v1604_v56 = vpop.f32.mrf.mxu0  ;;  %v4208_v41 = vpop.f32.mrf.mxu1  ;;  %6560 = vst [vmem:[#allocation59_spill] sm:$0xff] %v6211_v47  ;;  %v6233_v47 = vld [vmem:[%s6149_s22 + $0xd8] sm:$0xff] }
 0x186   : > { %6504 = vst [vmem:[#allocation3_spill] sm:$0xff] %v5978_v59  ;;  %v5981_v46 = vadd.f32 %v1604_v56, %v1385_v34  ;;  %v1388_v22 = vadd.f32 %v4208_v41, %v5872_v48  ;;  %v6199_v59 = vld [vmem:[%s6149_s22 + $0x70] sm:$0xff]  ;;  %6567 = vst [vmem:[#allocation66_spill] sm:$0xff] %v6233_v47 }
 0x187   : > { %v4288_v60 = vpop.f32.mrf.mxu0  ;;  %v1308_v11 = vpop.f32.mrf.mxu1  ;;  %6556 = vst [vmem:[#allocation55_spill] sm:$0xff] %v6199_v59  ;;  %v6223_v59 = vld [vmem:[%s6149_s22 + $0xb0] sm:$0xff] }
 0x188   : > { %6505 = vst [vmem:[#allocation4_spill] sm:$0xff] %v5981_v46  ;;  %v5984_v7 = vadd.f32 %v4288_v60, %v1388_v22  ;;  %v1387_v3 = vadd.f32 %v1308_v11, %v5877_v27  ;;  %6564 = vst [vmem:[#allocation63_spill] sm:$0xff] %v6223_v59 }
 0x189   : > { %v1614_v40 = vpop.f32.mrf.mxu0  ;;  %v4211_v31 = vpop.f32.mrf.mxu1 }
 0x18a   : > { %6506 = vst [vmem:[#allocation5_spill] sm:$0xff] %v5984_v7  ;;  %v5987_v51 = vadd.f32 %v1614_v40, %v1387_v3  ;;  %v1390_v35 = vadd.f32 %v4211_v31, %v5882_v33 }
 0x18b   : > { %v4291_v53 = vpop.f32.mrf.mxu0  ;;  %v1318_v42 = vpop.f32.mrf.mxu1 }
 0x18c   : > { %6507 = vst [vmem:[#allocation6_spill] sm:$0xff] %v5987_v51  ;;  %v5990_v44 = vadd.f32 %v4291_v53, %v1390_v35  ;;  %v1389_v12 = vadd.f32 %v1318_v42, %v5887_v39 }
 0x18d   : > { %v1624_v61 = vpop.f32.mrf.mxu0  ;;  %v4214_v48 = vpop.f32.mrf.mxu1 }
 0x18e   : > { %6508 = vst [vmem:[#allocation7_spill] sm:$0xff] %v5990_v44  ;;  %v5993_v32 = vadd.f32 %v1624_v61, %v1389_v12  ;;  %v1392_v13 = vadd.f32 %v4214_v48, %v5891_v2 }
 0x18f   : > { %v4294_v26 = vpop.f32.mrf.mxu0  ;;  %v1328_v27 = vpop.f32.mrf.mxu1 }
 0x190   : > { %6509 = vst [vmem:[#allocation8_spill] sm:$0xff] %v5993_v32  ;;  %v5996_v1 = vadd.f32 %v4294_v26, %v1392_v13  ;;  %v1391_v21 = vadd.f32 %v1328_v27, %v5895_v19 }
 0x191   : > { %v1634_v20 = vpop.f32.mrf.mxu0  ;;  %v4217_v33 = vpop.f32.mrf.mxu1 }
 0x192   : > { %6510 = vst [vmem:[#allocation9_spill] sm:$0xff] %v5996_v1  ;;  %v5999_v37 = vadd.f32 %v1634_v20, %v1391_v21  ;;  %v1394_v55 = vadd.f32 %v4217_v33, %v5900_v52 }
 0x193   : > { %v4297_v10 = vpop.f32.mrf.mxu0  ;;  %v1338_v39 = vpop.f32.mrf.mxu1 }
 0x194   : > { %6511 = vst [vmem:[#allocation10_spill] sm:$0xff] %v5999_v37  ;;  %v6002_v6 = vadd.f32 %v4297_v10, %v1394_v55  ;;  %v1393_v63 = vadd.f32 %v1338_v39, %v5906_v16 }
 0x195   : > { %v1644_v43 = vpop.f32.mrf.mxu0  ;;  %v4220_v2 = vpop.f32.mrf.mxu1 }
 0x196   : > { %6512 = vst [vmem:[#allocation11_spill] sm:$0xff] %v6002_v6  ;;  %v6005_v18 = vadd.f32 %v1644_v43, %v1393_v63  ;;  %v1396_v28 = vadd.f32 %v4220_v2, %v5911_v8 }
 0x197   : > { %v4300_v30 = vpop.f32.mrf.mxu0  ;;  %v1348_v19 = vpop.f32.mrf.mxu1 }
 0x198   : > { %6513 = vst [vmem:[#allocation12_spill] sm:$0xff] %v6005_v18  ;;  %v6008_v34 = vadd.f32 %v4300_v30, %v1396_v28  ;;  %v1395_v56 = vadd.f32 %v1348_v19, %v5915_v25 }
 0x199   : > { %v1654_v41 = vpop.f32.mrf.mxu0  ;;  %v4223_v52 = vpop.f32.mrf.mxu1 }
 0x19a   : > { %6514 = vst [vmem:[#allocation13_spill] sm:$0xff] %v6008_v34  ;;  %v6011_v22 = vadd.f32 %v1654_v41, %v1395_v56  ;;  %v1398_v60 = vadd.f32 %v4223_v52, %v5918_v23 }
 0x19b   : > { %v4303_v11 = vpop.f32.mrf.mxu0  ;;  %v1358_v16 = vpop.f32.mrf.mxu1 }
 0x19c   : > { %6515 = vst [vmem:[#allocation14_spill] sm:$0xff] %v6011_v22  ;;  %v6014_v3 = vadd.f32 %v4303_v11, %v1398_v60  ;;  %v1397_v40 = vadd.f32 %v1358_v16, %v5921_v49 }
 0x19d   : > { %v1664_v31 = vpop.f32.mrf.mxu0  ;;  %v4338_v8 = vpop.f32.mrf.mxu1 }
 0x19e   : > { %6516 = vst [vmem:[#allocation15_spill] sm:$0xff] %v6014_v3  ;;  %v6017_v35 = vadd.f32 %v1664_v31, %v1397_v40 }
 0x19f   : > { %v6019_v53 = vpop.f32.mrf.mxu0  ;;  %v1820_v42 = vpop.f32.mrf.mxu1 }
 0x1a0   : > { %6517 = vst [vmem:[#allocation16_spill] sm:$0xff] %v6017_v35 }
 0x1a1   : > { %v6021_v25 = vpop.f32.mrf.mxu0  ;;  %v6023_v12 = vpop.f32.mrf.mxu1 }
 0x1a3   : > { %v6025_v61 = vpop.f32.mrf.mxu0  ;;  %v6027_v23 = vpop.f32.mrf.mxu1 }
 0x1a5   : > { %v6029_v48 = vpop.f32.mrf.mxu0  ;;  %v6031_v13 = vpop.f32.mrf.mxu1 }
 0x1a7   : > { %v6033_v49 = vpop.f32.mrf.mxu0  ;;  %v6035_v26 = vpop.f32.mrf.mxu1 }
 0x1a9   : > { %v6037_v27 = vpop.f32.mrf.mxu0  ;;  %v6039_v21 = vpop.f32.mrf.mxu1 }
 0x1ab   : > { %v6041_v20 = vpop.f32.mrf.mxu0  ;;  %v6043_v33 = vpop.f32.mrf.mxu1 }
 0x1ad   : > { %v6045_v55 = vpop.f32.mrf.mxu0  ;;  %v6047_v10 = vpop.f32.mrf.mxu1 }
 0x1af   : > { %v6049_v39 = vpop.f32.mrf.mxu0  ;;  %v6051_v63 = vpop.f32.mrf.mxu1 }
 0x1b1   : > { %v6053_v43 = vpop.f32.mrf.mxu0  ;;  %v6055_v2 = vpop.f32.mrf.mxu1 }
 0x1b3   : > { %v6057_v28 = vpop.f32.mrf.mxu0  ;;  %v6059_v30 = vpop.f32.mrf.mxu1 }
 0x1b5   : > { %v6061_v19 = vpop.f32.mrf.mxu0  ;;  %v6063_v56 = vpop.f32.mrf.mxu1 }
 0x1b7   : > { %v6065_v41 = vpop.f32.mrf.mxu0  ;;  %v6067_v52 = vpop.f32.mrf.mxu1 }
 0x1b9   : > { %v6069_v60 = vpop.f32.mrf.mxu0  ;;  %v6071_v11 = vpop.f32.mrf.mxu1 }
 0x1bb   : > { %v6073_v16 = vpop.f32.mrf.mxu0  ;;  %v6075_v40 = vpop.f32.mrf.mxu1 }
 0x1bc   : > { %6518 = vst [vmem:[#allocation17_spill] sm:$0xff] %v6073_v16 }
 0x1bd   : > { %v6077_v31 = vpop.f32.mrf.mxu0  ;;  %v6079_v35 = vpop.f32.mrf.mxu1 }
 0x1be   : > { %6519 = vst [vmem:[#allocation18_spill] sm:$0xff] %v6077_v31  ;;  %6520 = vst [vmem:[#allocation19_spill] sm:$0xff] %v6079_v35  ;;  %v6205_v31 = vld [vmem:[%s6149_s22 + $0x80] sm:$0xff]  ;;  %v6239_v35 = vld [vmem:[%s6149_s22 + $0xe8] sm:$0xff] }
 0x1bf   : > { %v6081_v3 = vpop.f32.mrf.mxu0  ;;  %v6083_v22 = vpop.f32.mrf.mxu1  ;;  %6558 = vst [vmem:[#allocation57_spill] sm:$0xff] %v6205_v31  ;;  %6569 = vst [vmem:[#allocation68_spill] sm:$0xff] %v6239_v35 }
 0x1c0   : > { %6521 = vst [vmem:[#allocation20_spill] sm:$0xff] %v6081_v3  ;;  %6522 = vst [vmem:[#allocation21_spill] sm:$0xff] %v6083_v22  ;;  %v6202_v3 = vld [vmem:[%s6149_s22 + $0x88] sm:$0xff]  ;;  %v6208_v22 = vld [vmem:[%s6149_s22 + $0x98] sm:$0xff] }
 0x1c1   : > { %v6085_v34 = vpop.f32.mrf.mxu0  ;;  %v6087_v18 = vpop.f32.mrf.mxu1  ;;  %6557 = vst [vmem:[#allocation56_spill] sm:$0xff] %v6202_v3  ;;  %6559 = vst [vmem:[#allocation58_spill] sm:$0xff] %v6208_v22  ;;  %v6229_v3 = vld [vmem:[%s6149_s22 + $0xc0] sm:$0xff] }
 0x1c2   : > { %6523 = vst [vmem:[#allocation22_spill] sm:$0xff] %v6085_v34  ;;  %6524 = vst [vmem:[#allocation23_spill] sm:$0xff] %v6087_v18 }
 0x1c3   : > { %v6089_v6 = vpop.f32.mrf.mxu0  ;;  %v6091_v37 = vpop.f32.mrf.mxu1  ;;  %6566 = vst [vmem:[#allocation65_spill] sm:$0xff] %v6229_v3 }
 0x1c4   : > { %6525 = vst [vmem:[#allocation24_spill] sm:$0xff] %v6089_v6  ;;  %6526 = vst [vmem:[#allocation25_spill] sm:$0xff] %v6091_v37 }
 0x1c5   : > { %v6093_v1 = vpop.f32.mrf.mxu0  ;;  %v6095_v32 = vpop.f32.mrf.mxu1 }
 0x1c6   : > { %6527 = vst [vmem:[#allocation26_spill] sm:$0xff] %v6093_v1  ;;  %6528 = vst [vmem:[#allocation27_spill] sm:$0xff] %v6095_v32 }
 0x1c7   : > { %v6097_v44 = vpop.f32.mrf.mxu0  ;;  %v6099_v51 = vpop.f32.mrf.mxu1 }
 0x1c8   : > { %6529 = vst [vmem:[#allocation28_spill] sm:$0xff] %v6097_v44  ;;  %6530 = vst [vmem:[#allocation29_spill] sm:$0xff] %v6099_v51 }
 0x1c9   : > { %v6101_v7 = vpop.f32.mrf.mxu0  ;;  %v6103_v46 = vpop.f32.mrf.mxu1 }
 0x1ca   : > { %6531 = vst [vmem:[#allocation30_spill] sm:$0xff] %v6101_v7  ;;  %6532 = vst [vmem:[#allocation31_spill] sm:$0xff] %v6103_v46 }
 0x1cb   : > { %v6105_v34 = vpop.f32.mrf.mxu0  ;;  %v6107_v18 = vpop.f32.mrf.mxu1 }
 0x1cc   : > { %6533 = vst [vmem:[#allocation32_spill] sm:$0xff] %v6105_v34  ;;  %6534 = vst [vmem:[#allocation33_spill] sm:$0xff] %v6107_v18 }
 0x1cd   : > { %v6109_v6 = vpop.f32.mrf.mxu0  ;;  %v6111_v37 = vpop.f32.mrf.mxu1 }
 0x1ce   : > { %6535 = vst [vmem:[#allocation34_spill] sm:$0xff] %v6109_v6  ;;  %6536 = vst [vmem:[#allocation35_spill] sm:$0xff] %v6111_v37 }
 0x1cf   : > { %v6113_v1 = vpop.f32.mrf.mxu0  ;;  %v6115_v32 = vpop.f32.mrf.mxu1 }
 0x1d0   : > { %6537 = vst [vmem:[#allocation36_spill] sm:$0xff] %v6113_v1  ;;  %6538 = vst [vmem:[#allocation37_spill] sm:$0xff] %v6115_v32  ;;  %v1980_v1 = vadd.f32 %v4338_v8, %v5924_v14 }
 0x1d1   : > { %v6117_v44 = vpop.f32.mrf.mxu0  ;;  %v6119_v51 = vpop.f32.mrf.mxu1 }
 0x1d2   : > { %6539 = vst [vmem:[#allocation38_spill] sm:$0xff] %v6117_v44  ;;  %6540 = vst [vmem:[#allocation39_spill] sm:$0xff] %v6119_v51  ;;  %v1979_v51 = vadd.f32 %v1820_v42, %v5927_v29  ;;  %v2287_v14 = vadd.f32 %v6019_v53, %v1980_v1  ;;  %v1982_v29 = vadd.f32 %v6023_v12, %v5930_v36  ;;  %v2931_v1 = vld [vmem:[%s6149_s22 + $0x8] sm:$0xff] }
 0x1d3   : > { %v6121_v7 = vpop.f32.mrf.mxu0  ;;  %v6123_v46 = vpop.f32.mrf.mxu1  ;;  %v1984_v36 = vadd.f32 %v6031_v13, %v5936_v38  ;;  %v6175_v38 = vld [vmem:[%s6149_s22 + $0x30] sm:$0xff]  ;;  %v6178_v13 = vld [vmem:[%s6149_s22 + $0x48] sm:$0xff] }
 0x1d4   : > { %6541 = vst [vmem:[#allocation40_spill] sm:$0xff] %v6121_v7  ;;  %6542 = vst [vmem:[#allocation41_spill] sm:$0xff] %v6123_v46  ;;  %v2289_v31 = vadd.f32 %v6025_v61, %v1982_v29  ;;  %v6257_v29 = vld [vmem:[%s6149_s22 + $0xf0] sm:$0xff] }
 0x1d5   : > { %v6125_v34 = vpop.f32.mrf.mxu0  ;;  %v6127_v18 = vpop.f32.mrf.mxu1  ;;  %6572 = vst [vmem:[#allocation71_spill] sm:$0xff] %v6257_v29 }
 0x1d6   : > { %6543 = vst [vmem:[#allocation42_spill] sm:$0xff] %v6125_v34  ;;  %6544 = vst [vmem:[#allocation43_spill] sm:$0xff] %v6127_v18  ;;  %v6190_v34 = vld [vmem:[%s6149_s22 + $0x68] sm:$0xff]  ;;  %v6196_v18 = vld [vmem:[%s6149_s22 + $0x78] sm:$0xff] }
 0x1d7   : > { %v6129_v6 = vpop.f32.mrf.mxu0  ;;  %v6131_v37 = vpop.f32.mrf.mxu1  ;;  %6553 = vst [vmem:[#allocation52_spill] sm:$0xff] %v6190_v34  ;;  %6555 = vst [vmem:[#allocation54_spill] sm:$0xff] %v6196_v18  ;;  %v6220_v18 = vld [vmem:[%s6149_s22 + $0xb8] sm:$0xff]  ;;  %v6226_v34 = vld [vmem:[%s6149_s22 + $0xc8] sm:$0xff] }
 0x1d8   : > { %6545 = vst [vmem:[#allocation44_spill] sm:$0xff] %v6129_v6  ;;  %6546 = vst [vmem:[#allocation45_spill] sm:$0xff] %v6131_v37  ;;  %v6187_v6 = vld [vmem:[%s6149_s22 + $0x50] sm:$0xff]  ;;  %v6193_v37 = vld [vmem:[%s6149_s22 + $0x60] sm:$0xff] }
 0x1d9   : > { %v6135_v32 = vpop.f32.mrf.mxu0  ;;  %v6137_v44 = vpop.f32.mrf.mxu1  ;;  %6552 = vst [vmem:[#allocation51_spill] sm:$0xff] %v6187_v6  ;;  %6554 = vst [vmem:[#allocation53_spill] sm:$0xff] %v6193_v37  ;;  %v6214_v6 = vld [vmem:[%s6149_s22 + $0xa8] sm:$0xff]  ;;  %v6217_v37 = vld [vmem:[%s6149_s22 + $0xa0] sm:$0xff] }
 0x1da   : > { %6547 = vst [vmem:[#allocation46_spill] sm:$0xff] %v6135_v32  ;;  %6548 = vst [vmem:[#allocation47_spill] sm:$0xff] %v6137_v44  ;;  %v6184_v44 = vld [vmem:[%s6149_s22 + $0x58] sm:$0xff] }
 0x1db   : > { %v6140_v7 = vpop.f32.mrf.mxu0  ;;  %v6142_v46 = vpop.f32.mrf.mxu1  ;;  %6561 = vst [vmem:[#allocation60_spill] sm:$0xff] %v6214_v6  ;;  %6562 = vst [vmem:[#allocation61_spill] sm:$0xff] %v6217_v37  ;;  %v6236_v6 = vld [vmem:[%s6149_s22 + $0xd0] sm:$0xff] }
 0x1dc   : > { %6549 = vst [vmem:[#allocation48_spill] sm:$0xff] %v6140_v7  ;;  %6550 = vst [vmem:[#allocation49_spill] sm:$0xff] %v6142_v46  ;;  %v2286_v7 = vadd.f32 %v6021_v25, %v1979_v51  ;;  %v1981_v46 = vadd.f32 %v6027_v23, %v5933_v9  ;;  %v2933_v51 = vld [vmem:[%s6149_s22 + $0x18] sm:$0xff]  ;;  %v2932_v25 = vld [vmem:[%s6149_s22 + $0x10] sm:$0xff] }
 0x1dd   : > { %v6154_v8 = vpop.f32.mrf.mxu0  ;;  %v4498_v42 = vpop.f32.mrf.mxu1  ;;  %v6166_v9 = vld [vmem:[%s6149_s22 + $0x28] sm:$0xff]  ;;  %v6169_v23 = vld [vmem:[%s6149_s22 + $0x20] sm:$0xff]  ;;  %6563 = vst [vmem:[#allocation62_spill] sm:$0xff] %v6220_v18  ;;  %6565 = vst [vmem:[#allocation64_spill] sm:$0xff] %v6226_v34  ;;  %v1983_v18 = vadd.f32 %v6035_v26, %v5939_v4  ;;  %v2291_v26 = vadd.f32 %v6033_v49, %v1984_v36  ;;  %v1986_v34 = vadd.f32 %v6039_v21, %v5942_v45 }
 0x1de   : > { %6551 = vst [vmem:[#allocation50_spill] sm:$0xff] %v6154_v8  ;;  %v2593_v32 = vadd.f32 %v4498_v42, %v2287_v14  ;;  %v2930_v8 = vld [vmem:[%s6149_s22] sm:$0xff]  ;;  %v6172_v14 = vld [vmem:[%s6149_s22 + $0x38] sm:$0xff]  ;;  %6568 = vst [vmem:[#allocation67_spill] sm:$0xff] %v6236_v6  ;;  %v1988_v45 = vadd.f32 %v6047_v10, %v5948_v58 }
 0x1df   : > { %v4578_v53 = vpop.f32.mrf.mxu0  ;;  %v2433_v12 = vpop.f32.mrf.mxu1  ;;  %v6181_v42 = vld [vmem:[%s6149_s22 + $0x40] sm:$0xff]  ;;  %v2290_v29 = vadd.f32 %v6037_v27, %v1983_v18 }
 0x1e0   : > { %v2899_v22 = vadd.f32 %v4578_v53, %v2593_v32  ;;  %v2592_v16 = vadd.f32 %v2433_v12, %v2286_v7  ;;  %v6251_v32 = vld [vmem:[%s6149_s22 + $0xe0] sm:$0xff]  ;;  %v6254_v7 = vld [vmem:[%s6149_s22 + $0xf8] sm:$0xff]  ;;  %v2288_v53 = vadd.f32 %v6029_v48, %v1981_v46 }
 0x1e1   : > { %v2739_v3 = vpop.f32.mrf.mxu0  ;;  %v4501_v61 = vpop.f32.mrf.mxu1  ;;  %6570 = vst [vmem:[#allocation69_spill] sm:$0xff] %v6251_v32  ;;  %6571 = vst [vmem:[#allocation70_spill] sm:$0xff] %v6254_v7 }
 0x1e2   : > { %v2963_v12 = vadd.f32 %v2931_v1, %v2899_v22  ;;  %v2898_v35 = vadd.f32 %v2739_v3, %v2592_v16  ;;  %v2595_v4 = vadd.f32 %v4501_v61, %v2289_v31  ;;  %v1985_v22 = vadd.f32 %v6043_v33, %v5945_v0 }
 0x1e3   : > { %v4581_v6 = vpop.f32.mrf.mxu0  ;;  %v2443_v47 = vpop.f32.mrf.mxu1  ;;  %v1987_v0 = vadd.f32 %v6051_v63, %v5951_v50 }
 0x1e4   : > { %v2962_v59 = vadd.f32 %v2930_v8, %v2898_v35  ;;  %v2901_v37 = vadd.f32 %v4581_v6, %v2595_v4  ;;  %v2594_v32 = vadd.f32 %v2443_v47, %v2288_v53  ;;  %2995 = vst [vmem:[%s6248_s25 + $0x8] sm:$0xff] %v2963_v12  ;;  %v2293_v47 = vadd.f32 %v6041_v20, %v1986_v34 }
 0x1e5   : > { %v2749_v7 = vpop.f32.mrf.mxu0  ;;  %v4504_v46 = vpop.f32.mrf.mxu1  ;;  %v2295_v34 = vadd.f32 %v6049_v39, %v1988_v45  ;;  %v1990_v8 = vadd.f32 %v6055_v2, %v5954_v24  ;;  %v1992_v24 = vadd.f32 %v6063_v56, %v5960_v5 }
 0x1e6   : > { %v2965_v3 = vadd.f32 %v2933_v51, %v2901_v37  ;;  %v2900_v48 = vadd.f32 %v2749_v7, %v2594_v32  ;;  %v2597_v49 = vadd.f32 %v4504_v46, %v2291_v26  ;;  %2994 = vst [vmem:[%s6248_s25] sm:$0xff] %v2962_v59  ;;  %v2292_v59 = vadd.f32 %v6045_v55, %v1985_v22 }
 0x1e7   : > { %v4584_v35 = vpop.f32.mrf.mxu0  ;;  %v2453_v6 = vpop.f32.mrf.mxu1  ;;  %v2294_v55 = vadd.f32 %v6053_v43, %v1987_v0  ;;  %v2297_v32 = vadd.f32 %v6057_v28, %v1990_v8  ;;  %v2299_v28 = vadd.f32 %v6065_v41, %v1992_v24  ;;  %v1994_v26 = vadd.f32 %v6071_v11, %v5966_v54  ;;  %v6573_v54 = vld [vmem:[#allocation19_spill] sm:$0xff]  ;;  %v6585_v24 = vld [vmem:[#allocation4_spill] sm:$0xff] }
 0x1e8   : > { %v2964_v21 = vadd.f32 %v2932_v25, %v2900_v48  ;;  %v2903_v16 = vadd.f32 %v4584_v35, %v2597_v49  ;;  %v2596_v18 = vadd.f32 %v2453_v6, %v2290_v29  ;;  %2997 = vst [vmem:[%s6248_s25 + $0x18] sm:$0xff] %v2965_v3  ;;  %v1989_v25 = vadd.f32 %v6059_v30, %v5957_v15  ;;  %v6574_v35 = vld [vmem:[#allocation17_spill] sm:$0xff]  ;;  %v6581_v8 = vld [vmem:[#allocation3_spill] sm:$0xff] }
 0x1e9   : > { %v2759_v37 = vpop.f32.mrf.mxu0  ;;  %v4507_v27 = vpop.f32.mrf.mxu1  ;;  %v1991_v15 = vadd.f32 %v6067_v52, %v5963_v57  ;;  %v1993_v3 = vadd.f32 %v6075_v40, %v5969_v17  ;;  %v1996_v11 = vadd.f32 %v6573_v54, %v5972_v62  ;;  %v2301_v6 = vadd.f32 %v6574_v35, %v1994_v26  ;;  %v6577_v17 = vld [vmem:[#allocation21_spill] sm:$0xff] }
 0x1ea   : > { %v2967_v33 = vadd.f32 %v6166_v9, %v2903_v16  ;;  %v2902_v31 = vadd.f32 %v2759_v37, %v2596_v18  ;;  %v2599_v58 = vadd.f32 %v4507_v27, %v2293_v47  ;;  %2996 = vst [vmem:[%s6248_s25 + $0x10] sm:$0xff] %v2964_v21  ;;  %v2296_v53 = vadd.f32 %v6061_v19, %v1989_v25  ;;  %v6575_v47 = vld [vmem:[#allocation51_spill] sm:$0xff]  ;;  %v6576_v18 = vld [vmem:[#allocation2_spill] sm:$0xff] }
 0x1eb   : > { %v4587_v20 = vpop.f32.mrf.mxu0  ;;  %v2463_v10 = vpop.f32.mrf.mxu1  ;;  %v2298_v19 = vadd.f32 %v6069_v60, %v1991_v15  ;;  %v6578_v37 = vld [vmem:[#allocation18_spill] sm:$0xff]  ;;  %v6588_v15 = vld [vmem:[#allocation5_spill] sm:$0xff] }
 0x1ec   : > { %v2966_v1 = vadd.f32 %v6169_v23, %v2902_v31  ;;  %v2905_v50 = vadd.f32 %v4587_v20, %v2599_v58  ;;  %v2598_v63 = vadd.f32 %v2463_v10, %v2292_v59  ;;  %2999 = vst [vmem:[%s6248_s25 + $0x28] sm:$0xff] %v2967_v33  ;;  %v2300_v27 = vadd.f32 %v6578_v37, %v1993_v3  ;;  %v6579_v59 = vld [vmem:[#allocation52_spill] sm:$0xff]  ;;  %v6584_v25 = vld [vmem:[#allocation22_spill] sm:$0xff] }
 0x1ed   : > { %v2769_v36 = vpop.f32.mrf.mxu0  ;;  %v4510_v51 = vpop.f32.mrf.mxu1  ;;  %v6580_v58 = vld [vmem:[#allocation20_spill] sm:$0xff] }
 0x1ee   : > { %v2969_v39 = vadd.f32 %v6172_v14, %v2905_v50  ;;  %v2904_v9 = vadd.f32 %v2769_v36, %v2598_v63  ;;  %v2601_v61 = vadd.f32 %v4510_v51, %v2295_v34  ;;  %2998 = vst [vmem:[%s6248_s25 + $0x20] sm:$0xff] %v2966_v1  ;;  %v2303_v34 = vadd.f32 %v6580_v58, %v1996_v11  ;;  %v6582_v1 = vld [vmem:[#allocation23_spill] sm:$0xff]  ;;  %v6583_v63 = vld [vmem:[#allocation53_spill] sm:$0xff]  ;;  %v6596_v11 = vld [vmem:[#allocation28_spill] sm:$0xff] }
 0x1ef   : > { %v4590_v2 = vpop.f32.mrf.mxu0  ;;  %v2473_v23 = vpop.f32.mrf.mxu1  ;;  %v1998_v50 = vadd.f32 %v6582_v1, %v6581_v8 }
 0x1f0   : > { %v2968_v43 = vadd.f32 %v6175_v38, %v2904_v9  ;;  %v2907_v7 = vadd.f32 %v4590_v2, %v2601_v61  ;;  %v2600_v29 = vadd.f32 %v2473_v23, %v2294_v55  ;;  %3001 = vst [vmem:[%s6248_s25 + $0x38] sm:$0xff] %v2969_v39  ;;  %v6586_v2 = vld [vmem:[#allocation25_spill] sm:$0xff] }
 0x1f1   : > { %v2779_v30 = vpop.f32.mrf.mxu0  ;;  %v4513_v14 = vpop.f32.mrf.mxu1  ;;  %v1997_v23 = vadd.f32 %v6586_v2, %v6585_v24 }
 0x1f2   : > { %v2971_v12 = vadd.f32 %v6178_v13, %v2907_v7  ;;  %v2906_v5 = vadd.f32 %v2779_v30, %v2600_v29  ;;  %v2603_v56 = vadd.f32 %v4513_v14, %v2297_v32  ;;  %3000 = vst [vmem:[%s6248_s25 + $0x30] sm:$0xff] %v2968_v43  ;;  %v6587_v32 = vld [vmem:[#allocation54_spill] sm:$0xff]  ;;  %v6589_v30 = vld [vmem:[#allocation27_spill] sm:$0xff] }
 0x1f3   : > { %v4593_v38 = vpop.f32.mrf.mxu0  ;;  %v2483_v4 = vpop.f32.mrf.mxu1  ;;  %v2000_v14 = vadd.f32 %v6589_v30, %v6588_v15 }
 0x1f4   : > { %v2970_v46 = vadd.f32 %v6181_v42, %v2906_v5  ;;  %v2909_v57 = vadd.f32 %v4593_v38, %v2603_v56  ;;  %v2602_v52 = vadd.f32 %v2483_v4, %v2296_v53  ;;  %3003 = vst [vmem:[%s6248_s25 + $0x48] sm:$0xff] %v2971_v12  ;;  %v6590_v5 = vld [vmem:[#allocation24_spill] sm:$0xff] }
 0x1f5   : > { %v2789_v13 = vpop.f32.mrf.mxu0  ;;  %v4516_v22 = vpop.f32.mrf.mxu1  ;;  %v2305_v56 = vadd.f32 %v6590_v5, %v1998_v50 }
 0x1f6   : > { %v2973_v41 = vadd.f32 %v6184_v44, %v2909_v57  ;;  %v2908_v48 = vadd.f32 %v2789_v13, %v2602_v52  ;;  %v2605_v49 = vadd.f32 %v4516_v22, %v2299_v28  ;;  %3002 = vst [vmem:[%s6248_s25 + $0x40] sm:$0xff] %v2970_v46  ;;  %v1995_v44 = vadd.f32 %v6577_v17, %v6576_v18  ;;  %v6591_v28 = vld [vmem:[#allocation55_spill] sm:$0xff]  ;;  %v6592_v46 = vld [vmem:[#allocation6_spill] sm:$0xff]  ;;  %v6593_v57 = vld [vmem:[#allocation29_spill] sm:$0xff] }
 0x1f7   : > { %v4596_v42 = vpop.f32.mrf.mxu0  ;;  %v2493_v45 = vpop.f32.mrf.mxu1  ;;  %v1999_v52 = vadd.f32 %v6593_v57, %v6592_v46  ;;  %v6594_v22 = vld [vmem:[#allocation26_spill] sm:$0xff] }
 0x1f8   : > { %v2972_v60 = vadd.f32 %v6575_v47, %v2908_v48  ;;  %v2911_v21 = vadd.f32 %v4596_v42, %v2605_v49  ;;  %v2604_v16 = vadd.f32 %v2493_v45, %v2298_v19  ;;  %3005 = vst [vmem:[%s6248_s25 + $0x58] sm:$0xff] %v2973_v41  ;;  %v2302_v39 = vadd.f32 %v6584_v25, %v1995_v44  ;;  %v6595_v41 = vld [vmem:[#allocation56_spill] sm:$0xff]  ;;  %v6598_v47 = vld [vmem:[#allocation31_spill] sm:$0xff]  ;;  %v6600_v44 = vld [vmem:[#allocation30_spill] sm:$0xff] }
 0x1f9   : > { %v2799_v40 = vpop.f32.mrf.mxu0  ;;  %v4519_v0 = vpop.f32.mrf.mxu1  ;;  %v2304_v3 = vadd.f32 %v6594_v22, %v1997_v23  ;;  %v2307_v42 = vadd.f32 %v6596_v11, %v2000_v14  ;;  %v6612_v14 = vld [vmem:[#allocation36_spill] sm:$0xff] }
 0x1fa   : > { %v2975_v33 = vadd.f32 %v6579_v59, %v2911_v21  ;;  %v2910_v62 = vadd.f32 %v2799_v40, %v2604_v16  ;;  %v2607_v31 = vadd.f32 %v4519_v0, %v2301_v6  ;;  %3004 = vst [vmem:[%s6248_s25 + $0x50] sm:$0xff] %v2972_v60  ;;  %v6597_v6 = vld [vmem:[#allocation7_spill] sm:$0xff]  ;;  %v6599_v21 = vld [vmem:[#allocation57_spill] sm:$0xff]  ;;  %v2306_v40 = vadd.f32 %v6600_v44, %v1999_v52  ;;  %v6616_v52 = vld [vmem:[#allocation38_spill] sm:$0xff] }
 0x1fb   : > { %v4599_v20 = vpop.f32.mrf.mxu0  ;;  %v2503_v10 = vpop.f32.mrf.mxu1  ;;  %v2002_v60 = vadd.f32 %v6598_v47, %v6597_v6  ;;  %v6602_v59 = vld [vmem:[#allocation33_spill] sm:$0xff] }
 0x1fc   : > { %v2974_v55 = vadd.f32 %v6583_v63, %v2910_v62  ;;  %v2913_v36 = vadd.f32 %v4599_v20, %v2607_v31  ;;  %v2606_v51 = vadd.f32 %v2503_v10, %v2300_v27  ;;  %3007 = vst [vmem:[%s6248_s25 + $0x68] sm:$0xff] %v2975_v33  ;;  %v6601_v27 = vld [vmem:[#allocation8_spill] sm:$0xff]  ;;  %v6603_v62 = vld [vmem:[#allocation58_spill] sm:$0xff]  ;;  %v6604_v20 = vld [vmem:[#allocation9_spill] sm:$0xff] }
 0x1fd   : > { %v2809_v9 = vpop.f32.mrf.mxu0  ;;  %v4522_v61 = vpop.f32.mrf.mxu1  ;;  %v2001_v33 = vadd.f32 %v6602_v59, %v6601_v27  ;;  %v6605_v10 = vld [vmem:[#allocation35_spill] sm:$0xff]  ;;  %v6606_v63 = vld [vmem:[#allocation32_spill] sm:$0xff] }
 0x1fe   : > { %v2977_v43 = vadd.f32 %v6587_v32, %v2913_v36  ;;  %v2912_v7 = vadd.f32 %v2809_v9, %v2606_v51  ;;  %v2609_v29 = vadd.f32 %v4522_v61, %v2303_v34  ;;  %3006 = vst [vmem:[%s6248_s25 + $0x60] sm:$0xff] %v2974_v55  ;;  %v2004_v8 = vadd.f32 %v6605_v10, %v6604_v20  ;;  %v6607_v36 = vld [vmem:[#allocation59_spill] sm:$0xff]  ;;  %v6608_v9 = vld [vmem:[#allocation10_spill] sm:$0xff]  ;;  %v6609_v61 = vld [vmem:[#allocation37_spill] sm:$0xff] }
 0x1ff   : > { %v4602_v53 = vpop.f32.mrf.mxu0  ;;  %v2513_v12 = vpop.f32.mrf.mxu1  ;;  %v2309_v55 = vadd.f32 %v6606_v63, %v2002_v60  ;;  %v2003_v24 = vadd.f32 %v6609_v61, %v6608_v9  ;;  %v6610_v32 = vld [vmem:[#allocation34_spill] sm:$0xff] }
 0x200   : > { %v2976_v38 = vadd.f32 %v6591_v28, %v2912_v7  ;;  %v2915_v4 = vadd.f32 %v4602_v53, %v2609_v29  ;;  %v2608_v26 = vadd.f32 %v2513_v12, %v2302_v39  ;;  %3009 = vst [vmem:[%s6248_s25 + $0x78] sm:$0xff] %v2977_v43  ;;  %v2308_v43 = vadd.f32 %v6610_v32, %v2001_v33  ;;  %v6611_v7 = vld [vmem:[#allocation60_spill] sm:$0xff]  ;;  %v6614_v28 = vld [vmem:[#allocation39_spill] sm:$0xff] }
 0x201   : > { %v2819_v19 = vpop.f32.mrf.mxu0  ;;  %v4525_v13 = vpop.f32.mrf.mxu1  ;;  %v2311_v53 = vadd.f32 %v6612_v14, %v2004_v8  ;;  %v6628_v8 = vld [vmem:[#allocation44_spill] sm:$0xff] }
 0x202   : > { %v2979_v48 = vadd.f32 %v6595_v41, %v2915_v4  ;;  %v2914_v49 = vadd.f32 %v2819_v19, %v2608_v26  ;;  %v2611_v54 = vadd.f32 %v4525_v13, %v2305_v56  ;;  %3008 = vst [vmem:[%s6248_s25 + $0x70] sm:$0xff] %v2976_v38  ;;  %v6613_v56 = vld [vmem:[#allocation11_spill] sm:$0xff]  ;;  %v6615_v4 = vld [vmem:[#allocation61_spill] sm:$0xff]  ;;  %v2310_v19 = vadd.f32 %v6616_v52, %v2003_v24  ;;  %v6632_v24 = vld [vmem:[#allocation46_spill] sm:$0xff] }
 0x203   : > { %v4605_v45 = vpop.f32.mrf.mxu0  ;;  %v2523_v35 = vpop.f32.mrf.mxu1  ;;  %v2006_v38 = vadd.f32 %v6614_v28, %v6613_v56  ;;  %v6618_v41 = vld [vmem:[#allocation41_spill] sm:$0xff]  ;;  %v6636_v56 = vld [vmem:[#allocation48_spill] sm:$0xff] }
 0x204   : > { %v2978_v16 = vadd.f32 %v6599_v21, %v2914_v49  ;;  %v2917_v18 = vadd.f32 %v4605_v45, %v2611_v54  ;;  %v2610_v17 = vadd.f32 %v2523_v35, %v2304_v3  ;;  %3011 = vst [vmem:[%s6248_s25 + $0x88] sm:$0xff] %v2979_v48  ;;  %v6617_v3 = vld [vmem:[#allocation12_spill] sm:$0xff]  ;;  %v6619_v49 = vld [vmem:[#allocation62_spill] sm:$0xff]  ;;  %v6620_v45 = vld [vmem:[#allocation13_spill] sm:$0xff] }
 0x205   : > { %v2829_v0 = vpop.f32.mrf.mxu0  ;;  %v4528_v37 = vpop.f32.mrf.mxu1  ;;  %v2005_v48 = vadd.f32 %v6618_v41, %v6617_v3  ;;  %v6621_v35 = vld [vmem:[#allocation43_spill] sm:$0xff]  ;;  %v6622_v21 = vld [vmem:[#allocation40_spill] sm:$0xff] }
 0x206   : > { %v2981_v31 = vadd.f32 %v6603_v62, %v2917_v18  ;;  %v2916_v58 = vadd.f32 %v2829_v0, %v2610_v17  ;;  %v2613_v34 = vadd.f32 %v4528_v37, %v2307_v42  ;;  %3010 = vst [vmem:[%s6248_s25 + $0x80] sm:$0xff] %v2978_v16  ;;  %v2008_v6 = vadd.f32 %v6621_v35, %v6620_v45  ;;  %v6623_v18 = vld [vmem:[#allocation63_spill] sm:$0xff]  ;;  %v6624_v0 = vld [vmem:[#allocation14_spill] sm:$0xff]  ;;  %v6625_v37 = vld [vmem:[#allocation45_spill] sm:$0xff] }
 0x207   : > { %v4608_v1 = vpop.f32.mrf.mxu0  ;;  %v2533_v50 = vpop.f32.mrf.mxu1  ;;  %v2313_v16 = vadd.f32 %v6622_v21, %v2006_v38  ;;  %v2007_v27 = vadd.f32 %v6625_v37, %v6624_v0  ;;  %v6626_v62 = vld [vmem:[#allocation42_spill] sm:$0xff]  ;;  %v6637_v38 = vld [vmem:[#allocation67_spill] sm:$0xff] }
 0x208   : > { %v2980_v51 = vadd.f32 %v6607_v36, %v2916_v58  ;;  %v2919_v25 = vadd.f32 %v4608_v1, %v2613_v34  ;;  %v2612_v39 = vadd.f32 %v2533_v50, %v2306_v40  ;;  %3013 = vst [vmem:[%s6248_s25 + $0x98] sm:$0xff] %v2981_v31  ;;  %v2312_v31 = vadd.f32 %v6626_v62, %v2005_v48  ;;  %v6627_v58 = vld [vmem:[#allocation64_spill] sm:$0xff]  ;;  %v6630_v36 = vld [vmem:[#allocation47_spill] sm:$0xff] }
 0x209   : > { %v2839_v2 = vpop.f32.mrf.mxu0  ;;  %v4531_v23 = vpop.f32.mrf.mxu1  ;;  %v2315_v1 = vadd.f32 %v6628_v8, %v2008_v6 }
 0x20a   : > { %v2983_v29 = vadd.f32 %v6611_v7, %v2919_v25  ;;  %v2918_v15 = vadd.f32 %v2839_v2, %v2612_v39  ;;  %v2615_v30 = vadd.f32 %v4531_v23, %v2309_v55  ;;  %3012 = vst [vmem:[%s6248_s25 + $0x90] sm:$0xff] %v2980_v51  ;;  %v6629_v55 = vld [vmem:[#allocation15_spill] sm:$0xff]  ;;  %v6631_v25 = vld [vmem:[#allocation65_spill] sm:$0xff]  ;;  %v2314_v2 = vadd.f32 %v6632_v24, %v2007_v27 }
 0x20b   : > { %v4611_v12 = vpop.f32.mrf.mxu0  ;;  %v2543_v5 = vpop.f32.mrf.mxu1  ;;  %v2010_v51 = vadd.f32 %v6630_v36, %v6629_v55  ;;  %v6634_v7 = vld [vmem:[#allocation49_spill] sm:$0xff] }
 0x20c   : > { %v2982_v26 = vadd.f32 %v6615_v4, %v2918_v15  ;;  %v2921_v46 = vadd.f32 %v4611_v12, %v2615_v30  ;;  %v2614_v57 = vadd.f32 %v2543_v5, %v2308_v43  ;;  %3015 = vst [vmem:[%s6248_s25 + $0xa8] sm:$0xff] %v2983_v29  ;;  %v6633_v43 = vld [vmem:[#allocation16_spill] sm:$0xff]  ;;  %v6635_v15 = vld [vmem:[#allocation66_spill] sm:$0xff] }
 0x20d   : > { %v2849_v13 = vpop.f32.mrf.mxu0  ;;  %v4534_v22 = vpop.f32.mrf.mxu1  ;;  %v2009_v29 = vadd.f32 %v6634_v7, %v6633_v43  ;;  %v2317_v28 = vadd.f32 %v6636_v56, %v2010_v51 }
 0x20e   : > { %v2985_v54 = vadd.f32 %v6619_v49, %v2921_v46  ;;  %v2920_v11 = vadd.f32 %v2849_v13, %v2614_v57  ;;  %v2617_v42 = vadd.f32 %v4534_v22, %v2311_v53  ;;  %3014 = vst [vmem:[%s6248_s25 + $0xa0] sm:$0xff] %v2982_v26  ;;  %v6639_v22 = vld [vmem:[#allocation68_spill] sm:$0xff] }
 0x20f   : > { %v4614_v47 = vpop.f32.mrf.mxu0  ;;  %v2553_v60 = vpop.f32.mrf.mxu1 }
 0x210   : > { %v2984_v17 = vadd.f32 %v6623_v18, %v2920_v11  ;;  %v2923_v44 = vadd.f32 %v4614_v47, %v2617_v42  ;;  %v2616_v40 = vadd.f32 %v2553_v60, %v2310_v19  ;;  %3017 = vst [vmem:[%s6248_s25 + $0xb8] sm:$0xff] %v2985_v54  ;;  %v6638_v19 = vld [vmem:[#allocation50_spill] sm:$0xff]  ;;  %v6640_v11 = vld [vmem:[#allocation69_spill] sm:$0xff] }
 0x211   : > { %v2859_v59 = vpop.f32.mrf.mxu0  ;;  %v4537_v33 = vpop.f32.mrf.mxu1  ;;  %v2316_v13 = vadd.f32 %v6638_v19, %v2009_v29  ;;  %v6641_v47 = vld [vmem:[#allocation70_spill] sm:$0xff] }
 0x212   : > { %v2987_v34 = vadd.f32 %v6627_v58, %v2923_v44  ;;  %v2922_v20 = vadd.f32 %v2859_v59, %v2616_v40  ;;  %v2619_v10 = vadd.f32 %v4537_v33, %v2313_v16  ;;  %3016 = vst [vmem:[%s6248_s25 + $0xb0] sm:$0xff] %v2984_v17  ;;  %v6642_v16 = vld [vmem:[#allocation71_spill] sm:$0xff] }
 0x213   : > { %v4617_v50 = vpop.f32.mrf.mxu0  ;;  %v2563_v63 = vpop.f32.mrf.mxu1 }
 0x214   : > { %v2986_v39 = vadd.f32 %v6631_v25, %v2922_v20  ;;  %v2925_v9 = vadd.f32 %v4617_v50, %v2619_v10  ;;  %v2618_v61 = vadd.f32 %v2563_v63, %v2312_v31  ;;  %3019 = vst [vmem:[%s6248_s25 + $0xc8] sm:$0xff] %v2987_v34 }
 0x215   : > { %v2869_v23 = vpop.f32.mrf.mxu0  ;;  %v4540_v32 = vpop.f32.mrf.mxu1 }
 0x216   : > { %v2989_v30 = vadd.f32 %v6635_v15, %v2925_v9  ;;  %v2924_v14 = vadd.f32 %v2869_v23, %v2618_v61  ;;  %v2621_v53 = vadd.f32 %v4540_v32, %v2315_v1  ;;  %3018 = vst [vmem:[%s6248_s25 + $0xc0] sm:$0xff] %v2986_v39 }
 0x217   : > { %v4620_v12 = vpop.f32.mrf.mxu0  ;;  %v2573_v5 = vpop.f32.mrf.mxu1 }
 0x218   : > { %v2988_v4 = vadd.f32 %v6637_v38, %v2924_v14  ;;  %v2927_v26 = vadd.f32 %v4620_v12, %v2621_v53  ;;  %v2620_v46 = vadd.f32 %v2573_v5, %v2314_v2  ;;  %3021 = vst [vmem:[%s6248_s25 + $0xd8] sm:$0xff] %v2989_v30 }
 0x219   : > { %v2879_v57 = vpop.f32.mrf.mxu0  ;;  %v4543_v52 = vpop.f32.mrf.mxu1 }
 0x21a   : > { %v2991_v3 = vadd.f32 %v6639_v22, %v2927_v26  ;;  %v2926_v41 = vadd.f32 %v2879_v57, %v2620_v46  ;;  %v2623_v48 = vadd.f32 %v4543_v52, %v2317_v28  ;;  %3020 = vst [vmem:[%s6248_s25 + $0xd0] sm:$0xff] %v2988_v4 }
 0x21b   : > { %v4623_v49 = vpop.f32.mrf.mxu0  ;;  %v2583_v54 = vpop.f32.mrf.mxu1 }
 0x21c   : > { %v2990_v42 = vadd.f32 %v6640_v11, %v2926_v41  ;;  %v2929_v45 = vadd.f32 %v4623_v49, %v2623_v48  ;;  %v2622_v35 = vadd.f32 %v2583_v54, %v2316_v13  ;;  %3023 = vst [vmem:[%s6248_s25 + $0xe8] sm:$0xff] %v2991_v3 }
 0x21d   : > { %v2889_v6 = vpop.f32.mrf.mxu0 }
 0x21e   : > { %v2993_v60 = vadd.f32 %v6641_v47, %v2929_v45  ;;  %v2928_v21 = vadd.f32 %v2889_v6, %v2622_v35  ;;  %3022 = vst [vmem:[%s6248_s25 + $0xe0] sm:$0xff] %v2990_v42 }
 0x220   : > { %v2992_v18 = vadd.f32 %v6642_v16, %v2928_v21  ;;  %3025 = vst [vmem:[%s6248_s25 + $0xf8] sm:$0xff] %v2993_v60 }
 0x222   : > { %3024 = vst [vmem:[%s6248_s25 + $0xf0] sm:$0xff] %v2992_v18 }
 0x223 PF: > { %s13_s14 = sadd.s32 1, %s4703_s14   ;;  %s6643_s12 = smov %s4699_s13 }
 0x224   : > { %p10_p5 = scmp.ge.s32.totalorder %s13_s14, 4   ;;  %s6644_s13 = smov %s6646_s15 }
 0x226   :  { %12 = sbr.rel (!%p10_p5) target bundleno = 2 (0x2), region = 78 }

// kernel: basic_block_forward.2
= control target key start
LH: loop header
LB: loop body
LE: loop exit
PB: predicated region body
PF: predicated region fallthrough
CT: control target
= control target key end

     0   :  { %s5125_s24 = smov 0   ;;  %s5127_s25 = smov 0   ;;  %s7159_s0 = inlined_call_operand.vmem [shape: f32[2,1,18,18,4], index: 0, kind: input, shape index: {}]   ;;  %s7160_s1 = inlined_call_operand.vmem [shape: f32[9,4,128], index: 1, kind: input, shape index: {}]   ;;  %s7161_s2 = inlined_call_operand.vmem [shape: f32[1,4], index: 2, kind: input, shape index: {}]   ;;  %s7162_s3 = inlined_call_operand.vmem [shape: f32[1,4], index: 3, kind: input, shape index: {}]   ;;  %s7163_s4 = inlined_call_operand.vmem [shape: f32[1,1,18,18,1], index: 4, kind: input, shape index: {}]   ;;  %s7164_s5 = inlined_call_operand.vmem [shape: f32[1,128], index: 5, kind: input, shape index: {}]   ;;  %s7165_s6 = inlined_call_operand.vmem [shape: f32[1,128], index: 6, kind: input, shape index: {}]   ;;  %s7166_s7 = inlined_call_operand.vmem [shape: f32[2,256,128], index: 7, kind: output, shape index: {}]  }
   0x1   :  { %s5129_s26 = smov 0  }
   0x2 LB: > { %s29_s27 = sadd.s32 1, %s5078_s25  ;;  %p3965_p0 = scmp.ge.s32.totalorder %s5082_s26, 1  ;;  %s5082_s26 = sphi %s5129_s26, %s17_s26   ;;  %s5078_s25 = sphi %s5127_s25, %s7486_s25   ;;  %s5074_s24 = sphi %s5125_s24, %s7485_s24  }
   0x3   : > { %p31_p1 = scmp.ge.s32.totalorder %s29_s27, 2  ;;  %p276_p2 = scmp.lt.s32.totalorder %s5082_s26, 3 }
   0x5   : > { %s7488_s27 = smov (%p31_p1, %s29_s27), 0  ;;  %p277_p3 = pnand %p3965_p0, %p276_p2 }
   0x7   : > { %280 = sbr.rel (%p277_p3) target bundleno = 696 (0x2b8), region = 48 }
   0xc   : > { %v372_v0 = vld [vmem:[%s7163_s4 + $0xd0] sm:$0x3]  ;;  %v370_v1 = vld [vmem:[%s7163_s4 + $0xc0] sm:$0xff]  ;;  %v5084_v2 = vmov 0   ;;  %v371_v3 = vld [vmem:[%s7163_s4 + $0xc8] sm:$0xff]  ;;  %vm1149_vm0 = vcmask 1043456  }
   0xd   : > { %5057 = vset.pattern.permute.xlu1 %v5084_v2  ;;  %5056 = vset.pattern.permute.xlu0 %v5084_v2  ;;  %v346_v4 = vld [vmem:[%s7163_s4] sm:$0xff]  ;;  %v347_v5 = vld [vmem:[%s7163_s4 + $0x8] sm:$0xff]  ;;  %v348_v6 = vld [vmem:[%s7163_s4 + $0x10] sm:$0x3]  ;;  %p321_p4 = scmp.lt.s32.totalorder %s5074_s24, 1  ;;  %vm1001_vm1 = vcmask 1046528  }
   0xe   : > { %760 = vperm.xlu1 %5057, %v372_v0   ;;  %750 = vperm.xlu0 %5056, %v370_v1   ;;  %v373_v7 = vld [vmem:[%s7163_s4 + $0xd8] sm:$0xff]  ;;  %v374_v8 = vld [vmem:[%s7163_s4 + $0xe0] sm:$0xff]  ;;  %v375_v9 = vld [vmem:[%s7163_s4 + $0xe8] sm:$0x3]  ;;  %vm1084_vm2 = vcmask 31744   ;;  %vm1670_vm3 = vcmask 1045504  }
   0xf   : > { %v349_v10 = vld [vmem:[%s7163_s4 + $0x18] sm:$0xff]  ;;  %v350_v11 = vld [vmem:[%s7163_s4 + $0x20] sm:$0xff]  ;;  %v351_v12 = vld [vmem:[%s7163_s4 + $0x28] sm:$0x3]  ;;  %s7490_s24 = smov (!%p321_p4, %s5074_s24), 1 }
  0x10   : > { %v3971_v13 = vld [vmem:[%s7160_s1 + $0x4] sm:$0xf]  ;;  %v376_v14 = vld [vmem:[%s7163_s4 + $0xf0] sm:$0xff]  ;;  %v377_v15 = vld [vmem:[%s7163_s4 + $0xf8] sm:$0xff]  ;;  %s5030_s28 = smul.u32 432, %s7490_s24  ;;  %s4280_s14 = sshll.u32 %s7490_s24, 8 }
  0x11   : > { %5028 = vmatprep.subr.msk.mxu1 %vm1149_vm0, %v3971_v13  ;;  %4578 = vmatprep.subr.msk.mxu0 %vm1149_vm0, %v3971_v13  ;;  %v378_v16 = vld [vmem:[%s7163_s4 + $0x100] sm:$0x3]  ;;  %v352_v17 = vld [vmem:[%s7163_s4 + $0x30] sm:$0xff]  ;;  %v353_v18 = vld [vmem:[%s7163_s4 + $0x38] sm:$0xff]  ;;  %s6979_s16 = scalar_lea.vmem %s7166_s7, %s4280_s14 }
  0x12   : > { %755 = vperm.xlu0 %5056, %v371_v3   ;;  %630 = vperm.xlu1 %5057, %v346_v4   ;;  %v354_v19 = vld [vmem:[%s7163_s4 + $0x40] sm:$0x3]  ;;  %v379_v20 = vld [vmem:[%s7163_s4 + $0x108] sm:$0xff]  ;;  %v380_v21 = vld [vmem:[%s7163_s4 + $0x110] sm:$0xff]  ;;  %s5336_s8 = scalar_lea.vmem %s7159_s0, %s5030_s28 }
  0x13   : > { %5029 = vmatpush3.msk.msra.mxu1 %vm1149_vm0, %v3971_v13  ;;  %4579 = vmatpush3.msk.msra.mxu0 %vm1149_vm0, %v3971_v13  ;;  %v381_v22 = vld [vmem:[%s7163_s4 + $0x118] sm:$0x3]  ;;  %v355_v23 = vld [vmem:[%s7163_s4 + $0x48] sm:$0xff]  ;;  %v356_v24 = vld [vmem:[%s7163_s4 + $0x50] sm:$0xff] }
  0x14   : > { %v357_v25 = vld [vmem:[%s7163_s4 + $0x58] sm:$0x3]  ;;  %v382_v26 = vld [vmem:[%s7163_s4 + $0x120] sm:$0xff]  ;;  %v383_v27 = vld [vmem:[%s7163_s4 + $0x128] sm:$0xff] }
  0x15   : > { %v384_v28 = vld [vmem:[%s7163_s4 + $0x130] sm:$0x3]  ;;  %v358_v29 = vld [vmem:[%s7163_s4 + $0x60] sm:$0xff]  ;;  %v359_v30 = vld [vmem:[%s7163_s4 + $0x68] sm:$0xff] }
  0x16   : > { %635 = vperm.xlu0 %5056, %v347_v5   ;;  %640 = vperm.xlu1 %5057, %v348_v6   ;;  %v360_v31 = vld [vmem:[%s7163_s4 + $0x70] sm:$0x3]  ;;  %v385_v32 = vld [vmem:[%s7163_s4 + $0x138] sm:$0xff]  ;;  %v386_v33 = vld [vmem:[%s7163_s4 + $0x140] sm:$0xff] }
  0x17   : > { %v387_v34 = vld [vmem:[%s7163_s4 + $0x148] sm:$0x3]  ;;  %v361_v35 = vld [vmem:[%s7163_s4 + $0x78] sm:$0xff]  ;;  %v5257_v36 = vld [vmem:[%s7160_s1] sm:$0xf] }
  0x18   : > { %4628 = vmatprep.subr.msk.mxu1 %vm1149_vm0, %v5257_v36  ;;  %v362_v37 = vld [vmem:[%s7163_s4 + $0x80] sm:$0xff]  ;;  %v363_v38 = vld [vmem:[%s7163_s4 + $0x88] sm:$0x3]  ;;  %v388_v40 = vld [vmem:[%s7163_s4 + $0x150] sm:$0xff] }
  0x19   : > { %v5270_v39 = vld [vmem:[%s7160_s1 + $0x8] sm:$0xf]  ;;  %v389_v41 = vld [vmem:[%s7163_s4 + $0x158] sm:$0xff]  ;;  %v390_v42 = vld [vmem:[%s7163_s4 + $0x160] sm:$0x3] }
  0x1a   : > { %765 = vperm.xlu0 %5056, %v373_v7   ;;  %770 = vperm.xlu1 %5057, %v374_v8   ;;  %v364_v43 = vld [vmem:[%s7163_s4 + $0x90] sm:$0xff]  ;;  %v365_v44 = vld [vmem:[%s7163_s4 + $0x98] sm:$0xff]  ;;  %v366_v45 = vld [vmem:[%s7163_s4 + $0xa0] sm:$0x3] }
  0x1b   : > { %4678 = vmatprep.subr.msk.mxu0 %vm1149_vm0, %v5270_v39  ;;  %v391_v46 = vld [vmem:[%s7163_s4 + $0x168] sm:$0xff]  ;;  %v392_v47 = vld [vmem:[%s7163_s4 + $0x170] sm:$0xff]  ;;  %v393_v48 = vld [vmem:[%s7163_s4 + $0x178] sm:$0x3] }
  0x1c   : > { %v367_v49 = vld [vmem:[%s7163_s4 + $0xa8] sm:$0xff]  ;;  %v368_v50 = vld [vmem:[%s7163_s4 + $0xb0] sm:$0xff]  ;;  %v369_v51 = vld [vmem:[%s7163_s4 + $0xb8] sm:$0x3] }
  0x1d   : > { %v394_v52 = vld [vmem:[%s7163_s4 + $0x180] sm:$0xff]  ;;  %v395_v53 = vld [vmem:[%s7163_s4 + $0x188] sm:$0xff]  ;;  %v396_v54 = vld [vmem:[%s7163_s4 + $0x190] sm:$0x3] }
  0x1e   : > { %775 = vperm.xlu0 %5056, %v375_v9   ;;  %645 = vperm.xlu1 %5057, %v349_v10   ;;  %v397_v55 = vld [vmem:[%s7163_s4 + $0x198] sm:$0xff]  ;;  %v398_v56 = vld [vmem:[%s7163_s4 + $0x1a0] sm:$0xff]  ;;  %v399_v57 = vld [vmem:[%s7163_s4 + $0x1a8] sm:$0x3] }
  0x1f   : > { %v5341_v58 = vld [vmem:[%s7161_s2] ss:$0 sm:$0xff]  ;;  %v426_v59 = vld [vmem:[%s5336_s8 + $0xd0] sm:$0x3]  ;;  %v425_v61 = vld [vmem:[%s5336_s8 + $0xc8] sm:$0xff] }
  0x20   : > { %v424_v60 = vld [vmem:[%s5336_s8 + $0xc0] sm:$0xff]  ;;  %v486_v62 = vmul.f32 %v5341_v58, %v426_v59  ;;  %v485_v2 = vmul.f32 %v5341_v58, %v425_v61  ;;  %v401_v3 = vld [vmem:[%s5336_s8 + $0x8] sm:$0xff]  ;;  %v402_v4 = vld [vmem:[%s5336_s8 + $0x10] sm:$0x3] }
  0x21   : > { %v484_v63 = vmul.f32 %v5341_v58, %v424_v60  ;;  %v5351_v0 = vld [vmem:[%s7162_s3] ss:$0 sm:$0xff]  ;;  %v461_v9 = vmul.f32 %v5341_v58, %v401_v3  ;;  %v462_v10 = vmul.f32 %v5341_v58, %v402_v4  ;;  %v5409_v59 = vld [vmem:[%s7160_s1 + $0xc] sm:$0xf] }
  0x22   : > { %650 = vperm.xlu0 %5056, %v350_v11   ;;  %655 = vperm.xlu1 %5057, %v351_v12   ;;  %v400_v1 = vld [vmem:[%s5336_s8] sm:$0xff]  ;;  %v546_v5 = vadd.f32 %v5351_v0, %v486_v62  ;;  %v545_v8 = vadd.f32 %v5351_v0, %v485_v2  ;;  %v427_v11 = vld [vmem:[%s5336_s8 + $0xd8] sm:$0xff] }
  0x23   : > { %v544_v6 = vadd.f32 %v5351_v0, %v484_v63  ;;  %v460_v7 = vmul.f32 %v5341_v58, %v400_v1  ;;  %v428_v12 = vld [vmem:[%s5336_s8 + $0xe0] sm:$0xff] }
  0x24   : > { %v600_v13 = vmax.f32 %v546_v5, 0.0 }
  0x26   : > { %780 = vperm.xlu0 %5056, %v376_v14   ;;  %785 = vperm.xlu1 %5057, %v377_v15   ;;  %v598_v14 = vmax.f32 %v544_v6, 0.0  ;;  %v520_v15 = vadd.f32 %v5351_v0, %v460_v7 }
  0x2a   : > { %790 = vperm.xlu0 %5056, %v378_v16   ;;  %660 = vperm.xlu1 %5057, %v352_v17  }
  0x2e   : > { %665 = vperm.xlu0 %5056, %v353_v18   ;;  %670 = vperm.xlu1 %5057, %v354_v19   ;;  %v487_v18 = vmul.f32 %v5341_v58, %v427_v11  ;;  %v488_v19 = vmul.f32 %v5341_v58, %v428_v12  ;;  %v432_v11 = vld [vmem:[%s5336_s8 + $0x100] sm:$0x3] }
  0x32   : > { %795 = vperm.xlu0 %5056, %v379_v20   ;;  %800 = vperm.xlu1 %5057, %v380_v21   ;;  %v599_v20 = vmax.f32 %v545_v8, 0.0  ;;  %v521_v21 = vadd.f32 %v5351_v0, %v461_v9 }
  0x36   : > { %805 = vperm.xlu0 %5056, %v381_v22   ;;  %675 = vperm.xlu1 %5057, %v355_v23   ;;  %v522_v22 = vadd.f32 %v5351_v0, %v462_v10  ;;  %v429_v23 = vld [vmem:[%s5336_s8 + $0xe8] sm:$0x3] }
  0x3a   : > { %680 = vperm.xlu0 %5056, %v356_v24   ;;  %685 = vperm.xlu1 %5057, %v357_v25  }
  0x3e   : > { %810 = vperm.xlu0 %5056, %v382_v26   ;;  %815 = vperm.xlu1 %5057, %v383_v27   ;;  %v574_v26 = vmax.f32 %v520_v15, 0.0  ;;  %v403_v27 = vld [vmem:[%s5336_s8 + $0x18] sm:$0xff] }
  0x42   : > { %820 = vperm.xlu0 %5056, %v384_v28   ;;  %690 = vperm.xlu1 %5057, %v358_v29   ;;  %v404_v28 = vld [vmem:[%s5336_s8 + $0x20] sm:$0xff] }
  0x46   : > { %695 = vperm.xlu0 %5056, %v359_v30   ;;  %700 = vperm.xlu1 %5057, %v360_v31   ;;  %v547_v31 = vadd.f32 %v5351_v0, %v487_v18 }
  0x4a   : > { %825 = vperm.xlu0 %5056, %v385_v32   ;;  %830 = vperm.xlu1 %5057, %v386_v33   ;;  %v548_v32 = vadd.f32 %v5351_v0, %v488_v19  ;;  %v489_v33 = vmul.f32 %v5341_v58, %v429_v23 }
  0x4e   : > { %835 = vperm.xlu0 %5056, %v387_v34   ;;  %705 = vperm.xlu1 %5057, %v361_v35   ;;  %v575_v35 = vmax.f32 %v521_v21, 0.0  ;;  %v492_v21 = vmul.f32 %v5341_v58, %v432_v11 }
  0x52   : > { %710 = vperm.xlu0 %5056, %v362_v37   ;;  %715 = vperm.xlu1 %5057, %v363_v38   ;;  %v576_v37 = vmax.f32 %v522_v22, 0.0  ;;  %v405_v38 = vld [vmem:[%s5336_s8 + $0x28] sm:$0x3] }
  0x56   : > { %840 = vperm.xlu0 %5056, %v388_v40   ;;  %845 = vperm.xlu1 %5057, %v389_v41   ;;  %v463_v40 = vmul.f32 %v5341_v58, %v403_v27  ;;  %v464_v41 = vmul.f32 %v5341_v58, %v404_v28  ;;  %v407_v28 = vld [vmem:[%s5336_s8 + $0x38] sm:$0xff] }
  0x58   : > { %v523_v63 = vadd.f32 %v5351_v0, %v463_v40  ;;  %v524_v4 = vadd.f32 %v5351_v0, %v464_v41  ;;  %v433_v41 = vld [vmem:[%s5336_s8 + $0x108] sm:$0xff] }
  0x5a   : > { %850 = vperm.xlu0 %5056, %v390_v42   ;;  %720 = vperm.xlu1 %5057, %v364_v43   ;;  %v578_v19 = vmax.f32 %v524_v4, 0.0 }
  0x5e   : > { %725 = vperm.xlu0 %5056, %v365_v44   ;;  %730 = vperm.xlu1 %5057, %v366_v45  }
  0x62   : > { %855 = vperm.xlu0 %5056, %v391_v46   ;;  %860 = vperm.xlu1 %5057, %v392_v47  }
  0x66   : > { %865 = vperm.xlu0 %5056, %v393_v48   ;;  %735 = vperm.xlu1 %5057, %v367_v49   ;;  %v601_v48 = vmax.f32 %v547_v31, 0.0  ;;  %v602_v49 = vmax.f32 %v548_v32, 0.0 }
  0x6a   : > { %740 = vperm.xlu0 %5056, %v368_v50   ;;  %745 = vperm.xlu1 %5057, %v369_v51   ;;  %v549_v50 = vadd.f32 %v5351_v0, %v489_v33  ;;  %v465_v51 = vmul.f32 %v5341_v58, %v405_v38  ;;  %v467_v38 = vmul.f32 %v5341_v58, %v407_v28 }
  0x6c   : > { %v603_v3 = vmax.f32 %v549_v50, 0.0  ;;  %v525_v10 = vadd.f32 %v5351_v0, %v465_v51 }
  0x6e   : > { %870 = vperm.xlu0 %5056, %v394_v52   ;;  %875 = vperm.xlu1 %5057, %v395_v53  }
  0x72   : > { %880 = vperm.xlu0 %5056, %v396_v54   ;;  %885 = vperm.xlu1 %5057, %v397_v55  }
  0x76   : > { %890 = vperm.xlu0 %5056, %v398_v56   ;;  %895 = vperm.xlu1 %5057, %v399_v57   ;;  %v430_v56 = vld [vmem:[%s5336_s8 + $0xf0] sm:$0xff]  ;;  %v431_v57 = vld [vmem:[%s5336_s8 + $0xf8] sm:$0xff] }
  0x77   : > { %v490_v5 = vmul.f32 %v5341_v58, %v430_v56  ;;  %v491_v6 = vmul.f32 %v5341_v58, %v431_v57  ;;  %v493_v56 = vmul.f32 %v5341_v58, %v433_v41 }
  0x79   : > { %v551_v27 = vadd.f32 %v5351_v0, %v491_v6 }
  0x89   : > { %v761_v16 = vpop.permute.xlu1 %760  ;;  %v751_v17 = vpop.permute.xlu0 %750 }
  0x8a   : > { %v5371_v24 = vmul.f32 %v761_v16, %v600_v13  ;;  %v5373_v25 = vmul.f32 %v751_v17, %v598_v14  ;;  %v577_v13 = vmax.f32 %v523_v63, 0.0  ;;  %v406_v16 = vld [vmem:[%s5336_s8 + $0x30] sm:$0xff] }
  0x8c   : > { %v1045_v42 = vrot.slane %v5371_v24, 1  ;;  %v1042_v44 = vrot.slane %v5373_v25, 1 }
  0x8d   : > { %v756_v29 = vpop.permute.xlu0 %755  ;;  %v631_v30 = vpop.permute.xlu1 %630 }
  0x8e   : > { %v5380_v34 = vmul.f32 %v756_v29, %v599_v20  ;;  %v5386_v43 = vmul.f32 %v631_v30, %v574_v26  ;;  %v550_v20 = vadd.f32 %v5351_v0, %v490_v5  ;;  %v579_v26 = vmax.f32 %v525_v10, 0.0  ;;  %v408_v29 = vld [vmem:[%s5336_s8 + $0x40] sm:$0x3] }
  0x8f   : > { %v468_v40 = vmul.f32 %v5341_v58, %v408_v29 }
  0x90   : > { %v1043_v45 = vrot.slane %v5380_v34, 1  ;;  %v1002_v61 = vrot.slane %v5386_v43, 1 }
  0x91   : > { %v636_v46 = vpop.permute.xlu0 %635  ;;  %v641_v47 = vpop.permute.xlu1 %640  ;;  %v528_v63 = vadd.f32 %v5351_v0, %v468_v40 }
  0x92   : > { %v5392_v52 = vmul.f32 %v636_v46, %v575_v35  ;;  %v5394_v53 = vmul.f32 %v641_v47, %v576_v37  ;;  %v5397_v54 = vsel %vm1001_vm1, %v1042_v44, %v1043_v45  ;;  %v5400_v55 = vsel %vm1001_vm1, %v1043_v45, %v1045_v42  ;;  %v434_v47 = vld [vmem:[%s5336_s8 + $0x110] sm:$0xff] }
  0x93   : > { %7257 = vst [vmem:[#allocation2_spill] sm:$0xff] %v5397_v54  ;;  %7258 = vst [vmem:[#allocation3_spill] sm:$0xff] %v5400_v55  ;;  %4604 = vmatprep.mubr.msk.f32.mxu1 %vm1084_vm2, %v5397_v54  ;;  %v604_v35 = vmax.f32 %v550_v20, 0.0  ;;  %v552_v37 = vadd.f32 %v5351_v0, %v492_v21  ;;  %v605_v46 = vmax.f32 %v551_v27, 0.0  ;;  %v582_v20 = vmax.f32 %v528_v63, 0.0  ;;  %v419_v54 = vld [vmem:[%s5336_s8 + $0x98] sm:$0xff] }
  0x94   : > { %v1005_v60 = vrot.slane %v5394_v53, 1  ;;  %4605 = vmatmul.mubr.msk.f32.vlgmr.msra.gmra.mxu1 %vm1084_vm2, %v5400_v55  ;;  %v1003_v62 = vrot.slane %v5392_v52, 1  ;;  %v411_v27 = vld [vmem:[%s5336_s8 + $0x58] sm:$0x3] }
  0x95   : > { %v766_v1 = vpop.permute.xlu0 %765  ;;  %v771_v2 = vpop.permute.xlu1 %770  ;;  %4629 = vmatpush3.msk.msra.mxu1 %vm1149_vm0, %v5257_v36  ;;  %v5436_v36 = vld [vmem:[%s7160_s1 + $0x10] sm:$0xf] }
  0x96   : > { %v5422_v7 = vmul.f32 %v766_v1, %v601_v48  ;;  %v5424_v8 = vmul.f32 %v771_v2, %v602_v49  ;;  %v1004_v9 = vsel %vm1001_vm1, %v1002_v61, %v1003_v62  ;;  %4728 = vmatprep.subr.msk.mxu1 %vm1149_vm0, %v5409_v59  ;;  %v1006_v12 = vsel %vm1001_vm1, %v1003_v62, %v1005_v60  ;;  %v435_v2 = vld [vmem:[%s5336_s8 + $0x118] sm:$0x3] }
  0x97   : > { %4580 = vmatprep.mubr.msk.f32.mxu0 %vm1084_vm2, %v1004_v9  ;;  %v606_v61 = vmax.f32 %v552_v37, 0.0  ;;  %v527_v62 = vadd.f32 %v5351_v0, %v467_v38  ;;  %v494_v1 = vmul.f32 %v5341_v58, %v434_v47  ;;  %v471_v38 = vmul.f32 %v5341_v58, %v411_v27 }
  0x98   : > { %4581 = vmatmul.mubr.msk.f32.vlgmr.msra.gmra.mxu0 %vm1084_vm2, %v1006_v12  ;;  %v1047_v14 = vrot.slane %v5422_v7, 1  ;;  %v1048_v15 = vrot.slane %v5424_v8, 1  ;;  %v495_v12 = vmul.f32 %v5341_v58, %v435_v2 }
  0x99   : > { %v776_v17 = vpop.permute.xlu0 %775  ;;  %v646_v18 = vpop.permute.xlu1 %645  ;;  %4679 = vmatpush3.msk.msra.mxu0 %vm1149_vm0, %v5270_v39  ;;  %v466_v39 = vmul.f32 %v5341_v58, %v406_v16  ;;  %v581_v16 = vmax.f32 %v527_v62, 0.0  ;;  %v554_v21 = vadd.f32 %v5351_v0, %v494_v1  ;;  %v531_v1 = vadd.f32 %v5351_v0, %v471_v38  ;;  %v414_v38 = vld [vmem:[%s5336_s8 + $0x70] sm:$0x3] }
  0x9a   : > { %v5446_v22 = vmul.f32 %v776_v17, %v603_v3  ;;  %v5449_v23 = vsel %vm1001_vm1, %v1047_v14, %v1048_v15  ;;  %4778 = vmatprep.subr.msk.mxu0 %vm1149_vm0, %v5436_v36  ;;  %v5460_v31 = vmul.f32 %v646_v18, %v577_v13  ;;  %v409_v13 = vld [vmem:[%s5336_s8 + $0x48] sm:$0xff]  ;;  %v553_v17 = vadd.f32 %v5351_v0, %v493_v56 }
  0x9b   : > { %7259 = vst [vmem:[#allocation4_spill] sm:$0xff] %v5449_v23  ;;  %4607 = vmatprep.mubr.msk.f32.mxu1 %vm1084_vm2, %v5449_v23  ;;  %v526_v48 = vadd.f32 %v5351_v0, %v466_v39  ;;  %v469_v28 = vmul.f32 %v5341_v58, %v409_v13  ;;  %v608_v47 = vmax.f32 %v554_v21, 0.0  ;;  %v412_v21 = vld [vmem:[%s5336_s8 + $0x60] sm:$0xff] }
  0x9c   : > { %v1050_v30 = vrot.slane %v5446_v22, 1  ;;  %v1007_v50 = vrot.slane %v5460_v31, 1 }
  0x9d   : > { %v651_v32 = vpop.permute.xlu0 %650  ;;  %v656_v33 = vpop.permute.xlu1 %655  ;;  %v580_v9 = vmax.f32 %v526_v48, 0.0  ;;  %v436_v48 = vld [vmem:[%s5336_s8 + $0x120] sm:$0xff] }
  0x9e   : > { %v5466_v42 = vmul.f32 %v651_v32, %v578_v19  ;;  %v5468_v44 = vmul.f32 %v656_v33, %v579_v26  ;;  %v5471_v45 = vsel %vm1001_vm1, %v1048_v15, %v1050_v30  ;;  %v410_v26 = vld [vmem:[%s5336_s8 + $0x50] sm:$0xff]  ;;  %v555_v30 = vadd.f32 %v5351_v0, %v495_v12 }
  0x9f   : > { %7260 = vst [vmem:[#allocation5_spill] sm:$0xff] %v5471_v45  ;;  %4608 = vmatmul.mubr.msk.f32.gmra.mxu1 %vm1084_vm2, %v5471_v45  ;;  %v470_v37 = vmul.f32 %v5341_v58, %v410_v26  ;;  %v496_v2 = vmul.f32 %v5341_v58, %v436_v48 }
  0xa0   : > { %v1010_v49 = vrot.slane %v5468_v44, 1  ;;  %v1008_v51 = vrot.slane %v5466_v42, 1 }
  0xa1   : > { %v781_v57 = vpop.permute.xlu0 %780  ;;  %v786_v60 = vpop.permute.xlu1 %785  ;;  %v530_v63 = vadd.f32 %v5351_v0, %v470_v37  ;;  %v413_v37 = vld [vmem:[%s5336_s8 + $0x68] sm:$0xff] }
  0xa2   : > { %v5485_v3 = vmul.f32 %v781_v57, %v604_v35  ;;  %v5487_v4 = vmul.f32 %v786_v60, %v605_v46  ;;  %v5490_v5 = vsel %vm1001_vm1, %v1007_v50, %v1008_v51  ;;  %v5493_v6 = vsel %vm1001_vm1, %v1008_v51, %v1010_v49  ;;  %v437_v49 = vld [vmem:[%s5336_s8 + $0x128] sm:$0xff] }
  0xa3   : > { %7261 = vst [vmem:[#allocation6_spill] sm:$0xff] %v5490_v5  ;;  %7262 = vst [vmem:[#allocation7_spill] sm:$0xff] %v5493_v6  ;;  %4583 = vmatprep.mubr.msk.f32.mxu0 %vm1084_vm2, %v5490_v5  ;;  %v607_v35 = vmax.f32 %v553_v17, 0.0  ;;  %v529_v50 = vadd.f32 %v5351_v0, %v469_v28  ;;  %v609_v60 = vmax.f32 %v555_v30, 0.0  ;;  %v584_v28 = vmax.f32 %v530_v63, 0.0 }
  0xa4   : > { %4584 = vmatmul.mubr.msk.f32.gmra.mxu0 %vm1084_vm2, %v5493_v6  ;;  %v1052_v10 = vrot.slane %v5485_v3, 1  ;;  %v1053_v11 = vrot.slane %v5487_v4, 1  ;;  %v423_v6 = vld [vmem:[%s5336_s8 + $0xb8] sm:$0x3] }
  0xa5   : > { %v791_v14 = vpop.permute.xlu0 %790  ;;  %v661_v15 = vpop.permute.xlu1 %660 }
  0xa6   : > { %v5504_v18 = vmul.f32 %v791_v14, %v606_v61  ;;  %v5507_v19 = vsel %vm1001_vm1, %v1052_v10, %v1053_v11  ;;  %v5516_v39 = vmul.f32 %v661_v15, %v580_v9  ;;  %v497_v9 = vmul.f32 %v5341_v58, %v437_v49  ;;  %v438_v10 = vld [vmem:[%s5336_s8 + $0x130] sm:$0x3] }
  0xa7   : > { %7263 = vst [vmem:[#allocation8_spill] sm:$0xff] %v5507_v19  ;;  %4610 = vmatprep.mubr.msk.f32.mxu1 %vm1084_vm2, %v5507_v19  ;;  %v583_v15 = vmax.f32 %v529_v50, 0.0 }
  0xa8   : > { %v1055_v29 = vrot.slane %v5504_v18, 1  ;;  %v1012_v56 = vrot.slane %v5516_v39, 1 }
  0xa9   : > { %v666_v32 = vpop.permute.xlu0 %665  ;;  %v671_v33 = vpop.permute.xlu1 %670 }
  0xaa   : > { %v5521_v40 = vmul.f32 %v666_v32, %v581_v16  ;;  %v5523_v41 = vmul.f32 %v671_v33, %v582_v20  ;;  %v5526_v46 = vsel %vm1001_vm1, %v1053_v11, %v1055_v29  ;;  %v498_v20 = vmul.f32 %v5341_v58, %v438_v10  ;;  %v440_v10 = vld [vmem:[%s5336_s8 + $0x140] sm:$0xff] }
  0xab   : > { %7264 = vst [vmem:[#allocation9_spill] sm:$0xff] %v5526_v46  ;;  %4611 = vmatmul.mubr.msk.f32.gmra.mxu1 %vm1084_vm2, %v5526_v46  ;;  %v556_v29 = vadd.f32 %v5351_v0, %v496_v2  ;;  %v585_v33 = vmax.f32 %v531_v1, 0.0 }
  0xac   : > { %v1015_v51 = vrot.slane %v5523_v41, 1  ;;  %v1013_v57 = vrot.slane %v5521_v40, 1  ;;  %v558_v50 = vadd.f32 %v5351_v0, %v498_v20 }
  0xad   : > { %v796_v61 = vpop.permute.xlu0 %795  ;;  %v801_v62 = vpop.permute.xlu1 %800 }
  0xae   : > { %v5541_v11 = vmul.f32 %v796_v61, %v607_v35  ;;  %v5543_v12 = vmul.f32 %v801_v62, %v608_v47  ;;  %v5546_v13 = vsel %vm1001_vm1, %v1012_v56, %v1013_v57  ;;  %v5549_v14 = vsel %vm1001_vm1, %v1013_v57, %v1015_v51 }
  0xaf   : > { %7265 = vst [vmem:[#allocation10_spill] sm:$0xff] %v5546_v13  ;;  %7266 = vst [vmem:[#allocation11_spill] sm:$0xff] %v5549_v14  ;;  %4586 = vmatprep.mubr.msk.f32.mxu0 %vm1084_vm2, %v5546_v13  ;;  %v557_v35 = vadd.f32 %v5351_v0, %v497_v9  ;;  %v472_v47 = vmul.f32 %v5341_v58, %v412_v21  ;;  %v610_v57 = vmax.f32 %v556_v29, 0.0  ;;  %v439_v9 = vld [vmem:[%s5336_s8 + $0x138] sm:$0xff] }
  0xb0   : > { %4587 = vmatmul.mubr.msk.f32.gmra.mxu0 %vm1084_vm2, %v5549_v14  ;;  %v1057_v16 = vrot.slane %v5541_v11, 1  ;;  %v1058_v17 = vrot.slane %v5543_v12, 1  ;;  %v474_v61 = vmul.f32 %v5341_v58, %v414_v38  ;;  %v445_v14 = vld [vmem:[%s5336_s8 + $0x168] sm:$0xff]  ;;  %v447_v13 = vld [vmem:[%s5336_s8 + $0x178] sm:$0x3] }
  0xb1   : > { %v806_v26 = vpop.permute.xlu0 %805  ;;  %v676_v27 = vpop.permute.xlu1 %675  ;;  %v611_v2 = vmax.f32 %v557_v35, 0.0  ;;  %v500_v35 = vmul.f32 %v5341_v58, %v440_v10 }
  0xb2   : > { %v5560_v30 = vmul.f32 %v806_v26, %v609_v60  ;;  %v5563_v32 = vsel %vm1001_vm1, %v1057_v16, %v1058_v17  ;;  %v5572_v49 = vmul.f32 %v676_v27, %v583_v15  ;;  %v473_v60 = vmul.f32 %v5341_v58, %v413_v37  ;;  %v441_v37 = vld [vmem:[%s5336_s8 + $0x148] sm:$0x3] }
  0xb3   : > { %7267 = vst [vmem:[#allocation12_spill] sm:$0xff] %v5563_v32  ;;  %4613 = vmatprep.mubr.msk.f32.mxu1 %vm1084_vm2, %v5563_v32  ;;  %v532_v15 = vadd.f32 %v5351_v0, %v472_v47  ;;  %v612_v26 = vmax.f32 %v558_v50, 0.0  ;;  %v534_v29 = vadd.f32 %v5351_v0, %v474_v61  ;;  %v415_v61 = vld [vmem:[%s5336_s8 + $0x78] sm:$0xff] }
  0xb4   : > { %v1060_v48 = vrot.slane %v5560_v30, 1  ;;  %v1017_v20 = vrot.slane %v5572_v49, 1 }
  0xb5   : > { %v681_v51 = vpop.permute.xlu0 %680  ;;  %v686_v56 = vpop.permute.xlu1 %685 }
  0xb6   : > { %v5577_v62 = vmul.f32 %v681_v51, %v584_v28  ;;  %v5579_v63 = vmul.f32 %v686_v56, %v585_v33  ;;  %v5582_v1 = vsel %vm1001_vm1, %v1058_v17, %v1060_v48  ;;  %v533_v17 = vadd.f32 %v5351_v0, %v473_v60 }
  0xb7   : > { %7268 = vst [vmem:[#allocation13_spill] sm:$0xff] %v5582_v1  ;;  %4614 = vmatmul.mubr.msk.f32.gmra.mxu1 %vm1084_vm2, %v5582_v1  ;;  %v499_v33 = vmul.f32 %v5341_v58, %v439_v9  ;;  %v586_v51 = vmax.f32 %v532_v15, 0.0  ;;  %v501_v60 = vmul.f32 %v5341_v58, %v441_v37  ;;  %v560_v15 = vadd.f32 %v5351_v0, %v500_v35  ;;  %v417_v1 = vld [vmem:[%s5336_s8 + $0x88] sm:$0x3] }
  0xb8   : > { %v1020_v16 = vrot.slane %v5579_v63, 1  ;;  %v1018_v21 = vrot.slane %v5577_v62, 1  ;;  %v587_v10 = vmax.f32 %v533_v17, 0.0  ;;  %v475_v37 = vmul.f32 %v5341_v58, %v415_v61 }
  0xb9   : > { %v811_v27 = vpop.permute.xlu0 %810  ;;  %v816_v28 = vpop.permute.xlu1 %815  ;;  %v477_v32 = vmul.f32 %v5341_v58, %v417_v1  ;;  %v614_v61 = vmax.f32 %v560_v15, 0.0 }
  0xba   : > { %v5597_v38 = vmul.f32 %v811_v27, %v610_v57  ;;  %v5599_v47 = vmul.f32 %v816_v28, %v611_v2  ;;  %v5602_v48 = vsel %vm1001_vm1, %v1017_v20, %v1018_v21  ;;  %v5605_v50 = vsel %vm1001_vm1, %v1018_v21, %v1020_v16  ;;  %v416_v28 = vld [vmem:[%s5336_s8 + $0x80] sm:$0xff] }
  0xbb   : > { %7269 = vst [vmem:[#allocation14_spill] sm:$0xff] %v5602_v48  ;;  %7270 = vst [vmem:[#allocation15_spill] sm:$0xff] %v5605_v50  ;;  %4589 = vmatprep.mubr.msk.f32.mxu0 %vm1084_vm2, %v5602_v48  ;;  %v559_v16 = vadd.f32 %v5351_v0, %v499_v33  ;;  %v588_v27 = vmax.f32 %v534_v29, 0.0  ;;  %v476_v35 = vmul.f32 %v5341_v58, %v416_v28 }
  0xbc   : > { %4590 = vmatmul.mubr.msk.f32.gmra.mxu0 %vm1084_vm2, %v5605_v50  ;;  %v1062_v56 = vrot.slane %v5597_v38, 1  ;;  %v1063_v57 = vrot.slane %v5599_v47, 1  ;;  %v537_v15 = vadd.f32 %v5351_v0, %v477_v32 }
  0xbd   : > { %v821_v2 = vpop.permute.xlu0 %820  ;;  %v691_v9 = vpop.permute.xlu1 %690  ;;  %v613_v29 = vmax.f32 %v559_v16, 0.0 }
  0xbe   : > { %v5616_v20 = vmul.f32 %v821_v2, %v612_v26  ;;  %v5619_v21 = vsel %vm1001_vm1, %v1062_v56, %v1063_v57  ;;  %v5628_v33 = vmul.f32 %v691_v9, %v586_v51  ;;  %v561_v26 = vadd.f32 %v5351_v0, %v501_v60  ;;  %v442_v51 = vld [vmem:[%s5336_s8 + $0x150] sm:$0xff]  ;;  %v443_v9 = vld [vmem:[%s5336_s8 + $0x158] sm:$0xff] }
  0xbf   : > { %7271 = vst [vmem:[#allocation16_spill] sm:$0xff] %v5619_v21  ;;  %4616 = vmatprep.mubr.msk.f32.mxu1 %vm1084_vm2, %v5619_v21  ;;  %v535_v60 = vadd.f32 %v5351_v0, %v475_v37  ;;  %v591_v55 = vmax.f32 %v537_v15, 0.0 }
  0xc0   : > { %v1065_v17 = vrot.slane %v5616_v20, 1  ;;  %v1022_v1 = vrot.slane %v5628_v33, 1 }
  0xc1   : > { %v696_v56 = vpop.permute.xlu0 %695  ;;  %v701_v2 = vpop.permute.xlu1 %700  ;;  %v589_v32 = vmax.f32 %v535_v60, 0.0 }
  0xc2   : > { %v5633_v46 = vmul.f32 %v696_v56, %v587_v10  ;;  %v5635_v19 = vmul.f32 %v701_v2, %v588_v27  ;;  %v5638_v21 = vsel %vm1001_vm1, %v1063_v57, %v1065_v17  ;;  %v615_v27 = vmax.f32 %v561_v26, 0.0 }
  0xc3   : > { %7272 = vst [vmem:[#allocation17_spill] sm:$0xff] %v5638_v21  ;;  %4617 = vmatmul.mubr.msk.f32.gmra.mxu1 %vm1084_vm2, %v5638_v21  ;;  %v536_v57 = vadd.f32 %v5351_v0, %v476_v35  ;;  %v502_v17 = vmul.f32 %v5341_v58, %v442_v51  ;;  %v503_v2 = vmul.f32 %v5341_v58, %v443_v9  ;;  %v444_v21 = vld [vmem:[%s5336_s8 + $0x160] sm:$0x3]  ;;  %v418_v51 = vld [vmem:[%s5336_s8 + $0x90] sm:$0xff] }
  0xc4   : > { %v1025_v16 = vrot.slane %v5635_v19, 1  ;;  %v1023_v10 = vrot.slane %v5633_v46, 1 }
  0xc5   : > { %v826_v28 = vpop.permute.xlu0 %825  ;;  %v831_v56 = vpop.permute.xlu1 %830  ;;  %v563_v60 = vadd.f32 %v5351_v0, %v503_v2  ;;  %v479_v2 = vmul.f32 %v5341_v58, %v419_v54 }
  0xc6   : > { %v5653_v37 = vmul.f32 %v826_v28, %v613_v29  ;;  %v5655_v45 = vmul.f32 %v831_v56, %v614_v61  ;;  %v5658_v23 = vsel %vm1001_vm1, %v1022_v1, %v1023_v10  ;;  %v5661_v26 = vsel %vm1001_vm1, %v1023_v10, %v1025_v16 }
  0xc7   : > { %7273 = vst [vmem:[#allocation18_spill] sm:$0xff] %v5658_v23  ;;  %7274 = vst [vmem:[#allocation19_spill] sm:$0xff] %v5661_v26  ;;  %4592 = vmatprep.mubr.msk.f32.mxu0 %vm1084_vm2, %v5658_v23  ;;  %v504_v61 = vmul.f32 %v5341_v58, %v444_v21  ;;  %v590_v16 = vmax.f32 %v536_v57, 0.0  ;;  %v562_v10 = vadd.f32 %v5351_v0, %v502_v17 }
  0xc8   : > { %4593 = vmatmul.mubr.msk.f32.gmra.mxu0 %vm1084_vm2, %v5661_v26  ;;  %v1067_v29 = vrot.slane %v5653_v37, 1  ;;  %v1068_v35 = vrot.slane %v5655_v45, 1  ;;  %v420_v26 = vld [vmem:[%s5336_s8 + $0xa0] sm:$0x3]  ;;  %v478_v21 = vmul.f32 %v5341_v58, %v418_v51  ;;  %v617_v51 = vmax.f32 %v563_v60, 0.0 }
  0xc9   : > { %v836_v9 = vpop.permute.xlu0 %835  ;;  %v706_v1 = vpop.permute.xlu1 %705  ;;  %v616_v15 = vmax.f32 %v562_v10, 0.0  ;;  %v480_v23 = vmul.f32 %v5341_v58, %v420_v26 }
  0xca   : > { %v5672_v28 = vmul.f32 %v836_v9, %v615_v27  ;;  %v5675_v56 = vsel %vm1001_vm1, %v1067_v29, %v1068_v35  ;;  %v5684_v17 = vmul.f32 %v706_v1, %v589_v32  ;;  %v564_v27 = vadd.f32 %v5351_v0, %v504_v61  ;;  %v446_v32 = vld [vmem:[%s5336_s8 + $0x170] sm:$0xff] }
  0xcb   : > { %7275 = vst [vmem:[#allocation20_spill] sm:$0xff] %v5675_v56  ;;  %4619 = vmatprep.mubr.msk.f32.mxu1 %vm1084_vm2, %v5675_v56  ;;  %v538_v61 = vadd.f32 %v5351_v0, %v478_v21  ;;  %v540_v60 = vadd.f32 %v5351_v0, %v480_v23 }
  0xcc   : > { %v1070_v57 = vrot.slane %v5672_v28, 1  ;;  %v1027_v26 = vrot.slane %v5684_v17, 1 }
  0xcd   : > { %v711_v29 = vpop.permute.xlu0 %710  ;;  %v716_v9 = vpop.permute.xlu1 %715  ;;  %v592_v23 = vmax.f32 %v538_v61, 0.0 }
  0xce   : > { %v5689_v50 = vmul.f32 %v711_v29, %v590_v16  ;;  %v5691_v48 = vmul.f32 %v716_v9, %v591_v55  ;;  %v5694_v56 = vsel %vm1001_vm1, %v1068_v35, %v1070_v57  ;;  %v618_v55 = vmax.f32 %v564_v27, 0.0 }
  0xcf   : > { %7276 = vst [vmem:[#allocation21_spill] sm:$0xff] %v5694_v56  ;;  %4620 = vmatmul.mubr.msk.f32.gmra.mxu1 %vm1084_vm2, %v5694_v56  ;;  %v539_v35 = vadd.f32 %v5351_v0, %v479_v2  ;;  %v505_v57 = vmul.f32 %v5341_v58, %v445_v14  ;;  %v506_v29 = vmul.f32 %v5341_v58, %v446_v32 }
  0xd0   : > { %v1030_v54 = vrot.slane %v5691_v48, 1  ;;  %v1028_v1 = vrot.slane %v5689_v50, 1 }
  0xd1   : > { %v841_v16 = vpop.permute.xlu0 %840  ;;  %v846_v10 = vpop.permute.xlu1 %845  ;;  %v593_v32 = vmax.f32 %v539_v35, 0.0  ;;  %v566_v61 = vadd.f32 %v5351_v0, %v506_v29  ;;  %v483_v29 = vmul.f32 %v5341_v58, %v423_v6 }
  0xd2   : > { %v5708_v9 = vmul.f32 %v841_v16, %v616_v15  ;;  %v5710_v21 = vmul.f32 %v846_v10, %v617_v51  ;;  %v5713_v56 = vsel %vm1001_vm1, %v1027_v26, %v1028_v1  ;;  %v5716_v27 = vsel %vm1001_vm1, %v1028_v1, %v1030_v54  ;;  %v421_v1 = vld [vmem:[%s5336_s8 + $0xa8] sm:$0xff] }
  0xd3   : > { %7279 = vst [vmem:[#allocation24_spill] sm:$0xff] %v5713_v56  ;;  %7280 = vst [vmem:[#allocation25_spill] sm:$0xff] %v5716_v27  ;;  %4595 = vmatprep.mubr.msk.f32.mxu0 %vm1084_vm2, %v5713_v56  ;;  %v565_v54 = vadd.f32 %v5351_v0, %v505_v57  ;;  %v507_v26 = vmul.f32 %v5341_v58, %v447_v13  ;;  %v594_v56 = vmax.f32 %v540_v60, 0.0 }
  0xd4   : > { %7277 = vst [vmem:[#allocation22_spill] sm:$0xff] %v5708_v9  ;;  %7278 = vst [vmem:[#allocation23_spill] sm:$0xff] %v5710_v21  ;;  %4596 = vmatmul.mubr.msk.f32.gmra.mxu0 %vm1084_vm2, %v5716_v27  ;;  %v1072_v14 = vrot.slane %v5708_v9, 1  ;;  %v1073_v15 = vrot.slane %v5710_v21, 1  ;;  %v422_v27 = vld [vmem:[%s5336_s8 + $0xb0] sm:$0xff]  ;;  %v481_v13 = vmul.f32 %v5341_v58, %v421_v1 }
  0xd5   : > { %v851_v2 = vpop.permute.xlu0 %850  ;;  %v721_v51 = vpop.permute.xlu1 %720  ;;  %v482_v60 = vmul.f32 %v5341_v58, %v422_v27 }
  0xd6   : > { %v5728_v16 = vmul.f32 %v851_v2, %v618_v55  ;;  %v5731_v10 = vsel %vm1001_vm1, %v1072_v14, %v1073_v15  ;;  %v5739_v5 = vmul.f32 %v721_v51, %v592_v23  ;;  %v619_v2 = vmax.f32 %v565_v54, 0.0 }
  0xd7   : > { %7281 = vst [vmem:[#allocation26_spill] sm:$0xff] %v5731_v10  ;;  %4622 = vmatprep.mubr.msk.f32.mxu1 %vm1084_vm2, %v5731_v10  ;;  %v567_v14 = vadd.f32 %v5351_v0, %v507_v26  ;;  %v620_v23 = vmax.f32 %v566_v61, 0.0  ;;  %v541_v27 = vadd.f32 %v5351_v0, %v481_v13 }
  0xd8   : > { %v1075_v35 = vrot.slane %v5728_v16, 1  ;;  %v1032_v54 = vrot.slane %v5739_v5, 1 }
  0xd9   : > { %v726_v57 = vpop.permute.xlu0 %725  ;;  %v731_v55 = vpop.permute.xlu1 %730  ;;  %v595_v13 = vmax.f32 %v541_v27, 0.0 }
  0xda   : > { %v5745_v21 = vmul.f32 %v726_v57, %v593_v32  ;;  %v5747_v9 = vmul.f32 %v731_v55, %v594_v56  ;;  %v5750_v10 = vsel %vm1001_vm1, %v1073_v15, %v1075_v35  ;;  %v621_v32 = vmax.f32 %v567_v14, 0.0 }
  0xdb   : > { %7282 = vst [vmem:[#allocation27_spill] sm:$0xff] %v5750_v10  ;;  %4623 = vmatmul.mubr.msk.f32.gmra.mxu1 %vm1084_vm2, %v5750_v10  ;;  %v542_v56 = vadd.f32 %v5351_v0, %v482_v60  ;;  %v543_v15 = vadd.f32 %v5351_v0, %v483_v29 }
  0xdc   : > { %v1035_v51 = vrot.slane %v5747_v9, 1  ;;  %v1033_v26 = vrot.slane %v5745_v21, 1 }
  0xdd   : > { %v856_v58 = vpop.permute.xlu0 %855  ;;  %v861_v6 = vpop.permute.xlu1 %860 }
  0xde   : > { %v5760_v1 = vmul.f32 %v856_v58, %v619_v2  ;;  %v5762_v61 = vmul.f32 %v861_v6, %v620_v23  ;;  %v5765_v35 = vsel %vm1001_vm1, %v1032_v54, %v1033_v26  ;;  %v5768_v57 = vsel %vm1001_vm1, %v1033_v26, %v1035_v51 }
  0xdf   : > { %7283 = vst [vmem:[#allocation28_spill] sm:$0xff] %v5765_v35  ;;  %7284 = vst [vmem:[#allocation29_spill] sm:$0xff] %v5768_v57  ;;  %4598 = vmatprep.mubr.msk.f32.mxu0 %vm1084_vm2, %v5765_v35  ;;  %v596_v23 = vmax.f32 %v542_v56, 0.0  ;;  %v597_v51 = vmax.f32 %v543_v15, 0.0  ;;  %v1672_v56 = vrot.slane %v5392_v52, 2 }
  0xe0   : > { %4599 = vmatmul.mubr.msk.f32.gmra.mxu0 %vm1084_vm2, %v5768_v57  ;;  %v1077_v55 = vrot.slane %v5760_v1, 1  ;;  %v1078_v0 = vrot.slane %v5762_v61, 1 }
  0xe1   : > { %v866_v2 = vpop.permute.xlu0 %865  ;;  %v736_v14 = vpop.permute.xlu1 %735 }
  0xe2   : > { %v5776_v60 = vmul.f32 %v866_v2, %v621_v32  ;;  %v5779_v29 = vsel %vm1001_vm1, %v1077_v55, %v1078_v0  ;;  %v5784_v26 = vmul.f32 %v736_v14, %v595_v13  ;;  %v1671_v2 = vrot.slane %v5386_v43, 2 }
  0xe3   : > { %7285 = vst [vmem:[#allocation30_spill] sm:$0xff] %v5779_v29  ;;  %4625 = vmatprep.mubr.msk.f32.mxu1 %vm1084_vm2, %v5779_v29 }
  0xe4   : > { %v1080_v54 = vrot.slane %v5776_v60, 1  ;;  %v1037_v13 = vrot.slane %v5784_v26, 1 }
  0xe5   : > { %v741_v27 = vpop.permute.xlu0 %740  ;;  %v746_v58 = vpop.permute.xlu1 %745 }
  0xe6   : > { %v5786_v6 = vmul.f32 %v741_v27, %v596_v23  ;;  %v5788_v10 = vmul.f32 %v746_v58, %v597_v51  ;;  %v5791_v32 = vsel %vm1001_vm1, %v1078_v0, %v1080_v54  ;;  %v1674_v23 = vrot.slane %v5394_v53, 2  ;;  %v5816_v51 = vld [vmem:[%s7160_s1 + $0x14] sm:$0xf]  ;;  %v5837_v58 = vld [vmem:[%s7160_s1 + $0x18] sm:$0xf] }
  0xe7   : > { %7286 = vst [vmem:[#allocation31_spill] sm:$0xff] %v5791_v32  ;;  %4626 = vmatmul.mubr.msk.f32.gmra.mxu1 %vm1084_vm2, %v5791_v32  ;;  %v1677_v53 = vrot.slane %v5466_v42, 2  ;;  %v1679_v27 = vrot.slane %v5468_v44, 2  ;;  %v1681_v44 = vrot.slane %v5516_v39, 2 }
  0xe8   : > { %v1040_v15 = vrot.slane %v5788_v10, 1  ;;  %4630 = vmatprep.mubr.msk.f32.mxu1 %vm1084_vm2, %v5386_v43  ;;  %v1038_v55 = vrot.slane %v5786_v6, 1  ;;  %v1673_v43 = vsel %vm1670_vm3, %v1671_v2, %v1672_v56  ;;  %v1675_v54 = vsel %vm1670_vm3, %v1672_v56, %v1674_v23 }
  0xe9   : > { %v1682_v56 = vrot.slane %v5521_v40, 2  ;;  %v1689_v2 = vrot.slane %v5579_v63, 2  ;;  %v1691_v63 = vrot.slane %v5628_v33, 2 }
  0xea   : > { %v5803_v14 = vsel %vm1001_vm1, %v1037_v13, %v1038_v55  ;;  %v5806_v0 = vsel %vm1001_vm1, %v1038_v55, %v1040_v15  ;;  %v1684_v15 = vrot.slane %v5523_v41, 2  ;;  %v5857_v13 = vsel %vm1670_vm3, %v1677_v53, %v1679_v27 }
  0xeb   : > { %7287 = vst [vmem:[#allocation32_spill] sm:$0xff] %v5803_v14  ;;  %7288 = vst [vmem:[#allocation33_spill] sm:$0xff] %v5806_v0  ;;  %4601 = vmatprep.mubr.msk.f32.mxu0 %vm1084_vm2, %v5803_v14  ;;  %4631 = vmatmul.mubr.msk.f32.vlgmr.msra.gmra.mxu1 %vm1084_vm2, %v5392_v52  ;;  %v1676_v52 = vrot.slane %v5460_v31, 2  ;;  %v1687_v55 = vrot.slane %v5577_v62, 2  ;;  %v1686_v41 = vrot.slane %v5572_v49, 2 }
  0xec   : > { %4602 = vmatmul.mubr.msk.f32.gmra.mxu0 %vm1084_vm2, %v5806_v0  ;;  %4633 = vmatprep.mubr.msk.f32.mxu1 %vm1084_vm2, %v5460_v31  ;;  %v5874_v23 = vsel %vm1670_vm3, %v1682_v56, %v1684_v15 }
  0xed   : > { %4680 = vmatprep.mubr.msk.f32.mxu0 %vm1084_vm2, %v1673_v43  ;;  %4729 = vmatpush3.msk.msra.mxu1 %vm1149_vm0, %v5409_v59  ;;  %v5843_v59 = vsel %vm1670_vm3, %v1676_v52, %v1677_v53  ;;  %v5881_v43 = vsel %vm1670_vm3, %v1686_v41, %v1687_v55  ;;  %v1692_v53 = vrot.slane %v5633_v46, 2  ;;  %v1694_v52 = vrot.slane %v5635_v19, 2 }
  0xee   : > { %4828 = vmatprep.subr.msk.mxu1 %vm1149_vm0, %v5816_v51  ;;  %v1696_v19 = vrot.slane %v5684_v17, 2  ;;  %v1702_v41 = vrot.slane %v5745_v21, 2 }
  0xef   : > { %4634 = vmatmul.mubr.msk.f32.gmra.mxu1 %vm1084_vm2, %v5466_v42  ;;  %v5898_v27 = vsel %vm1670_vm3, %v1691_v63, %v1692_v53  ;;  %v5908_v15 = vsel %vm1670_vm3, %v1692_v53, %v1694_v52  ;;  %v1707_v52 = vrot.slane %v5786_v6, 2 }
  0xf0   : > { %4636 = vmatprep.mubr.msk.f32.mxu1 %vm1084_vm2, %v5516_v39  ;;  %4681 = vmatmul.mubr.msk.f32.vlgmr.msra.gmra.mxu0 %vm1084_vm2, %v1675_v54  ;;  %v5891_v54 = vsel %vm1670_vm3, %v1687_v55, %v1689_v2  ;;  %v1704_v2 = vrot.slane %v5747_v9, 2  ;;  %v1706_v9 = vrot.slane %v5784_v26, 2 }
  0xf1   : > { %4779 = vmatpush3.msk.msra.mxu0 %vm1149_vm0, %v5436_v36  ;;  %4683 = vmatprep.mubr.msk.f32.mxu0 %vm1084_vm2, %v5843_v59  ;;  %v5864_v36 = vsel %vm1670_vm3, %v1681_v44, %v1682_v56  ;;  %v1697_v56 = vrot.slane %v5689_v50, 2  ;;  %v1699_v44 = vrot.slane %v5691_v48, 2  ;;  %v1701_v48 = vrot.slane %v5739_v5, 2 }
  0xf2   : > { %4878 = vmatprep.subr.msk.mxu0 %vm1149_vm0, %v5837_v58 }
  0xf3   : > { %4637 = vmatmul.mubr.msk.f32.gmra.mxu1 %vm1084_vm2, %v5521_v40  ;;  %v5915_v55 = vsel %vm1670_vm3, %v1696_v19, %v1697_v56  ;;  %v5925_v53 = vsel %vm1670_vm3, %v1697_v56, %v1699_v44  ;;  %v5932_v63 = vsel %vm1670_vm3, %v1701_v48, %v1702_v41  ;;  %v1709_v19 = vrot.slane %v5788_v10, 2 }
  0xf4   : > { %4639 = vmatprep.mubr.msk.f32.mxu1 %vm1084_vm2, %v5572_v49  ;;  %4684 = vmatmul.mubr.msk.f32.gmra.mxu0 %vm1084_vm2, %v5857_v13  ;;  %v5942_v56 = vsel %vm1670_vm3, %v1702_v41, %v1704_v2  ;;  %v5949_v44 = vsel %vm1670_vm3, %v1706_v9, %v1707_v52  ;;  %v1712_v48 = vrot.slane %v5380_v34, 2  ;;  %v1711_v10 = vrot.slane %v5373_v25, 2 }
  0xf5   : > { %4686 = vmatprep.mubr.msk.f32.mxu0 %vm1084_vm2, %v5864_v36  ;;  %7289 = vst [vmem:[#allocation34_spill] sm:$0xff] %v5942_v56  ;;  %7290 = vst [vmem:[#allocation35_spill] sm:$0xff] %v5949_v44  ;;  %v5958_v41 = vsel %vm1670_vm3, %v1707_v52, %v1709_v19  ;;  %v1716_v9 = vrot.slane %v5422_v7, 2  ;;  %v1719_v52 = vrot.slane %v5446_v22, 2  ;;  %v1724_v22 = vrot.slane %v5504_v18, 2 }
  0xf6   : > { %v5965_v2 = vsel %vm1670_vm3, %v1711_v10, %v1712_v48  ;;  %v1729_v18 = vrot.slane %v5560_v30, 2  ;;  %v1734_v30 = vrot.slane %v5616_v20, 2  ;;  %v1739_v20 = vrot.slane %v5672_v28, 2 }
  0xf7   : > { %4640 = vmatmul.mubr.msk.f32.gmra.mxu1 %vm1084_vm2, %v5577_v62  ;;  %7291 = vst [vmem:[#allocation36_spill] sm:$0xff] %v5965_v2  ;;  %v1744_v28 = vrot.slane %v5728_v16, 2  ;;  %v1749_v16 = vrot.slane %v5776_v60, 2 }
  0xf8   : > { %4642 = vmatprep.mubr.msk.f32.mxu1 %vm1084_vm2, %v5628_v33  ;;  %4687 = vmatmul.mubr.msk.f32.gmra.mxu0 %vm1084_vm2, %v5874_v23 }
  0xf9   : > { %4689 = vmatprep.mubr.msk.f32.mxu0 %vm1084_vm2, %v5881_v43 }
  0xfb   : > { %4643 = vmatmul.mubr.msk.f32.gmra.mxu1 %vm1084_vm2, %v5633_v46 }
  0xfc   : > { %4645 = vmatprep.mubr.msk.f32.mxu1 %vm1084_vm2, %v5684_v17  ;;  %4690 = vmatmul.mubr.msk.f32.gmra.mxu0 %vm1084_vm2, %v5891_v54 }
  0xfd   : > { %4692 = vmatprep.mubr.msk.f32.mxu0 %vm1084_vm2, %v5898_v27 }
  0xff   : > { %4646 = vmatmul.mubr.msk.f32.gmra.mxu1 %vm1084_vm2, %v5689_v50 }
 0x100   : > { %4648 = vmatprep.mubr.msk.f32.mxu1 %vm1084_vm2, %v5739_v5  ;;  %4693 = vmatmul.mubr.msk.f32.gmra.mxu0 %vm1084_vm2, %v5908_v15 }
 0x101   : > { %4695 = vmatprep.mubr.msk.f32.mxu0 %vm1084_vm2, %v5915_v55 }
 0x103   : > { %4649 = vmatmul.mubr.msk.f32.gmra.mxu1 %vm1084_vm2, %v5745_v21 }
 0x104   : > { %4651 = vmatprep.mubr.msk.f32.mxu1 %vm1084_vm2, %v5784_v26  ;;  %4696 = vmatmul.mubr.msk.f32.gmra.mxu0 %vm1084_vm2, %v5925_v53 }
 0x105   : > { %4698 = vmatprep.mubr.msk.f32.mxu0 %vm1084_vm2, %v5932_v63 }
 0x107   : > { %4652 = vmatmul.mubr.msk.f32.gmra.mxu1 %vm1084_vm2, %v5786_v6 }
 0x108   : > { %4654 = vmatprep.mubr.msk.f32.mxu1 %vm1084_vm2, %v5373_v25  ;;  %4699 = vmatmul.mubr.msk.f32.gmra.mxu0 %vm1084_vm2, %v5942_v56  ;;  %v1714_v56 = vrot.slane %v5371_v24, 2  ;;  %v1721_v24 = vrot.slane %v5485_v3, 2 }
 0x109   : > { %4701 = vmatprep.mubr.msk.f32.mxu0 %vm1084_vm2, %v5949_v44  ;;  %v1717_v44 = vrot.slane %v5424_v8, 2 }
 0x10a   : > { %v5976_v19 = vsel %vm1670_vm3, %v1712_v48, %v1714_v56 }
 0x10b   : > { %4655 = vmatmul.mubr.msk.f32.gmra.mxu1 %vm1084_vm2, %v5380_v34  ;;  %v5983_v10 = vsel %vm1670_vm3, %v1716_v9, %v1717_v44  ;;  %v5993_v56 = vsel %vm1670_vm3, %v1717_v44, %v1719_v52  ;;  %v1726_v9 = vrot.slane %v5541_v11, 2 }
 0x10c   : > { %4657 = vmatprep.mubr.msk.f32.mxu1 %vm1084_vm2, %v5422_v7  ;;  %4702 = vmatmul.mubr.msk.f32.gmra.mxu0 %vm1084_vm2, %v5958_v41  ;;  %7292 = vst [vmem:[#allocation37_spill] sm:$0xff] %v5983_v10 }
 0x10d   : > { %4704 = vmatprep.mubr.msk.f32.mxu0 %vm1084_vm2, %v5965_v2  ;;  %v1722_v2 = vrot.slane %v5487_v4, 2 }
 0x10f   : > { %4658 = vmatmul.mubr.msk.f32.gmra.mxu1 %vm1084_vm2, %v5424_v8  ;;  %v6000_v48 = vsel %vm1670_vm3, %v1721_v24, %v1722_v2  ;;  %v6010_v44 = vsel %vm1670_vm3, %v1722_v2, %v1724_v22  ;;  %v1731_v24 = vrot.slane %v5597_v38, 2 }
 0x110   : > { %4660 = vmatprep.mubr.msk.f32.mxu1 %vm1084_vm2, %v5485_v3  ;;  %4705 = vmatmul.mubr.msk.f32.gmra.mxu0 %vm1084_vm2, %v5976_v19  ;;  %7293 = vst [vmem:[#allocation38_spill] sm:$0xff] %v6000_v48  ;;  %7294 = vst [vmem:[#allocation39_spill] sm:$0xff] %v6010_v44 }
 0x111   : > { %4707 = vmatprep.mubr.msk.f32.mxu0 %vm1084_vm2, %v5983_v10  ;;  %v1727_v10 = vrot.slane %v5543_v12, 2 }
 0x113   : > { %4661 = vmatmul.mubr.msk.f32.gmra.mxu1 %vm1084_vm2, %v5487_v4  ;;  %v6017_v52 = vsel %vm1670_vm3, %v1726_v9, %v1727_v10  ;;  %v6027_v2 = vsel %vm1670_vm3, %v1727_v10, %v1729_v18  ;;  %v1736_v9 = vrot.slane %v5653_v37, 2  ;;  %v7298_v18 = vld [vmem:[#allocation22_spill] sm:$0xff] }
 0x114   : > { %4663 = vmatprep.mubr.msk.f32.mxu1 %vm1084_vm2, %v5541_v11  ;;  %4708 = vmatmul.mubr.msk.f32.gmra.mxu0 %vm1084_vm2, %v5993_v56  ;;  %7295 = vst [vmem:[#allocation40_spill] sm:$0xff] %v6017_v52  ;;  %7296 = vst [vmem:[#allocation41_spill] sm:$0xff] %v6027_v2 }
 0x115   : > { %4710 = vmatprep.mubr.msk.f32.mxu0 %vm1084_vm2, %v6000_v48  ;;  %v1732_v48 = vrot.slane %v5599_v47, 2 }
 0x117   : > { %4664 = vmatmul.mubr.msk.f32.gmra.mxu1 %vm1084_vm2, %v5543_v12  ;;  %v6034_v22 = vsel %vm1670_vm3, %v1731_v24, %v1732_v48  ;;  %v6044_v10 = vsel %vm1670_vm3, %v1732_v48, %v1734_v30 }
 0x118   : > { %4666 = vmatprep.mubr.msk.f32.mxu1 %vm1084_vm2, %v5597_v38  ;;  %4711 = vmatmul.mubr.msk.f32.gmra.mxu0 %vm1084_vm2, %v6010_v44  ;;  %7297 = vst [vmem:[#allocation42_spill] sm:$0xff] %v6034_v22 }
 0x119   : > { %4713 = vmatprep.mubr.msk.f32.mxu0 %vm1084_vm2, %v6017_v52  ;;  %v1737_v52 = vrot.slane %v5655_v45, 2 }
 0x11b   : > { %4667 = vmatmul.mubr.msk.f32.gmra.mxu1 %vm1084_vm2, %v5599_v47  ;;  %v6051_v24 = vsel %vm1670_vm3, %v1736_v9, %v1737_v52  ;;  %v6061_v48 = vsel %vm1670_vm3, %v1737_v52, %v1739_v20  ;;  %v1746_v9 = vrot.slane %v5760_v1, 2  ;;  %v7307_v20 = vld [vmem:[#allocation7_spill] sm:$0xff] }
 0x11c   : > { %4669 = vmatprep.mubr.msk.f32.mxu1 %vm1084_vm2, %v5653_v37  ;;  %4714 = vmatmul.mubr.msk.f32.gmra.mxu0 %vm1084_vm2, %v6027_v2  ;;  %7299 = vst [vmem:[#allocation22_spill] sm:$0xff] %v6051_v24  ;;  %v1741_v2 = vrot.slane %v7298_v18, 2 }
 0x11d   : > { %4716 = vmatprep.mubr.msk.f32.mxu0 %vm1084_vm2, %v6034_v22  ;;  %v7300_v22 = vld [vmem:[#allocation23_spill] sm:$0xff] }
 0x11e   : > { %v1742_v44 = vrot.slane %v7300_v22, 2  ;;  %7301 = vst [vmem:[#allocation23_spill] sm:$0xff] %v6061_v48 }
 0x11f   : > { %4670 = vmatmul.mubr.msk.f32.gmra.mxu1 %vm1084_vm2, %v5655_v45 }
 0x120   : > { %4672 = vmatprep.mubr.msk.f32.mxu1 %vm1084_vm2, %v7298_v18  ;;  %4717 = vmatmul.mubr.msk.f32.gmra.mxu0 %vm1084_vm2, %v6044_v10  ;;  %v6068_v30 = vsel %vm1670_vm3, %v1741_v2, %v1742_v44  ;;  %v6078_v52 = vsel %vm1670_vm3, %v1742_v44, %v1744_v28  ;;  %v6097_v44 = vld [vmem:[%s7160_s1 + $0x1c] sm:$0xf]  ;;  %v7310_v28 = vld [vmem:[#allocation14_spill] sm:$0xff] }
 0x121   : > { %4719 = vmatprep.mubr.msk.f32.mxu0 %vm1084_vm2, %v6051_v24  ;;  %7302 = vst [vmem:[#allocation43_spill] sm:$0xff] %v6068_v30  ;;  %v1747_v24 = vrot.slane %v5762_v61, 2  ;;  %7303 = vst [vmem:[#allocation44_spill] sm:$0xff] %v6078_v52 }
 0x123   : > { %4673 = vmatmul.mubr.msk.f32.gmra.mxu1 %vm1084_vm2, %v7300_v22  ;;  %v6085_v2 = vsel %vm1670_vm3, %v1746_v9, %v1747_v24  ;;  %v6092_v60 = vsel %vm1670_vm3, %v1747_v24, %v1749_v16  ;;  %v7309_v24 = vld [vmem:[#allocation11_spill] sm:$0xff]  ;;  %v7312_v9 = vld [vmem:[#allocation18_spill] sm:$0xff] }
 0x124   : > { %4675 = vmatprep.mubr.msk.f32.mxu1 %vm1084_vm2, %v5760_v1  ;;  %4720 = vmatmul.mubr.msk.f32.gmra.mxu0 %vm1084_vm2, %v6061_v48  ;;  %7304 = vst [vmem:[#allocation45_spill] sm:$0xff] %v6085_v2  ;;  %7305 = vst [vmem:[#allocation46_spill] sm:$0xff] %v6092_v60  ;;  %v7313_v16 = vld [vmem:[#allocation19_spill] sm:$0xff] }
 0x125   : > { %4722 = vmatprep.mubr.msk.f32.mxu0 %vm1084_vm2, %v6068_v30 }
 0x127   : > { %4676 = vmatmul.mubr.msk.f32.gmra.mxu1 %vm1084_vm2, %v5762_v61 }
 0x128   : > { %4723 = vmatmul.mubr.msk.f32.gmra.mxu0 %vm1084_vm2, %v6078_v52  ;;  %4730 = vmatprep.mubr.msk.f32.mxu1 %vm1084_vm2, %v5460_v31  ;;  %v7306_v31 = vld [vmem:[#allocation6_spill] sm:$0xff] }
 0x129   : > { %4725 = vmatprep.mubr.msk.f32.mxu0 %vm1084_vm2, %v6085_v2  ;;  %v7326_v2 = vld [vmem:[#allocation20_spill] sm:$0xff] }
 0x12b   : > { %4731 = vmatmul.mubr.msk.f32.vlgmr.msra.gmra.mxu1 %vm1084_vm2, %v5466_v42  ;;  %v6114_v42 = vld [vmem:[%s7160_s1 + $0x20] sm:$0xf] }
 0x12c   : > { %4726 = vmatmul.mubr.msk.f32.gmra.mxu0 %vm1084_vm2, %v6092_v60  ;;  %4733 = vmatprep.mubr.msk.f32.mxu1 %vm1084_vm2, %v5516_v39 }
 0x12d   : > { %4780 = vmatprep.mubr.msk.f32.mxu0 %vm1084_vm2, %v7306_v31  ;;  %4829 = vmatpush3.msk.msra.mxu1 %vm1149_vm0, %v5816_v51  ;;  %v7308_v51 = vld [vmem:[#allocation10_spill] sm:$0xff]  ;;  %v7314_v31 = vld [vmem:[#allocation24_spill] sm:$0xff] }
 0x12e   : > { %4928 = vmatprep.subr.msk.mxu1 %vm1149_vm0, %v6097_v44 }
 0x12f   : > { %4734 = vmatmul.mubr.msk.f32.gmra.mxu1 %vm1084_vm2, %v5521_v40 }
 0x130   : > { %4736 = vmatprep.mubr.msk.f32.mxu1 %vm1084_vm2, %v5572_v49  ;;  %4781 = vmatmul.mubr.msk.f32.vlgmr.msra.gmra.mxu0 %vm1084_vm2, %v7307_v20  ;;  %v7315_v20 = vld [vmem:[#allocation25_spill] sm:$0xff] }
 0x131   : > { %4879 = vmatpush3.msk.msra.mxu0 %vm1149_vm0, %v5837_v58  ;;  %4783 = vmatprep.mubr.msk.f32.mxu0 %vm1084_vm2, %v7308_v51  ;;  %v7311_v58 = vld [vmem:[#allocation15_spill] sm:$0xff] }
 0x132   : > { %4978 = vmatprep.subr.msk.mxu0 %vm1149_vm0, %v6114_v42 }
 0x133   : > { %4737 = vmatmul.mubr.msk.f32.gmra.mxu1 %vm1084_vm2, %v5577_v62 }
 0x134   : > { %4739 = vmatprep.mubr.msk.f32.mxu1 %vm1084_vm2, %v5628_v33  ;;  %4784 = vmatmul.mubr.msk.f32.gmra.mxu0 %vm1084_vm2, %v7309_v24 }
 0x135   : > { %4786 = vmatprep.mubr.msk.f32.mxu0 %vm1084_vm2, %v7310_v28 }
 0x137   : > { %4740 = vmatmul.mubr.msk.f32.gmra.mxu1 %vm1084_vm2, %v5633_v46 }
 0x138   : > { %4742 = vmatprep.mubr.msk.f32.mxu1 %vm1084_vm2, %v5684_v17  ;;  %4787 = vmatmul.mubr.msk.f32.gmra.mxu0 %vm1084_vm2, %v7311_v58 }
 0x139   : > { %4789 = vmatprep.mubr.msk.f32.mxu0 %vm1084_vm2, %v7312_v9  ;;  %v450_v9 = vld [vmem:[%s5336_s8 + $0x190] sm:$0x3] }
 0x13b   : > { %4743 = vmatmul.mubr.msk.f32.gmra.mxu1 %vm1084_vm2, %v5689_v50 }
 0x13c   : > { %4745 = vmatprep.mubr.msk.f32.mxu1 %vm1084_vm2, %v5739_v5  ;;  %4790 = vmatmul.mubr.msk.f32.gmra.mxu0 %vm1084_vm2, %v7313_v16 }
 0x13d   : > { %4792 = vmatprep.mubr.msk.f32.mxu0 %vm1084_vm2, %v7314_v31  ;;  %v7320_v31 = vld [vmem:[#allocation8_spill] sm:$0xff] }
 0x13f   : > { %4746 = vmatmul.mubr.msk.f32.gmra.mxu1 %vm1084_vm2, %v5745_v21 }
 0x140   : > { %4748 = vmatprep.mubr.msk.f32.mxu1 %vm1084_vm2, %v5784_v26  ;;  %4793 = vmatmul.mubr.msk.f32.gmra.mxu0 %vm1084_vm2, %v7315_v20  ;;  %v449_v20 = vld [vmem:[%s5336_s8 + $0x188] sm:$0xff] }
 0x141   : > { %4795 = vmatprep.mubr.msk.f32.mxu0 %vm1084_vm2, %v5765_v35  ;;  %v7316_v35 = vld [vmem:[#allocation2_spill] sm:$0xff] }
 0x143   : > { %4749 = vmatmul.mubr.msk.f32.gmra.mxu1 %vm1084_vm2, %v5786_v6 }
 0x144   : > { %4751 = vmatprep.mubr.msk.f32.mxu1 %vm1084_vm2, %v5373_v25  ;;  %4796 = vmatmul.mubr.msk.f32.gmra.mxu0 %vm1084_vm2, %v5768_v57  ;;  %v7318_v57 = vld [vmem:[#allocation4_spill] sm:$0xff] }
 0x145   : > { %4798 = vmatprep.mubr.msk.f32.mxu0 %vm1084_vm2, %v5803_v14  ;;  %v7317_v14 = vld [vmem:[#allocation3_spill] sm:$0xff] }
 0x147   : > { %4752 = vmatmul.mubr.msk.f32.gmra.mxu1 %vm1084_vm2, %v5380_v34 }
 0x148   : > { %4754 = vmatprep.mubr.msk.f32.mxu1 %vm1084_vm2, %v5422_v7  ;;  %4799 = vmatmul.mubr.msk.f32.gmra.mxu0 %vm1084_vm2, %v5806_v0  ;;  %v7319_v0 = vld [vmem:[#allocation5_spill] sm:$0xff] }
 0x149   : > { %4801 = vmatprep.mubr.msk.f32.mxu0 %vm1084_vm2, %v7316_v35  ;;  %v448_v35 = vld [vmem:[%s5336_s8 + $0x180] sm:$0xff] }
 0x14b   : > { %4755 = vmatmul.mubr.msk.f32.gmra.mxu1 %vm1084_vm2, %v5424_v8 }
 0x14c   : > { %4757 = vmatprep.mubr.msk.f32.mxu1 %vm1084_vm2, %v5485_v3  ;;  %4802 = vmatmul.mubr.msk.f32.gmra.mxu0 %vm1084_vm2, %v7317_v14 }
 0x14d   : > { %4804 = vmatprep.mubr.msk.f32.mxu0 %vm1084_vm2, %v7318_v57  ;;  %v6197_v57 = vld [vmem:[%s7161_s2] ss:$0 sm:$0xff] }
 0x14e   : > { %v508_v14 = vmul.f32 %v6197_v57, %v448_v35  ;;  %v509_v16 = vmul.f32 %v6197_v57, %v449_v20  ;;  %v510_v58 = vmul.f32 %v6197_v57, %v450_v9  ;;  %v6214_v35 = vld [vmem:[%s7162_s3] ss:$0 sm:$0xff]  ;;  %v871_v9 = vpop.permute.xlu0 %870 }
 0x14f   : > { %4758 = vmatmul.mubr.msk.f32.gmra.mxu1 %vm1084_vm2, %v5487_v4 }
 0x150   : > { %4760 = vmatprep.mubr.msk.f32.mxu1 %vm1084_vm2, %v5541_v11  ;;  %4805 = vmatmul.mubr.msk.f32.gmra.mxu0 %vm1084_vm2, %v7319_v0  ;;  %v7321_v0 = vld [vmem:[#allocation9_spill] sm:$0xff]  ;;  %v568_v20 = vadd.f32 %v6214_v35, %v508_v14  ;;  %v569_v28 = vadd.f32 %v6214_v35, %v509_v16  ;;  %v570_v24 = vadd.f32 %v6214_v35, %v510_v58  ;;  %v876_v16 = vpop.permute.xlu1 %875 }
 0x151   : > { %4807 = vmatprep.mubr.msk.f32.mxu0 %vm1084_vm2, %v7320_v31  ;;  %v7322_v31 = vld [vmem:[#allocation12_spill] sm:$0xff]  ;;  %v7325_v14 = vld [vmem:[#allocation17_spill] sm:$0xff] }
 0x152   : > { %v622_v51 = vmax.f32 %v568_v20, 0.0  ;;  %v623_v60 = vmax.f32 %v569_v28, 0.0  ;;  %v881_v20 = vpop.permute.xlu0 %880  ;;  %v7327_v28 = vld [vmem:[#allocation21_spill] sm:$0xff] }
 0x153   : > { %4761 = vmatmul.mubr.msk.f32.gmra.mxu1 %vm1084_vm2, %v5543_v12 }
 0x154   : > { %4763 = vmatprep.mubr.msk.f32.mxu1 %vm1084_vm2, %v5597_v38  ;;  %4808 = vmatmul.mubr.msk.f32.gmra.mxu0 %vm1084_vm2, %v7321_v0  ;;  %v7323_v0 = vld [vmem:[#allocation13_spill] sm:$0xff]  ;;  %v6235_v58 = vmul.f32 %v871_v9, %v622_v51 }
 0x155   : > { %4810 = vmatprep.mubr.msk.f32.mxu0 %vm1084_vm2, %v7322_v31  ;;  %v7324_v31 = vld [vmem:[#allocation16_spill] sm:$0xff] }
 0x156   : > { %v2346_v51 = vrot.slane %v6235_v58, 1 }
 0x157   : > { %4764 = vmatmul.mubr.msk.f32.gmra.mxu1 %vm1084_vm2, %v5599_v47 }
 0x158   : > { %4766 = vmatprep.mubr.msk.f32.mxu1 %vm1084_vm2, %v5653_v37  ;;  %4811 = vmatmul.mubr.msk.f32.gmra.mxu0 %vm1084_vm2, %v7323_v0  ;;  %v624_v0 = vmax.f32 %v570_v24, 0.0 }
 0x159   : > { %4813 = vmatprep.mubr.msk.f32.mxu0 %vm1084_vm2, %v7324_v31  ;;  %v6237_v31 = vmul.f32 %v876_v16, %v623_v60  ;;  %v7329_v60 = vld [vmem:[#allocation27_spill] sm:$0xff] }
 0x15a   : > { %v6245_v52 = vmul.f32 %v881_v20, %v624_v0  ;;  %v7340_v20 = vld [vmem:[#allocation41_spill] sm:$0xff] }
 0x15b   : > { %4767 = vmatmul.mubr.msk.f32.gmra.mxu1 %vm1084_vm2, %v5655_v45  ;;  %v2347_v24 = vrot.slane %v6237_v31, 1 }
 0x15c   : > { %4769 = vmatprep.mubr.msk.f32.mxu1 %vm1084_vm2, %v7298_v18  ;;  %4814 = vmatmul.mubr.msk.f32.gmra.mxu0 %vm1084_vm2, %v7325_v14  ;;  %v7328_v14 = vld [vmem:[#allocation26_spill] sm:$0xff]  ;;  %v2349_v9 = vrot.slane %v6245_v52, 1 }
 0x15d   : > { %4816 = vmatprep.mubr.msk.f32.mxu0 %vm1084_vm2, %v7326_v2  ;;  %v6265_v0 = vsel %vm1001_vm1, %v2346_v51, %v2347_v24 }
 0x15e   : > { %7330 = vst [vmem:[#allocation6_spill] sm:$0xff] %v6265_v0  ;;  %v6272_v16 = vsel %vm1001_vm1, %v2347_v24, %v2349_v9  ;;  %v7341_v24 = vld [vmem:[#allocation42_spill] sm:$0xff] }
 0x15f   : > { %4770 = vmatmul.mubr.msk.f32.gmra.mxu1 %vm1084_vm2, %v7300_v22  ;;  %7331 = vst [vmem:[#allocation7_spill] sm:$0xff] %v6272_v16 }
 0x160   : > { %4772 = vmatprep.mubr.msk.f32.mxu1 %vm1084_vm2, %v5760_v1  ;;  %4817 = vmatmul.mubr.msk.f32.gmra.mxu0 %vm1084_vm2, %v7327_v28 }
 0x161   : > { %4819 = vmatprep.mubr.msk.f32.mxu0 %vm1084_vm2, %v7328_v14 }
 0x163   : > { %4773 = vmatmul.mubr.msk.f32.gmra.mxu1 %vm1084_vm2, %v5762_v61 }
 0x164   : > { %4775 = vmatprep.mubr.msk.f32.mxu1 %vm1084_vm2, %v6235_v58  ;;  %4820 = vmatmul.mubr.msk.f32.gmra.mxu0 %vm1084_vm2, %v7329_v60 }
 0x165   : > { %4822 = vmatprep.mubr.msk.f32.mxu0 %vm1084_vm2, %v5779_v29 }
 0x167   : > { %4776 = vmatmul.mubr.msk.f32.gmra.mxu1 %vm1084_vm2, %v6237_v31 }
 0x168   : > { %4823 = vmatmul.mubr.msk.f32.gmra.mxu0 %vm1084_vm2, %v5791_v32  ;;  %4830 = vmatprep.mubr.msk.f32.mxu1 %vm1084_vm2, %v5843_v59  ;;  %v452_v32 = vld [vmem:[%s5336_s8 + $0x1a0] sm:$0xff] }
 0x169   : > { %4825 = vmatprep.mubr.msk.f32.mxu0 %vm1084_vm2, %v6265_v0 }
 0x16b   : > { %4831 = vmatmul.mubr.msk.f32.vlgmr.msra.gmra.mxu1 %vm1084_vm2, %v5857_v13 }
 0x16c   : > { %4826 = vmatmul.mubr.msk.f32.gmra.mxu0 %vm1084_vm2, %v6272_v16  ;;  %4833 = vmatprep.mubr.msk.f32.mxu1 %vm1084_vm2, %v5864_v36  ;;  %v7343_v16 = vld [vmem:[#allocation22_spill] sm:$0xff] }
 0x16d   : > { %4880 = vmatprep.mubr.msk.f32.mxu0 %vm1084_vm2, %v5516_v39  ;;  %4929 = vmatpush3.msk.msra.mxu1 %vm1149_vm0, %v6097_v44  ;;  %v6314_v39 = vpop.f32.mrf.mxu1  ;;  %v7337_v44 = vld [vmem:[#allocation39_spill] sm:$0xff] }
 0x16f   : > { %4834 = vmatmul.mubr.msk.f32.gmra.mxu1 %vm1084_vm2, %v5874_v23 }
 0x170   : > { %4836 = vmatprep.mubr.msk.f32.mxu1 %vm1084_vm2, %v5881_v43  ;;  %4881 = vmatmul.mubr.msk.f32.vlgmr.msra.gmra.mxu0 %vm1084_vm2, %v5521_v40  ;;  %v7332_v40 = vld [vmem:[#allocation34_spill] sm:$0xff] }
 0x171   : > { %4979 = vmatpush3.msk.msra.mxu0 %vm1149_vm0, %v6114_v42  ;;  %4883 = vmatprep.mubr.msk.f32.mxu0 %vm1084_vm2, %v5572_v49  ;;  %v6324_v49 = vpop.f32.mrf.mxu1  ;;  %v7338_v42 = vld [vmem:[#allocation40_spill] sm:$0xff] }
 0x173   : > { %4837 = vmatmul.mubr.msk.f32.gmra.mxu1 %vm1084_vm2, %v5891_v54 }
 0x174   : > { %4839 = vmatprep.mubr.msk.f32.mxu1 %vm1084_vm2, %v5898_v27  ;;  %4884 = vmatmul.mubr.msk.f32.gmra.mxu0 %vm1084_vm2, %v5577_v62  ;;  %v6328_v62 = vpop.f32.mrf.mxu0 }
 0x175   : > { %4886 = vmatprep.mubr.msk.f32.mxu0 %vm1084_vm2, %v5628_v33 }
 0x176   : > { %v6340_v33 = vpop.f32.mrf.mxu0 }
 0x177   : > { %4840 = vmatmul.mubr.msk.f32.gmra.mxu1 %vm1084_vm2, %v5908_v15 }
 0x178   : > { %4842 = vmatprep.mubr.msk.f32.mxu1 %vm1084_vm2, %v5915_v55  ;;  %4887 = vmatmul.mubr.msk.f32.gmra.mxu0 %vm1084_vm2, %v5633_v46  ;;  %v7333_v46 = vld [vmem:[#allocation35_spill] sm:$0xff] }
 0x179   : > { %4889 = vmatprep.mubr.msk.f32.mxu0 %vm1084_vm2, %v5684_v17 }
 0x17b   : > { %4843 = vmatmul.mubr.msk.f32.gmra.mxu1 %vm1084_vm2, %v5925_v53 }
 0x17c   : > { %4845 = vmatprep.mubr.msk.f32.mxu1 %vm1084_vm2, %v5932_v63  ;;  %4890 = vmatmul.mubr.msk.f32.gmra.mxu0 %vm1084_vm2, %v5689_v50  ;;  %v6330_v50 = vpop.f32.mrf.mxu1 }
 0x17d   : > { %4892 = vmatprep.mubr.msk.f32.mxu0 %vm1084_vm2, %v5739_v5  ;;  %v7334_v5 = vld [vmem:[#allocation36_spill] sm:$0xff] }
 0x17e   : > { %v6342_v17 = vpop.f32.mrf.mxu1 }
 0x17f   : > { %4846 = vmatmul.mubr.msk.f32.gmra.mxu1 %vm1084_vm2, %v7332_v40 }
 0x180   : > { %4848 = vmatprep.mubr.msk.f32.mxu1 %vm1084_vm2, %v7333_v46  ;;  %4893 = vmatmul.mubr.msk.f32.gmra.mxu0 %vm1084_vm2, %v5745_v21  ;;  %v6346_v21 = vpop.f32.mrf.mxu0  ;;  %v6352_v59 = vpop.f32.mrf.mxu1 }
 0x181   : > { %4895 = vmatprep.mubr.msk.f32.mxu0 %vm1084_vm2, %v5784_v26  ;;  %v7335_v26 = vld [vmem:[#allocation37_spill] sm:$0xff] }
 0x182   : > { %v6364_v13 = vpop.f32.mrf.mxu1 }
 0x183   : > { %4849 = vmatmul.mubr.msk.f32.gmra.mxu1 %vm1084_vm2, %v5958_v41 }
 0x184   : > { %4851 = vmatprep.mubr.msk.f32.mxu1 %vm1084_vm2, %v7334_v5  ;;  %4896 = vmatmul.mubr.msk.f32.gmra.mxu0 %vm1084_vm2, %v5786_v6  ;;  %v7336_v6 = vld [vmem:[#allocation38_spill] sm:$0xff] }
 0x185   : > { %4898 = vmatprep.mubr.msk.f32.mxu0 %vm1084_vm2, %v5373_v25  ;;  %v6358_v25 = vpop.f32.mrf.mxu0 }
 0x187   : > { %4852 = vmatmul.mubr.msk.f32.gmra.mxu1 %vm1084_vm2, %v5976_v19 }
 0x188   : > { %4854 = vmatprep.mubr.msk.f32.mxu1 %vm1084_vm2, %v7335_v26  ;;  %4899 = vmatmul.mubr.msk.f32.gmra.mxu0 %vm1084_vm2, %v5380_v34  ;;  %v6368_v34 = vpop.f32.mrf.mxu0 }
 0x189   : > { %4901 = vmatprep.mubr.msk.f32.mxu0 %vm1084_vm2, %v5422_v7  ;;  %v6370_v7 = vpop.f32.mrf.mxu1 }
 0x18b   : > { %4855 = vmatmul.mubr.msk.f32.gmra.mxu1 %vm1084_vm2, %v5993_v56 }
 0x18c   : > { %4857 = vmatprep.mubr.msk.f32.mxu1 %vm1084_vm2, %v7336_v6  ;;  %4902 = vmatmul.mubr.msk.f32.gmra.mxu0 %vm1084_vm2, %v5424_v8  ;;  %v6380_v8 = vpop.f32.mrf.mxu0 }
 0x18d   : > { %4904 = vmatprep.mubr.msk.f32.mxu0 %vm1084_vm2, %v5485_v3  ;;  %v6382_v3 = vpop.f32.mrf.mxu1 }
 0x18e   : > { %7339 = vst [vmem:[#allocation20_spill] sm:$0xff] %v6382_v3  ;;  %v6386_v51 = vpop.f32.mrf.mxu0  ;;  %v2617_v3 = vrot.slane %v6235_v58, 2 }
 0x18f   : > { %4858 = vmatmul.mubr.msk.f32.gmra.mxu1 %vm1084_vm2, %v7337_v44 }
 0x190   : > { %4860 = vmatprep.mubr.msk.f32.mxu1 %vm1084_vm2, %v7338_v42  ;;  %4905 = vmatmul.mubr.msk.f32.gmra.mxu0 %vm1084_vm2, %v5487_v4  ;;  %v6392_v4 = vpop.f32.mrf.mxu1  ;;  %v6399_v9 = vpop.f32.mrf.mxu0 }
 0x191   : > { %4907 = vmatprep.mubr.msk.f32.mxu0 %vm1084_vm2, %v5541_v11  ;;  %7342 = vst [vmem:[#allocation21_spill] sm:$0xff] %v6392_v4  ;;  %v451_v11 = vld [vmem:[%s5336_s8 + $0x198] sm:$0xff] }
 0x192   : > { %v6405_v0 = vpop.f32.mrf.mxu1 }
 0x193   : > { %4861 = vmatmul.mubr.msk.f32.gmra.mxu1 %vm1084_vm2, %v7340_v20  ;;  %7344 = vst [vmem:[#allocation26_spill] sm:$0xff] %v6405_v0 }
 0x194   : > { %4863 = vmatprep.mubr.msk.f32.mxu1 %vm1084_vm2, %v7341_v24  ;;  %4908 = vmatmul.mubr.msk.f32.gmra.mxu0 %vm1084_vm2, %v5543_v12  ;;  %v6409_v12 = vpop.f32.mrf.mxu0  ;;  %v6413_v4 = vpop.f32.mrf.mxu1 }
 0x195   : > { %4910 = vmatprep.mubr.msk.f32.mxu0 %vm1084_vm2, %v5597_v38  ;;  %v511_v38 = vmul.f32 %v6197_v57, %v451_v11  ;;  %7345 = vst [vmem:[#allocation34_spill] sm:$0xff] %v6413_v4  ;;  %v7347_v4 = vld [vmem:[#allocation44_spill] sm:$0xff] }
 0x196   : > { %v6427_v0 = vpop.f32.mrf.mxu1 }
 0x197   : > { %4864 = vmatmul.mubr.msk.f32.gmra.mxu1 %vm1084_vm2, %v6044_v10  ;;  %v571_v11 = vadd.f32 %v6214_v35, %v511_v38  ;;  %7346 = vst [vmem:[#allocation35_spill] sm:$0xff] %v6427_v0 }
 0x198   : > { %4866 = vmatprep.mubr.msk.f32.mxu1 %vm1084_vm2, %v7343_v16  ;;  %4911 = vmatmul.mubr.msk.f32.gmra.mxu0 %vm1084_vm2, %v5599_v47  ;;  %v512_v47 = vmul.f32 %v6197_v57, %v452_v32 }
 0x199   : > { %4913 = vmatprep.mubr.msk.f32.mxu0 %vm1084_vm2, %v5653_v37  ;;  %v6424_v37 = vpop.f32.mrf.mxu0  ;;  %v625_v0 = vmax.f32 %v571_v11, 0.0  ;;  %v891_v11 = vpop.permute.xlu0 %890 }
 0x19a   : > { %v572_v38 = vadd.f32 %v6214_v35, %v512_v47 }
 0x19b   : > { %4867 = vmatmul.mubr.msk.f32.gmra.mxu1 %vm1084_vm2, %v6061_v48  ;;  %v6433_v48 = vpop.f32.mrf.mxu0  ;;  %v6439_v32 = vpop.f32.mrf.mxu1 }
 0x19c   : > { %4869 = vmatprep.mubr.msk.f32.mxu1 %vm1084_vm2, %v6068_v30  ;;  %4914 = vmatmul.mubr.msk.f32.gmra.mxu0 %vm1084_vm2, %v5655_v45  ;;  %v2618_v30 = vrot.slane %v6237_v31, 2  ;;  %v7348_v45 = vld [vmem:[#allocation45_spill] sm:$0xff]  ;;  %7349 = vst [vmem:[#allocation36_spill] sm:$0xff] %v6439_v32 }
 0x19d   : > { %4916 = vmatprep.mubr.msk.f32.mxu0 %vm1084_vm2, %v7298_v18  ;;  %v2620_v18 = vrot.slane %v6245_v52, 2  ;;  %v6450_v60 = vpop.f32.mrf.mxu0 }
 0x19e   : > { %v6448_v29 = vsel %vm1670_vm3, %v2617_v3, %v2618_v30 }
 0x19f   : > { %4870 = vmatmul.mubr.msk.f32.gmra.mxu1 %vm1084_vm2, %v7347_v4  ;;  %v7350_v4 = vld [vmem:[#allocation46_spill] sm:$0xff]  ;;  %7351 = vst [vmem:[#allocation37_spill] sm:$0xff] %v6448_v29  ;;  %v6463_v3 = vsel %vm1670_vm3, %v2618_v30, %v2620_v18  ;;  %v7358_v18 = vld [vmem:[#allocation11_spill] sm:$0xff] }
 0x1a0   : > { %4872 = vmatprep.mubr.msk.f32.mxu1 %vm1084_vm2, %v7348_v45  ;;  %4917 = vmatmul.mubr.msk.f32.gmra.mxu0 %vm1084_vm2, %v7300_v22  ;;  %v886_v45 = vpop.permute.xlu1 %885  ;;  %v626_v22 = vmax.f32 %v572_v38, 0.0  ;;  %v6460_v52 = vpop.f32.mrf.mxu0  ;;  %7353 = vst [vmem:[#allocation39_spill] sm:$0xff] %v6463_v3 }
 0x1a1   : > { %4919 = vmatprep.mubr.msk.f32.mxu0 %vm1084_vm2, %v5760_v1  ;;  %v6456_v1 = vpop.f32.mrf.mxu1  ;;  %v6465_v47 = vmul.f32 %v886_v45, %v625_v0 }
 0x1a2   : > { %7352 = vst [vmem:[#allocation38_spill] sm:$0xff] %v6456_v1  ;;  %v6479_v30 = vmul.f32 %v891_v11, %v626_v22  ;;  %v6481_v0 = vpop.f32.mrf.mxu0 }
 0x1a3   : > { %4873 = vmatmul.mubr.msk.f32.gmra.mxu1 %vm1084_vm2, %v7350_v4  ;;  %7354 = vst [vmem:[#allocation40_spill] sm:$0xff] %v6465_v47  ;;  %v7362_v4 = vld [vmem:[#allocation19_spill] sm:$0xff] }
 0x1a4   : > { %4875 = vmatprep.mubr.msk.f32.mxu1 %vm1084_vm2, %v6448_v29  ;;  %4920 = vmatmul.mubr.msk.f32.gmra.mxu0 %vm1084_vm2, %v5762_v61  ;;  %v7356_v61 = vld [vmem:[#allocation10_spill] sm:$0xff] }
 0x1a5   : > { %4922 = vmatprep.mubr.msk.f32.mxu0 %vm1084_vm2, %v6235_v58 }
 0x1a7   : > { %v6467_v32 = vpop.f32.mrf.mxu1  ;;  %4876 = vmatmul.mubr.msk.f32.gmra.mxu1 %vm1084_vm2, %v6463_v3  ;;  %v7360_v3 = vld [vmem:[#allocation15_spill] sm:$0xff] }
 0x1a8   : > { %7355 = vst [vmem:[#allocation41_spill] sm:$0xff] %v6467_v32  ;;  %4923 = vmatmul.mubr.msk.f32.gmra.mxu0 %vm1084_vm2, %v6237_v31  ;;  %4930 = vmatprep.mubr.msk.f32.mxu1 %vm1084_vm2, %v7356_v61  ;;  %v7359_v31 = vld [vmem:[#allocation14_spill] sm:$0xff] }
 0x1a9   : > { %v6475_v58 = vpop.f32.mrf.mxu1  ;;  %4925 = vmatprep.mubr.msk.f32.mxu0 %vm1084_vm2, %v6465_v47  ;;  %v7361_v32 = vld [vmem:[#allocation18_spill] sm:$0xff]  ;;  %v7363_v47 = vld [vmem:[#allocation24_spill] sm:$0xff] }
 0x1aa   : > { %7357 = vst [vmem:[#allocation42_spill] sm:$0xff] %v6475_v58 }
 0x1ab   : > { %v4632_v45 = vpop.f32.mrf.mxu1  ;;  %4931 = vmatmul.mubr.msk.f32.vlgmr.msra.gmra.mxu1 %vm1084_vm2, %v7358_v18 }
 0x1ac   : > { %v6485_v38 = vpop.f32.mrf.mxu0  ;;  %4926 = vmatmul.mubr.msk.f32.gmra.mxu0 %vm1084_vm2, %v6479_v30  ;;  %4933 = vmatprep.mubr.msk.f32.mxu1 %vm1084_vm2, %v7359_v31  ;;  %v1517_v11 = vadd.f32 %v4632_v45, %v6328_v62 }
 0x1ad   : > { %v1511_v61 = vpop.f32.mrf.mxu1  ;;  %4980 = vmatprep.mubr.msk.f32.mxu0 %vm1084_vm2, %v5864_v36 }
 0x1ae   : > { %v6493_v22 = vpop.f32.mrf.mxu0  ;;  %v1512_v31 = vadd.f32 %v1511_v61, %v6340_v33 }
 0x1af   : > { %v4635_v58 = vpop.f32.mrf.mxu1  ;;  %4934 = vmatmul.mubr.msk.f32.gmra.mxu1 %vm1084_vm2, %v7360_v3 }
 0x1b0   : > { %v4682_v18 = vpop.f32.mrf.mxu0  ;;  %4936 = vmatprep.mubr.msk.f32.mxu1 %vm1084_vm2, %v7361_v32  ;;  %4981 = vmatmul.mubr.msk.f32.vlgmr.msra.gmra.mxu0 %vm1084_vm2, %v5874_v23  ;;  %v1527_v45 = vadd.f32 %v4635_v58, %v6346_v21 }
 0x1b1   : > { %v6503_v1 = vadd.f32 %v4682_v18, %v1517_v11  ;;  %v1521_v36 = vpop.f32.mrf.mxu1  ;;  %4983 = vmatprep.mubr.msk.f32.mxu0 %vm1084_vm2, %v5881_v43  ;;  %v7365_v18 = vld [vmem:[#allocation28_spill] sm:$0xff] }
 0x1b2   : > { %v1886_v62 = vpop.f32.mrf.mxu0  ;;  %v1522_v23 = vadd.f32 %v1521_v36, %v6358_v25 }
 0x1b3   : > { %v6508_v29 = vadd.f32 %v1886_v62, %v1512_v31  ;;  %v4638_v3 = vpop.f32.mrf.mxu1  ;;  %4937 = vmatmul.mubr.msk.f32.gmra.mxu1 %vm1084_vm2, %v7362_v4 }
 0x1b4   : > { %v4685_v32 = vpop.f32.mrf.mxu0  ;;  %4939 = vmatprep.mubr.msk.f32.mxu1 %vm1084_vm2, %v7363_v47  ;;  %4984 = vmatmul.mubr.msk.f32.gmra.mxu0 %vm1084_vm2, %v5891_v54  ;;  %v1537_v4 = vadd.f32 %v4638_v3, %v6368_v34  ;;  %v7364_v47 = vld [vmem:[#allocation25_spill] sm:$0xff] }
 0x1b5   : > { %v6517_v33 = vadd.f32 %v4685_v32, %v1527_v45  ;;  %v1531_v43 = vpop.f32.mrf.mxu1  ;;  %4986 = vmatprep.mubr.msk.f32.mxu0 %vm1084_vm2, %v5898_v27  ;;  %v7367_v32 = vld [vmem:[#allocation32_spill] sm:$0xff] }
 0x1b6   : > { %v1532_v21 = vadd.f32 %v1531_v43, %v6380_v8  ;;  %v1896_v58 = vpop.f32.mrf.mxu0 }
 0x1b7   : > { %v6523_v61 = vadd.f32 %v1896_v58, %v1522_v23  ;;  %v4641_v11 = vpop.f32.mrf.mxu1  ;;  %4940 = vmatmul.mubr.msk.f32.gmra.mxu1 %vm1084_vm2, %v7364_v47 }
 0x1b8   : > { %v1547_v54 = vadd.f32 %v4641_v11, %v6386_v51  ;;  %v4688_v25 = vpop.f32.mrf.mxu0  ;;  %4942 = vmatprep.mubr.msk.f32.mxu1 %vm1084_vm2, %v7365_v18  ;;  %4987 = vmatmul.mubr.msk.f32.gmra.mxu0 %vm1084_vm2, %v5908_v15  ;;  %v7366_v51 = vld [vmem:[#allocation29_spill] sm:$0xff]  ;;  %v7369_v11 = vld [vmem:[#allocation2_spill] sm:$0xff] }
 0x1b9   : > { %v6532_v27 = vadd.f32 %v4688_v25, %v1537_v4  ;;  %v1541_v8 = vpop.f32.mrf.mxu1  ;;  %4989 = vmatprep.mubr.msk.f32.mxu0 %vm1084_vm2, %v5915_v55 }
 0x1ba   : > { %v1542_v34 = vadd.f32 %v1541_v8, %v6399_v9  ;;  %v1906_v31 = vpop.f32.mrf.mxu0 }
 0x1bb   : > { %v6537_v36 = vadd.f32 %v1906_v31, %v1532_v21  ;;  %v4644_v62 = vpop.f32.mrf.mxu1  ;;  %4943 = vmatmul.mubr.msk.f32.gmra.mxu1 %vm1084_vm2, %v7366_v51 }
 0x1bc   : > { %v1557_v45 = vadd.f32 %v4644_v62, %v6409_v12  ;;  %v4691_v3 = vpop.f32.mrf.mxu0  ;;  %4945 = vmatprep.mubr.msk.f32.mxu1 %vm1084_vm2, %v7367_v32  ;;  %4990 = vmatmul.mubr.msk.f32.gmra.mxu0 %vm1084_vm2, %v5925_v53  ;;  %v7368_v12 = vld [vmem:[#allocation33_spill] sm:$0xff]  ;;  %v7373_v32 = vld [vmem:[#allocation8_spill] sm:$0xff] }
 0x1bd   : > { %v6546_v15 = vadd.f32 %v4691_v3, %v1547_v54  ;;  %v1551_v55 = vpop.f32.mrf.mxu1  ;;  %4992 = vmatprep.mubr.msk.f32.mxu0 %vm1084_vm2, %v5932_v63 }
 0x1be   : > { %v1552_v9 = vadd.f32 %v1551_v55, %v6424_v37  ;;  %v1916_v23 = vpop.f32.mrf.mxu0 }
 0x1bf   : > { %v6551_v43 = vadd.f32 %v1916_v23, %v1542_v34  ;;  %v4647_v21 = vpop.f32.mrf.mxu1  ;;  %4946 = vmatmul.mubr.msk.f32.gmra.mxu1 %vm1084_vm2, %v7368_v12  ;;  %v7371_v34 = vld [vmem:[#allocation4_spill] sm:$0xff]  ;;  %v7374_v23 = vld [vmem:[#allocation9_spill] sm:$0xff] }
 0x1c0   : > { %v1567_v58 = vadd.f32 %v4647_v21, %v6433_v48  ;;  %v4694_v4 = vpop.f32.mrf.mxu0  ;;  %4948 = vmatprep.mubr.msk.f32.mxu1 %vm1084_vm2, %v7369_v11  ;;  %4993 = vmatmul.mubr.msk.f32.gmra.mxu0 %vm1084_vm2, %v7332_v40  ;;  %v7370_v48 = vld [vmem:[#allocation3_spill] sm:$0xff]  ;;  %v7375_v12 = vld [vmem:[#allocation12_spill] sm:$0xff] }
 0x1c1   : > { %v6560_v53 = vadd.f32 %v4694_v4, %v1557_v45  ;;  %v1561_v63 = vpop.f32.mrf.mxu1  ;;  %4995 = vmatprep.mubr.msk.f32.mxu0 %vm1084_vm2, %v7333_v46 }
 0x1c2   : > { %v1562_v37 = vadd.f32 %v1561_v63, %v6450_v60  ;;  %v1926_v47 = vpop.f32.mrf.mxu0 }
 0x1c3   : > { %v6565_v54 = vadd.f32 %v1926_v47, %v1552_v9  ;;  %v4650_v25 = vpop.f32.mrf.mxu1  ;;  %4949 = vmatmul.mubr.msk.f32.gmra.mxu1 %vm1084_vm2, %v7370_v48 }
 0x1c4   : > { %v1577_v18 = vadd.f32 %v4650_v25, %v6460_v52  ;;  %v4697_v8 = vpop.f32.mrf.mxu0  ;;  %4951 = vmatprep.mubr.msk.f32.mxu1 %vm1084_vm2, %v7371_v34  ;;  %4996 = vmatmul.mubr.msk.f32.gmra.mxu0 %vm1084_vm2, %v5958_v41  ;;  %v7372_v52 = vld [vmem:[#allocation5_spill] sm:$0xff]  ;;  %v7377_v25 = vld [vmem:[#allocation16_spill] sm:$0xff] }
 0x1c5   : > { %v6574_v40 = vadd.f32 %v4697_v8, %v1567_v58  ;;  %v1571_v46 = vpop.f32.mrf.mxu1  ;;  %4998 = vmatprep.mubr.msk.f32.mxu0 %vm1084_vm2, %v7334_v5 }
 0x1c6   : > { %v1572_v60 = vadd.f32 %v1571_v46, %v6481_v0  ;;  %v1936_v31 = vpop.f32.mrf.mxu0 }
 0x1c7   : > { %v6579_v62 = vadd.f32 %v1936_v31, %v1562_v37  ;;  %v4653_v51 = vpop.f32.mrf.mxu1  ;;  %4952 = vmatmul.mubr.msk.f32.gmra.mxu1 %vm1084_vm2, %v7372_v52  ;;  %v7376_v37 = vld [vmem:[#allocation13_spill] sm:$0xff] }
 0x1c8   : > { %v1587_v45 = vadd.f32 %v4653_v51, %v6485_v38  ;;  %v4700_v3 = vpop.f32.mrf.mxu0  ;;  %4954 = vmatprep.mubr.msk.f32.mxu1 %vm1084_vm2, %v7373_v32  ;;  %4999 = vmatmul.mubr.msk.f32.gmra.mxu0 %vm1084_vm2, %v5976_v19 }
 0x1c9   : > { %v6588_v41 = vadd.f32 %v4700_v3, %v1577_v18  ;;  %v1581_v5 = vpop.f32.mrf.mxu1  ;;  %5001 = vmatprep.mubr.msk.f32.mxu0 %vm1084_vm2, %v7335_v26  ;;  %v896_v3 = vpop.permute.xlu1 %895 }
 0x1ca   : > { %v1582_v0 = vadd.f32 %v1581_v5, %v6493_v22  ;;  %v1946_v55 = vpop.f32.mrf.mxu0  ;;  %v453_v22 = vld [vmem:[%s5336_s8 + $0x1a8] sm:$0x3] }
 0x1cb   : > { %v6593_v9 = vadd.f32 %v1946_v55, %v1572_v60  ;;  %v4656_v38 = vpop.f32.mrf.mxu1  ;;  %4955 = vmatmul.mubr.msk.f32.gmra.mxu1 %vm1084_vm2, %v7374_v23  ;;  %v7378_v60 = vld [vmem:[#allocation17_spill] sm:$0xff]  ;;  %v7382_v55 = vld [vmem:[#allocation20_spill] sm:$0xff] }
 0x1cc   : > { %v4703_v21 = vpop.f32.mrf.mxu0  ;;  %4957 = vmatprep.mubr.msk.f32.mxu1 %vm1084_vm2, %v7375_v12  ;;  %5002 = vmatmul.mubr.msk.f32.gmra.mxu0 %vm1084_vm2, %v5993_v56  ;;  %v1597_v4 = vadd.f32 %v4656_v38, %v6314_v39  ;;  %v513_v39 = vmul.f32 %v6197_v57, %v453_v22 }
 0x1cd   : > { %v6601_v19 = vadd.f32 %v4703_v21, %v1587_v45  ;;  %v1591_v58 = vpop.f32.mrf.mxu1  ;;  %5004 = vmatprep.mubr.msk.f32.mxu0 %vm1084_vm2, %v7336_v6  ;;  %v7383_v21 = vld [vmem:[#allocation43_spill] sm:$0xff] }
 0x1ce   : > { %v1956_v26 = vpop.f32.mrf.mxu0  ;;  %v1592_v56 = vadd.f32 %v1591_v58, %v6324_v49  ;;  %v3158_v58 = vrot.slane %v6479_v30, 1 }
 0x1cf   : > { %v6607_v11 = vadd.f32 %v1956_v26, %v1582_v0  ;;  %v4659_v63 = vpop.f32.mrf.mxu1  ;;  %4958 = vmatmul.mubr.msk.f32.gmra.mxu1 %vm1084_vm2, %v7376_v37  ;;  %v7380_v0 = vld [vmem:[#allocation30_spill] sm:$0xff]  ;;  %v7384_v26 = vld [vmem:[#allocation21_spill] sm:$0xff]  ;;  %v7385_v37 = vld [vmem:[#allocation31_spill] sm:$0xff] }
 0x1d0   : > { %v4706_v47 = vpop.f32.mrf.mxu0  ;;  %4960 = vmatprep.mubr.msk.f32.mxu1 %vm1084_vm2, %v7377_v25  ;;  %5005 = vmatmul.mubr.msk.f32.gmra.mxu0 %vm1084_vm2, %v7337_v44  ;;  %v1607_v8 = vadd.f32 %v4659_v63, %v6330_v50  ;;  %v573_v50 = vadd.f32 %v6214_v35, %v513_v39  ;;  %v7386_v25 = vld [vmem:[#allocation6_spill] sm:$0xff] }
 0x1d1   : > { %v6616_v6 = vadd.f32 %v4706_v47, %v1597_v4  ;;  %v1601_v48 = vpop.f32.mrf.mxu1  ;;  %5007 = vmatprep.mubr.msk.f32.mxu0 %vm1084_vm2, %v7338_v42 }
 0x1d2   : > { %v1966_v18 = vpop.f32.mrf.mxu0  ;;  %v1602_v49 = vadd.f32 %v1601_v48, %v6342_v17  ;;  %v7388_v48 = vld [vmem:[#allocation40_spill] sm:$0xff] }
 0x1d3   : > { %v6622_v34 = vadd.f32 %v1966_v18, %v1592_v56  ;;  %v4662_v46 = vpop.f32.mrf.mxu1  ;;  %4961 = vmatmul.mubr.msk.f32.gmra.mxu1 %vm1084_vm2, %v7378_v60  ;;  %v7387_v56 = vld [vmem:[#allocation44_spill] sm:$0xff]  ;;  %v3157_v39 = vrot.slane %v7388_v48, 1  ;;  %v7389_v18 = vld [vmem:[#allocation26_spill] sm:$0xff] }
 0x1d4   : > { %v4709_v44 = vpop.f32.mrf.mxu0  ;;  %4963 = vmatprep.mubr.msk.f32.mxu1 %vm1084_vm2, %v7326_v2  ;;  %5008 = vmatmul.mubr.msk.f32.gmra.mxu0 %vm1084_vm2, %v7340_v20  ;;  %v1617_v51 = vadd.f32 %v4662_v46, %v6352_v59  ;;  %v627_v59 = vmax.f32 %v573_v50, 0.0  ;;  %v7391_v50 = vld [vmem:[#allocation34_spill] sm:$0xff] }
 0x1d5   : > { %v6631_v42 = vadd.f32 %v4709_v44, %v1607_v8  ;;  %v1611_v57 = vpop.f32.mrf.mxu1  ;;  %5010 = vmatprep.mubr.msk.f32.mxu0 %vm1084_vm2, %v7341_v24  ;;  %v7390_v44 = vld [vmem:[#allocation45_spill] sm:$0xff] }
 0x1d6   : > { %v1976_v31 = vpop.f32.mrf.mxu0  ;;  %v1612_v17 = vadd.f32 %v1611_v57, %v6364_v13  ;;  %v7381_v13 = vld [vmem:[#allocation23_spill] sm:$0xff] }
 0x1d7   : > { %v6637_v52 = vadd.f32 %v1976_v31, %v1602_v49  ;;  %v4665_v45 = vpop.f32.mrf.mxu1  ;;  %4964 = vmatmul.mubr.msk.f32.gmra.mxu1 %vm1084_vm2, %v7327_v28 }
 0x1d8   : > { %v4712_v2 = vpop.f32.mrf.mxu0  ;;  %4966 = vmatprep.mubr.msk.f32.mxu1 %vm1084_vm2, %v7328_v14  ;;  %5011 = vmatmul.mubr.msk.f32.gmra.mxu0 %vm1084_vm2, %v6044_v10  ;;  %v1627_v28 = vadd.f32 %v4665_v45, %v6370_v7  ;;  %v7379_v14 = vld [vmem:[#allocation27_spill] sm:$0xff]  ;;  %v951_v7 = vmul.f32 %v896_v3, %v627_v59 }
 0x1d9   : > { %v6646_v20 = vadd.f32 %v4712_v2, %v1617_v51  ;;  %v1621_v35 = vpop.f32.mrf.mxu1  ;;  %5013 = vmatprep.mubr.msk.f32.mxu0 %vm1084_vm2, %v7343_v16  ;;  %v7392_v2 = vld [vmem:[#allocation7_spill] sm:$0xff] }
 0x1da   : > { %v1986_v24 = vpop.f32.mrf.mxu0  ;;  %v1622_v16 = vadd.f32 %v1621_v35, %v7382_v55  ;;  %v3160_v49 = vrot.slane %v951_v7, 1  ;;  %v3429_v35 = vrot.slane %v6479_v30, 2  ;;  %v7394_v3 = vld [vmem:[#allocation35_spill] sm:$0xff] }
 0x1db   : > { %v6651_v32 = vadd.f32 %v1986_v24, %v1612_v17  ;;  %v4668_v5 = vpop.f32.mrf.mxu1  ;;  %4967 = vmatmul.mubr.msk.f32.gmra.mxu1 %vm1084_vm2, %v7379_v14  ;;  %v3159_v17 = vsel %vm1001_vm1, %v3157_v39, %v3158_v58  ;;  %v7393_v24 = vld [vmem:[#allocation46_spill] sm:$0xff] }
 0x1dc   : > { %v4715_v10 = vpop.f32.mrf.mxu0  ;;  %4969 = vmatprep.mubr.msk.f32.mxu1 %vm1084_vm2, %v7380_v0  ;;  %5014 = vmatmul.mubr.msk.f32.gmra.mxu0 %vm1084_vm2, %v7381_v13  ;;  %v1637_v22 = vadd.f32 %v4668_v5, %v7384_v26  ;;  %v3428_v0 = vrot.slane %v7388_v48, 2  ;;  %v7396_v13 = vld [vmem:[#allocation38_spill] sm:$0xff]  ;;  %v3161_v30 = vsel %vm1001_vm1, %v3158_v58, %v3160_v49 }
 0x1dd   : > { %v6660_v38 = vadd.f32 %v4715_v10, %v1627_v28  ;;  %v1631_v23 = vpop.f32.mrf.mxu1  ;;  %5016 = vmatprep.mubr.msk.f32.mxu0 %vm1084_vm2, %v7383_v21  ;;  %v7395_v10 = vld [vmem:[#allocation37_spill] sm:$0xff]  ;;  %v7397_v21 = vld [vmem:[#allocation36_spill] sm:$0xff] }
 0x1de   : > { %v1996_v12 = vpop.f32.mrf.mxu0  ;;  %v1632_v8 = vadd.f32 %v1631_v23, %v7389_v18  ;;  %v3431_v23 = vrot.slane %v951_v7, 2  ;;  %v7400_v7 = vld [vmem:[#allocation42_spill] sm:$0xff] }
 0x1df   : > { %v6666_v4 = vadd.f32 %v1996_v12, %v1622_v16  ;;  %v4671_v63 = vpop.f32.mrf.mxu1  ;;  %4970 = vmatmul.mubr.msk.f32.gmra.mxu1 %vm1084_vm2, %v7385_v37 }
 0x1e0   : > { %v4718_v47 = vpop.f32.mrf.mxu0  ;;  %4972 = vmatprep.mubr.msk.f32.mxu1 %vm1084_vm2, %v7386_v25  ;;  %5017 = vmatmul.mubr.msk.f32.gmra.mxu0 %vm1084_vm2, %v7387_v56  ;;  %v1647_v31 = vadd.f32 %v4671_v63, %v7391_v50  ;;  %v7398_v63 = vld [vmem:[#allocation41_spill] sm:$0xff]  ;;  %v7399_v25 = vld [vmem:[#allocation39_spill] sm:$0xff]  ;;  %v3430_v56 = vsel %vm1670_vm3, %v3428_v0, %v3429_v35 }
 0x1e1   : > { %v6676_v46 = vadd.f32 %v4718_v47, %v1637_v22  ;;  %v1641_v60 = vpop.f32.mrf.mxu1  ;;  %5019 = vmatprep.mubr.msk.f32.mxu0 %vm1084_vm2, %v7390_v44  ;;  %v3432_v44 = vsel %vm1670_vm3, %v3429_v35, %v3431_v23 }
 0x1e2   : > { %v2006_v57 = vpop.f32.mrf.mxu0  ;;  %v1642_v28 = vadd.f32 %v1641_v60, %v7394_v3 }
 0x1e3   : > { %v6681_v51 = vadd.f32 %v2006_v57, %v1632_v8  ;;  %v4674_v45 = vpop.f32.mrf.mxu1  ;;  %4973 = vmatmul.mubr.msk.f32.gmra.mxu1 %vm1084_vm2, %v7392_v2 }
 0x1e4   : > { %v4721_v59 = vpop.f32.mrf.mxu0  ;;  %4975 = vmatprep.mubr.msk.f32.mxu1 %vm1084_vm2, %v3159_v17  ;;  %5020 = vmatmul.mubr.msk.f32.gmra.mxu0 %vm1084_vm2, %v7393_v24  ;;  %v1657_v12 = vadd.f32 %v4674_v45, %v7397_v21 }
 0x1e5   : > { %v6691_v5 = vadd.f32 %v4721_v59, %v1647_v31  ;;  %v1651_v14 = vpop.f32.mrf.mxu1  ;;  %5022 = vmatprep.mubr.msk.f32.mxu0 %vm1084_vm2, %v7395_v10 }
 0x1e6   : > { %v1652_v55 = vadd.f32 %v1651_v14, %v7396_v13  ;;  %v2016_v16 = vpop.f32.mrf.mxu0 }
 0x1e7   : > { %v6699_v26 = vadd.f32 %v2016_v16, %v1642_v28  ;;  %v4677_v22 = vpop.f32.mrf.mxu1  ;;  %4976 = vmatmul.mubr.msk.f32.gmra.mxu1 %vm1084_vm2, %v3161_v30 }
 0x1e8   : > { %v1667_v37 = vadd.f32 %v4677_v22, %v7398_v63  ;;  %v4724_v47 = vpop.f32.mrf.mxu0  ;;  %5023 = vmatmul.mubr.msk.f32.gmra.mxu0 %vm1084_vm2, %v7399_v25 }
 0x1e9   : > { %v6706_v48 = vadd.f32 %v4724_v47, %v1657_v12  ;;  %v1661_v39 = vpop.f32.mrf.mxu1  ;;  %5025 = vmatprep.mubr.msk.f32.mxu0 %vm1084_vm2, %v3430_v56 }
 0x1ea   : > { %v1662_v58 = vadd.f32 %v1661_v39, %v7400_v7  ;;  %v2026_v18 = vpop.f32.mrf.mxu0 }
 0x1eb   : > { %v6710_v8 = vadd.f32 %v2026_v18, %v1652_v55  ;;  %v4732_v60 = vpop.f32.mrf.mxu1 }
 0x1ec   : > { %v2314_v49 = vadd.f32 %v4732_v60, %v6503_v1  ;;  %v4727_v57 = vpop.f32.mrf.mxu0  ;;  %5026 = vmatmul.mubr.msk.f32.gmra.mxu0 %vm1084_vm2, %v3432_v44 }
 0x1ed   : > { %v6715_v50 = vadd.f32 %v4727_v57, %v1667_v37  ;;  %v2154_v31 = vpop.f32.mrf.mxu1 }
 0x1ee   : > { %v2313_v45 = vadd.f32 %v2154_v31, %v6508_v29  ;;  %v2036_v2 = vpop.f32.mrf.mxu0 }
 0x1ef   : > { %v6718_v17 = vadd.f32 %v2036_v2, %v1662_v58  ;;  %v4735_v59 = vpop.f32.mrf.mxu1 }
 0x1f0   : > { %v2316_v24 = vadd.f32 %v4735_v59, %v6517_v33  ;;  %v4782_v3 = vpop.f32.mrf.mxu0 }
 0x1f1   : > { %v6721_v28 = vadd.f32 %v4782_v3, %v2314_v49  ;;  %v2164_v35 = vpop.f32.mrf.mxu1 }
 0x1f2   : > { %v2315_v1 = vadd.f32 %v2164_v35, %v6523_v61  ;;  %v2426_v14 = vpop.f32.mrf.mxu0 }
 0x1f3   : > { %v6724_v10 = vadd.f32 %v2426_v14, %v2313_v45  ;;  %v4738_v0 = vpop.f32.mrf.mxu1 }
 0x1f4   : > { %v2318_v13 = vadd.f32 %v4738_v0, %v6532_v27  ;;  %v4785_v55 = vpop.f32.mrf.mxu0 }
 0x1f5   : > { %v6727_v29 = vadd.f32 %v4785_v55, %v2316_v24  ;;  %v2174_v16 = vpop.f32.mrf.mxu1 }
 0x1f6   : > { %v2317_v30 = vadd.f32 %v2174_v16, %v6537_v36  ;;  %v2436_v23 = vpop.f32.mrf.mxu0 }
 0x1f7   : > { %v6730_v33 = vadd.f32 %v2436_v23, %v2315_v1  ;;  %v4741_v21 = vpop.f32.mrf.mxu1 }
 0x1f8   : > { %v2320_v12 = vadd.f32 %v4741_v21, %v6546_v15  ;;  %v4788_v22 = vpop.f32.mrf.mxu0 }
 0x1f9   : > { %v6733_v61 = vadd.f32 %v4788_v22, %v2318_v13  ;;  %v2184_v63 = vpop.f32.mrf.mxu1 }
 0x1fa   : > { %v2319_v37 = vadd.f32 %v2184_v63, %v6551_v43  ;;  %v2446_v47 = vpop.f32.mrf.mxu0 }
 0x1fb   : > { %v6736_v27 = vadd.f32 %v2446_v47, %v2317_v30  ;;  %v4744_v25 = vpop.f32.mrf.mxu1 }
 0x1fc   : > { %v2322_v56 = vadd.f32 %v4744_v25, %v6560_v53  ;;  %v4791_v39 = vpop.f32.mrf.mxu0 }
 0x1fd   : > { %v6739_v36 = vadd.f32 %v4791_v39, %v2320_v12  ;;  %v2194_v7 = vpop.f32.mrf.mxu1 }
 0x1fe   : > { %v2321_v58 = vadd.f32 %v2194_v7, %v6565_v54  ;;  %v2456_v18 = vpop.f32.mrf.mxu0 }
 0x1ff   : > { %v6742_v15 = vadd.f32 %v2456_v18, %v2319_v37  ;;  %v4747_v60 = vpop.f32.mrf.mxu1 }
 0x200   : > { %v2324_v44 = vadd.f32 %v4747_v60, %v6574_v40  ;;  %v4794_v49 = vpop.f32.mrf.mxu0 }
 0x201   : > { %v6745_v43 = vadd.f32 %v4794_v49, %v2322_v56  ;;  %v2204_v57 = vpop.f32.mrf.mxu1 }
 0x202   : > { %v2323_v31 = vadd.f32 %v2204_v57, %v6579_v62  ;;  %v2466_v45 = vpop.f32.mrf.mxu0 }
 0x203   : > { %v6748_v53 = vadd.f32 %v2466_v45, %v2321_v58  ;;  %v4750_v2 = vpop.f32.mrf.mxu1 }
 0x204   : > { %v2326_v59 = vadd.f32 %v4750_v2, %v6588_v41  ;;  %v4797_v24 = vpop.f32.mrf.mxu0 }
 0x205   : > { %v6751_v54 = vadd.f32 %v4797_v24, %v2324_v44  ;;  %v2214_v3 = vpop.f32.mrf.mxu1 }
 0x206   : > { %v2325_v35 = vadd.f32 %v2214_v3, %v6593_v9  ;;  %v2476_v1 = vpop.f32.mrf.mxu0 }
 0x207   : > { %v6754_v40 = vadd.f32 %v2476_v1, %v2323_v31  ;;  %v4753_v14 = vpop.f32.mrf.mxu1 }
 0x208   : > { %v2328_v0 = vadd.f32 %v4753_v14, %v6601_v19  ;;  %v4800_v13 = vpop.f32.mrf.mxu0 }
 0x209   : > { %v6757_v62 = vadd.f32 %v4800_v13, %v2326_v59  ;;  %v2224_v55 = vpop.f32.mrf.mxu1 }
 0x20a   : > { %v2327_v16 = vadd.f32 %v2224_v55, %v6607_v11  ;;  %v2486_v30 = vpop.f32.mrf.mxu0 }
 0x20b   : > { %v6760_v41 = vadd.f32 %v2486_v30, %v2325_v35  ;;  %v4756_v23 = vpop.f32.mrf.mxu1 }
 0x20c   : > { %v2330_v21 = vadd.f32 %v4756_v23, %v6616_v6  ;;  %v4803_v12 = vpop.f32.mrf.mxu0 }
 0x20d   : > { %v6763_v9 = vadd.f32 %v4803_v12, %v2328_v0  ;;  %v2234_v22 = vpop.f32.mrf.mxu1 }
 0x20e   : > { %v2329_v63 = vadd.f32 %v2234_v22, %v6622_v34  ;;  %v2496_v37 = vpop.f32.mrf.mxu0 }
 0x20f   : > { %v6766_v19 = vadd.f32 %v2496_v37, %v2327_v16  ;;  %v4759_v47 = vpop.f32.mrf.mxu1 }
 0x210   : > { %v2332_v25 = vadd.f32 %v4759_v47, %v6631_v42  ;;  %v4806_v56 = vpop.f32.mrf.mxu0 }
 0x211   : > { %v6769_v11 = vadd.f32 %v4806_v56, %v2330_v21  ;;  %v2244_v39 = vpop.f32.mrf.mxu1 }
 0x212   : > { %v2331_v7 = vadd.f32 %v2244_v39, %v6637_v52  ;;  %v2506_v58 = vpop.f32.mrf.mxu0 }
 0x213   : > { %v6772_v6 = vadd.f32 %v2506_v58, %v2329_v63  ;;  %v4762_v18 = vpop.f32.mrf.mxu1 }
 0x214   : > { %v2334_v60 = vadd.f32 %v4762_v18, %v6646_v20  ;;  %v4809_v44 = vpop.f32.mrf.mxu0 }
 0x215   : > { %v6775_v34 = vadd.f32 %v4809_v44, %v2332_v25  ;;  %v2254_v49 = vpop.f32.mrf.mxu1 }
 0x216   : > { %v2333_v57 = vadd.f32 %v2254_v49, %v6651_v32  ;;  %v2516_v31 = vpop.f32.mrf.mxu0 }
 0x217   : > { %7401 = vst [vmem:[#allocation22_spill] sm:$0xff] %v6775_v34  ;;  %v6778_v42 = vadd.f32 %v2516_v31, %v2331_v7  ;;  %v4765_v45 = vpop.f32.mrf.mxu1 }
 0x218   : > { %v2336_v2 = vadd.f32 %v4765_v45, %v6660_v38  ;;  %v4812_v59 = vpop.f32.mrf.mxu0 }
 0x219   : > { %7402 = vst [vmem:[#allocation10_spill] sm:$0xff] %v6778_v42  ;;  %v6781_v52 = vadd.f32 %v4812_v59, %v2334_v60  ;;  %v2264_v24 = vpop.f32.mrf.mxu1 }
 0x21a   : > { %v2335_v3 = vadd.f32 %v2264_v24, %v6666_v4  ;;  %v2526_v35 = vpop.f32.mrf.mxu0 }
 0x21b   : > { %7403 = vst [vmem:[#allocation11_spill] sm:$0xff] %v6781_v52  ;;  %v6784_v20 = vadd.f32 %v2526_v35, %v2333_v57  ;;  %v4768_v1 = vpop.f32.mrf.mxu1 }
 0x21c   : > { %v2338_v14 = vadd.f32 %v4768_v1, %v6676_v46  ;;  %v4815_v0 = vpop.f32.mrf.mxu0 }
 0x21d   : > { %7404 = vst [vmem:[#allocation14_spill] sm:$0xff] %v6784_v20  ;;  %v6787_v32 = vadd.f32 %v4815_v0, %v2336_v2  ;;  %v2274_v13 = vpop.f32.mrf.mxu1 }
 0x21e   : > { %v2337_v55 = vadd.f32 %v2274_v13, %v6681_v51  ;;  %v2536_v16 = vpop.f32.mrf.mxu0 }
 0x21f   : > { %7405 = vst [vmem:[#allocation15_spill] sm:$0xff] %v6787_v32  ;;  %v6790_v38 = vadd.f32 %v2536_v16, %v2335_v3  ;;  %v4771_v30 = vpop.f32.mrf.mxu1 }
 0x220   : > { %v2340_v23 = vadd.f32 %v4771_v30, %v6691_v5  ;;  %v4818_v21 = vpop.f32.mrf.mxu0 }
 0x221   : > { %7406 = vst [vmem:[#allocation18_spill] sm:$0xff] %v6790_v38  ;;  %v6793_v4 = vadd.f32 %v4818_v21, %v2338_v14  ;;  %v2284_v12 = vpop.f32.mrf.mxu1 }
 0x222   : > { %v2339_v22 = vadd.f32 %v2284_v12, %v6699_v26  ;;  %v2546_v63 = vpop.f32.mrf.mxu0 }
 0x223   : > { %7407 = vst [vmem:[#allocation19_spill] sm:$0xff] %v6793_v4  ;;  %v6796_v46 = vadd.f32 %v2546_v63, %v2337_v55  ;;  %v4774_v37 = vpop.f32.mrf.mxu1 }
 0x224   : > { %v2342_v47 = vadd.f32 %v4774_v37, %v6706_v48  ;;  %v4821_v25 = vpop.f32.mrf.mxu0 }
 0x225   : > { %7408 = vst [vmem:[#allocation24_spill] sm:$0xff] %v6796_v46  ;;  %v6799_v51 = vadd.f32 %v4821_v25, %v2340_v23  ;;  %v2294_v56 = vpop.f32.mrf.mxu1 }
 0x226   : > { %v2341_v39 = vadd.f32 %v2294_v56, %v6710_v8  ;;  %v2556_v7 = vpop.f32.mrf.mxu0 }
 0x227   : > { %7409 = vst [vmem:[#allocation25_spill] sm:$0xff] %v6799_v51  ;;  %v6802_v5 = vadd.f32 %v2556_v7, %v2339_v22  ;;  %v4777_v58 = vpop.f32.mrf.mxu1 }
 0x228   : > { %v2344_v18 = vadd.f32 %v4777_v58, %v6715_v50  ;;  %v4824_v60 = vpop.f32.mrf.mxu0 }
 0x229   : > { %7410 = vst [vmem:[#allocation28_spill] sm:$0xff] %v6802_v5  ;;  %v6805_v26 = vadd.f32 %v4824_v60, %v2342_v47  ;;  %v2304_v44 = vpop.f32.mrf.mxu1 }
 0x22a   : > { %v2343_v49 = vadd.f32 %v2304_v44, %v6718_v17  ;;  %v2566_v57 = vpop.f32.mrf.mxu0 }
 0x22b   : > { %7411 = vst [vmem:[#allocation29_spill] sm:$0xff] %v6805_v26  ;;  %v6808_v48 = vadd.f32 %v2566_v57, %v2341_v39  ;;  %v6810_v31 = vpop.f32.mrf.mxu1 }
 0x22c   : > { %v4827_v45 = vpop.f32.mrf.mxu0 }
 0x22d   : > { %7412 = vst [vmem:[#allocation32_spill] sm:$0xff] %v6808_v48  ;;  %v6812_v2 = vadd.f32 %v4827_v45, %v2344_v18  ;;  %v6814_v8 = vpop.f32.mrf.mxu1 }
 0x22e   : > { %v2576_v59 = vpop.f32.mrf.mxu0 }
 0x22f   : > { %7413 = vst [vmem:[#allocation33_spill] sm:$0xff] %v6812_v2  ;;  %v6816_v24 = vadd.f32 %v2576_v59, %v2343_v49  ;;  %v6818_v50 = vpop.f32.mrf.mxu1 }
 0x230   : > { %v6820_v3 = vpop.f32.mrf.mxu0 }
 0x231   : > { %7414 = vst [vmem:[#allocation2_spill] sm:$0xff] %v6816_v24  ;;  %v6822_v35 = vpop.f32.mrf.mxu1 }
 0x232   : > { %v6824_v17 = vpop.f32.mrf.mxu0 }
 0x233   : > { %v6826_v1 = vpop.f32.mrf.mxu1 }
 0x234   : > { %v6828_v14 = vpop.f32.mrf.mxu0 }
 0x235   : > { %v6830_v0 = vpop.f32.mrf.mxu1 }
 0x236   : > { %v6832_v13 = vpop.f32.mrf.mxu0 }
 0x237   : > { %v6834_v55 = vpop.f32.mrf.mxu1 }
 0x238   : > { %v6836_v16 = vpop.f32.mrf.mxu0 }
 0x239   : > { %v6838_v30 = vpop.f32.mrf.mxu1 }
 0x23a   : > { %v6840_v23 = vpop.f32.mrf.mxu0 }
 0x23b   : > { %v6842_v21 = vpop.f32.mrf.mxu1 }
 0x23c   : > { %v6844_v12 = vpop.f32.mrf.mxu0 }
 0x23d   : > { %v6846_v22 = vpop.f32.mrf.mxu1 }
 0x23e   : > { %v6848_v63 = vpop.f32.mrf.mxu0 }
 0x23f   : > { %v6850_v37 = vpop.f32.mrf.mxu1 }
 0x240   : > { %v6852_v47 = vpop.f32.mrf.mxu0 }
 0x241   : > { %v6854_v25 = vpop.f32.mrf.mxu1 }
 0x242   : > { %v6856_v56 = vpop.f32.mrf.mxu0 }
 0x243   : > { %v6858_v39 = vpop.f32.mrf.mxu1 }
 0x244   : > { %v6860_v7 = vpop.f32.mrf.mxu0 }
 0x245   : > { %v6862_v58 = vpop.f32.mrf.mxu1 }
 0x246   : > { %v6864_v18 = vpop.f32.mrf.mxu0 }
 0x247   : > { %v6866_v60 = vpop.f32.mrf.mxu1 }
 0x248   : > { %v6868_v44 = vpop.f32.mrf.mxu0 }
 0x249   : > { %v6870_v49 = vpop.f32.mrf.mxu1 }
 0x24a   : > { %v6872_v57 = vpop.f32.mrf.mxu0 }
 0x24b   : > { %v6874_v45 = vpop.f32.mrf.mxu1 }
 0x24c   : > { %v6876_v59 = vpop.f32.mrf.mxu0 }
 0x24d   : > { %v6878_v24 = vpop.f32.mrf.mxu1 }
 0x24e   : > { %v6880_v2 = vpop.f32.mrf.mxu0 }
 0x24f   : > { %v6882_v48 = vpop.f32.mrf.mxu1 }
 0x250   : > { %7415 = vst [vmem:[#allocation3_spill] sm:$0xff] %v6882_v48  ;;  %v6884_v26 = vpop.f32.mrf.mxu0 }
 0x251   : > { %v6886_v5 = vpop.f32.mrf.mxu1 }
 0x252   : > { %7416 = vst [vmem:[#allocation4_spill] sm:$0xff] %v6886_v5  ;;  %v6888_v51 = vpop.f32.mrf.mxu0 }
 0x253   : > { %7417 = vst [vmem:[#allocation5_spill] sm:$0xff] %v6888_v51  ;;  %v6890_v46 = vpop.f32.mrf.mxu1 }
 0x254   : > { %7418 = vst [vmem:[#allocation8_spill] sm:$0xff] %v6890_v46  ;;  %v6892_v4 = vpop.f32.mrf.mxu0 }
 0x255   : > { %7419 = vst [vmem:[#allocation9_spill] sm:$0xff] %v6892_v4  ;;  %v6894_v38 = vpop.f32.mrf.mxu1 }
 0x256   : > { %7420 = vst [vmem:[#allocation12_spill] sm:$0xff] %v6894_v38  ;;  %v6896_v32 = vpop.f32.mrf.mxu0 }
 0x257   : > { %7421 = vst [vmem:[#allocation13_spill] sm:$0xff] %v6896_v32  ;;  %v6898_v20 = vpop.f32.mrf.mxu1 }
 0x258   : > { %7422 = vst [vmem:[#allocation16_spill] sm:$0xff] %v6898_v20  ;;  %v6900_v52 = vpop.f32.mrf.mxu0 }
 0x259   : > { %7423 = vst [vmem:[#allocation17_spill] sm:$0xff] %v6900_v52  ;;  %v6902_v42 = vpop.f32.mrf.mxu1 }
 0x25a   : > { %7424 = vst [vmem:[#allocation27_spill] sm:$0xff] %v6902_v42  ;;  %v6904_v48 = vpop.f32.mrf.mxu0 }
 0x25b   : > { %7425 = vst [vmem:[#allocation30_spill] sm:$0xff] %v6904_v48  ;;  %v6906_v34 = vpop.f32.mrf.mxu1 }
 0x25c   : > { %7426 = vst [vmem:[#allocation23_spill] sm:$0xff] %v6906_v34  ;;  %v6908_v5 = vpop.f32.mrf.mxu0 }
 0x25d   : > { %7427 = vst [vmem:[#allocation20_spill] sm:$0xff] %v6908_v5  ;;  %v6910_v51 = vpop.f32.mrf.mxu1 }
 0x25e   : > { %7428 = vst [vmem:[#allocation43_spill] sm:$0xff] %v6910_v51  ;;  %v6912_v46 = vpop.f32.mrf.mxu0 }
 0x25f   : > { %7429 = vst [vmem:[#allocation21_spill] sm:$0xff] %v6912_v46  ;;  %v6914_v4 = vpop.f32.mrf.mxu1 }
 0x260   : > { %7430 = vst [vmem:[#allocation31_spill] sm:$0xff] %v6914_v4  ;;  %v6916_v38 = vpop.f32.mrf.mxu0 }
 0x261   : > { %7431 = vst [vmem:[#allocation6_spill] sm:$0xff] %v6916_v38  ;;  %v6918_v32 = vpop.f32.mrf.mxu1 }
 0x262   : > { %7432 = vst [vmem:[#allocation44_spill] sm:$0xff] %v6918_v32  ;;  %v6920_v20 = vpop.f32.mrf.mxu0  ;;  %v2857_v32 = vadd.f32 %v6810_v31, %v6721_v28  ;;  %v6953_v31 = vld [vmem:[%s7164_s5] ss:$0 sm:$0xff] }
 0x263   : > { %7433 = vst [vmem:[#allocation40_spill] sm:$0xff] %v6920_v20  ;;  %v6922_v52 = vpop.f32.mrf.mxu1 }
 0x264   : > { %7434 = vst [vmem:[#allocation26_spill] sm:$0xff] %v6922_v52  ;;  %v6924_v42 = vpop.f32.mrf.mxu0  ;;  %v2856_v52 = vadd.f32 %v6814_v8, %v6724_v10  ;;  %v2858_v10 = vadd.f32 %v6822_v35, %v6730_v33 }
 0x265   : > { %7435 = vst [vmem:[#allocation45_spill] sm:$0xff] %v6924_v42  ;;  %v6926_v48 = vpop.f32.mrf.mxu1 }
 0x266   : > { %7436 = vst [vmem:[#allocation34_spill] sm:$0xff] %v6926_v48  ;;  %v6928_v34 = vpop.f32.mrf.mxu0  ;;  %v3125_v48 = vadd.f32 %v6820_v3, %v2857_v32 }
 0x267   : > { %7437 = vst [vmem:[#allocation7_spill] sm:$0xff] %v6928_v34  ;;  %v6930_v5 = vpop.f32.mrf.mxu1 }
 0x268   : > { %7438 = vst [vmem:[#allocation46_spill] sm:$0xff] %v6930_v5  ;;  %v6932_v51 = vpop.f32.mrf.mxu0  ;;  %v2859_v5 = vadd.f32 %v6818_v50, %v6727_v29  ;;  %v2861_v29 = vadd.f32 %v6826_v1, %v6733_v61 }
 0x269   : > { %7439 = vst [vmem:[#allocation35_spill] sm:$0xff] %v6932_v51  ;;  %v6934_v46 = vpop.f32.mrf.mxu1 }
 0x26a   : > { %7440 = vst [vmem:[#allocation37_spill] sm:$0xff] %v6934_v46  ;;  %v6936_v4 = vpop.f32.mrf.mxu0  ;;  %v3124_v46 = vadd.f32 %v6824_v17, %v2856_v52  ;;  %v3127_v32 = vadd.f32 %v6828_v14, %v2859_v5  ;;  %v6963_v52 = vld [vmem:[%s7165_s6] ss:$0 sm:$0xff] }
 0x26b   : > { %7441 = vst [vmem:[#allocation38_spill] sm:$0xff] %v6936_v4  ;;  %v4932_v20 = vpop.f32.mrf.mxu1 }
 0x26c   : > { %v6940_v38 = vpop.f32.mrf.mxu0  ;;  %v3397_v4 = vadd.f32 %v4932_v20, %v3125_v48  ;;  %v3126_v48 = vadd.f32 %v6832_v13, %v2858_v10 }
 0x26d   : > { %v3237_v34 = vpop.f32.mrf.mxu1 }
 0x26e   : > { %v6945_v42 = vpop.f32.mrf.mxu0  ;;  %v3396_v8 = vadd.f32 %v3237_v34, %v3124_v46  ;;  %v2860_v34 = vadd.f32 %v6830_v0, %v6736_v27 }
 0x26f   : > { %7442 = vst [vmem:[#allocation36_spill] sm:$0xff] %v6945_v42  ;;  %v4935_v51 = vpop.f32.mrf.mxu1 }
 0x270   : > { %v4982_v28 = vpop.f32.mrf.mxu0  ;;  %v3399_v50 = vadd.f32 %v4935_v51, %v3127_v32  ;;  %v2863_v51 = vadd.f32 %v6834_v55, %v6739_v36  ;;  %v3128_v13 = vadd.f32 %v6840_v23, %v2860_v34  ;;  %v2862_v36 = vadd.f32 %v6838_v30, %v6742_v15 }
 0x271   : > { %v3668_v3 = vadd.f32 %v4982_v28, %v3397_v4  ;;  %v3247_v42 = vpop.f32.mrf.mxu1  ;;  %v3129_v4 = vadd.f32 %v6836_v16, %v2861_v29 }
 0x272   : > { %v3508_v20 = vpop.f32.mrf.mxu0  ;;  %v3398_v17 = vadd.f32 %v3247_v42, %v3126_v48  ;;  %v3131_v55 = vadd.f32 %v6844_v12, %v2863_v51 }
 0x273   : > { %v3707_v33 = vmul.f32 %v6953_v31, %v3668_v3  ;;  %v3667_v35 = vadd.f32 %v3508_v20, %v3396_v8  ;;  %v4938_v5 = vpop.f32.mrf.mxu1 }
 0x274   : > { %v4985_v61 = vpop.f32.mrf.mxu0  ;;  %v3401_v27 = vadd.f32 %v4938_v5, %v3129_v4  ;;  %v3130_v5 = vadd.f32 %v6848_v63, %v2862_v36 }
 0x275   : > { %v3746_v46 = vadd.f32 %v6963_v52, %v3707_v33  ;;  %v3706_v1 = vmul.f32 %v6953_v31, %v3667_v35  ;;  %v3670_v14 = vadd.f32 %v4985_v61, %v3399_v50  ;;  %v3257_v28 = vpop.f32.mrf.mxu1  ;;  %v2865_v35 = vadd.f32 %v6842_v21, %v6745_v43 }
 0x276   : > { %v3518_v0 = vpop.f32.mrf.mxu0  ;;  %v3400_v23 = vadd.f32 %v3257_v28, %v3128_v13 }
 0x277   : > { %v3778_v16 = vmax.f32 %v3746_v46, 0.0  ;;  %v3745_v42 = vadd.f32 %v6963_v52, %v3706_v1  ;;  %v3709_v10 = vmul.f32 %v6953_v31, %v3670_v14  ;;  %v3669_v32 = vadd.f32 %v3518_v0, %v3398_v17  ;;  %v4941_v8 = vpop.f32.mrf.mxu1 }
 0x278   : > { %v4988_v3 = vpop.f32.mrf.mxu0  ;;  %v3403_v34 = vadd.f32 %v4941_v8, %v3131_v55  ;;  %v2864_v17 = vadd.f32 %v6846_v22, %v6748_v53  ;;  %v3133_v1 = vadd.f32 %v6852_v47, %v2865_v35  ;;  %v2866_v8 = vadd.f32 %v6854_v25, %v6754_v40 }
 0x279   : > { %3810 = vst [vmem:[%s6979_s16 + $0x8] sm:$0xff] %v3778_v16  ;;  %v3777_v29 = vmax.f32 %v3745_v42, 0.0  ;;  %v3748_v20 = vadd.f32 %v6963_v52, %v3709_v10  ;;  %v3708_v48 = vmul.f32 %v6953_v31, %v3669_v32  ;;  %v3672_v50 = vadd.f32 %v4988_v3, %v3401_v27  ;;  %v3267_v33 = vpop.f32.mrf.mxu1 }
 0x27a   : > { %v3528_v15 = vpop.f32.mrf.mxu0  ;;  %v3402_v14 = vadd.f32 %v3267_v33, %v3130_v5  ;;  %v2867_v27 = vadd.f32 %v6850_v37, %v6751_v54  ;;  %v3132_v0 = vadd.f32 %v6856_v56, %v2864_v17 }
 0x27b   : > { %3809 = vst [vmem:[%s6979_s16] sm:$0xff] %v3777_v29  ;;  %v3780_v30 = vmax.f32 %v3748_v20, 0.0  ;;  %v3747_v12 = vadd.f32 %v6963_v52, %v3708_v48  ;;  %v3711_v4 = vmul.f32 %v6953_v31, %v3672_v50  ;;  %v3671_v61 = vadd.f32 %v3528_v15, %v3400_v23  ;;  %v4944_v46 = vpop.f32.mrf.mxu1 }
 0x27c   : > { %v4991_v43 = vpop.f32.mrf.mxu0  ;;  %v3405_v16 = vadd.f32 %v4944_v46, %v3133_v1  ;;  %v3135_v36 = vadd.f32 %v6860_v7, %v2867_v27  ;;  %v2869_v20 = vadd.f32 %v6858_v39, %v6757_v62  ;;  %v3134_v48 = vadd.f32 %v6864_v18, %v2866_v8 }
 0x27d   : > { %3812 = vst [vmem:[%s6979_s16 + $0x18] sm:$0xff] %v3780_v30  ;;  %v3779_v21 = vmax.f32 %v3747_v12, 0.0  ;;  %v3750_v63 = vadd.f32 %v6963_v52, %v3711_v4  ;;  %v3710_v28 = vmul.f32 %v6953_v31, %v3671_v61  ;;  %v3674_v51 = vadd.f32 %v4991_v43, %v3403_v34  ;;  %v3277_v13 = vpop.f32.mrf.mxu1 }
 0x27e   : > { %v3538_v53 = vpop.f32.mrf.mxu0  ;;  %v3404_v55 = vadd.f32 %v3277_v13, %v3132_v0  ;;  %v2868_v34 = vadd.f32 %v6862_v58, %v6760_v41  ;;  %v3137_v15 = vadd.f32 %v6868_v44, %v2869_v20  ;;  %v2871_v46 = vadd.f32 %v6866_v60, %v6763_v9 }
 0x27f   : > { %3811 = vst [vmem:[%s6979_s16 + $0x10] sm:$0xff] %v3779_v21  ;;  %v3782_v22 = vmax.f32 %v3750_v63, 0.0  ;;  %v3749_v47 = vadd.f32 %v6963_v52, %v3710_v28  ;;  %v3713_v42 = vmul.f32 %v6953_v31, %v3674_v51  ;;  %v3673_v10 = vadd.f32 %v3538_v53, %v3402_v14  ;;  %v4947_v32 = vpop.f32.mrf.mxu1 }
 0x280   : > { %v4994_v54 = vpop.f32.mrf.mxu0  ;;  %v3407_v50 = vadd.f32 %v4947_v32, %v3135_v36  ;;  %v3136_v17 = vadd.f32 %v6872_v57, %v2868_v34  ;;  %v2870_v63 = vadd.f32 %v6870_v49, %v6766_v19  ;;  %v3139_v28 = vadd.f32 %v6876_v59, %v2871_v46  ;;  %v7450_v46 = vld [vmem:[#allocation8_spill] sm:$0xff] }
 0x281   : > { %3814 = vst [vmem:[%s6979_s16 + $0x28] sm:$0xff] %v3782_v22  ;;  %v3781_v37 = vmax.f32 %v3749_v47, 0.0  ;;  %v3752_v56 = vadd.f32 %v6963_v52, %v3713_v42  ;;  %v3712_v23 = vmul.f32 %v6953_v31, %v3673_v10  ;;  %v3676_v3 = vadd.f32 %v4994_v54, %v3405_v16  ;;  %v3287_v29 = vpop.f32.mrf.mxu1 }
 0x282   : > { %v3548_v40 = vpop.f32.mrf.mxu0  ;;  %v3406_v30 = vadd.f32 %v3287_v29, %v3134_v48  ;;  %v2873_v16 = vadd.f32 %v6874_v45, %v6769_v11  ;;  %v3138_v53 = vadd.f32 %v6880_v2, %v2870_v63  ;;  %v2872_v32 = vadd.f32 %v6878_v24, %v6772_v6  ;;  %v7445_v29 = vld [vmem:[#allocation5_spill] sm:$0xff] }
 0x283   : > { %3813 = vst [vmem:[%s6979_s16 + $0x20] sm:$0xff] %v3781_v37  ;;  %v3784_v25 = vmax.f32 %v3752_v56, 0.0  ;;  %v3751_v7 = vadd.f32 %v6963_v52, %v3712_v23  ;;  %v3715_v33 = vmul.f32 %v6953_v31, %v3676_v3  ;;  %v3675_v35 = vadd.f32 %v3548_v40, %v3404_v55  ;;  %v4950_v5 = vpop.f32.mrf.mxu1  ;;  %v7443_v56 = vld [vmem:[#allocation22_spill] sm:$0xff]  ;;  %v7444_v23 = vld [vmem:[#allocation3_spill] sm:$0xff] }
 0x284   : > { %v4997_v62 = vpop.f32.mrf.mxu0  ;;  %v3409_v1 = vadd.f32 %v4950_v5, %v3137_v15  ;;  %v3141_v8 = vadd.f32 %v6884_v26, %v2873_v16  ;;  %v2875_v3 = vadd.f32 %v7444_v23, %v7443_v56  ;;  %v3140_v20 = vadd.f32 %v7445_v29, %v2872_v32  ;;  %v7448_v5 = vld [vmem:[#allocation9_spill] sm:$0xff]  ;;  %v7459_v56 = vld [vmem:[#allocation27_spill] sm:$0xff] }
 0x285   : > { %3816 = vst [vmem:[%s6979_s16 + $0x38] sm:$0xff] %v3784_v25  ;;  %v3783_v39 = vmax.f32 %v3751_v7, 0.0  ;;  %v3754_v18 = vadd.f32 %v6963_v52, %v3715_v33  ;;  %v3714_v12 = vmul.f32 %v6953_v31, %v3675_v35  ;;  %v3678_v4 = vadd.f32 %v4997_v62, %v3407_v50  ;;  %v3297_v61 = vpop.f32.mrf.mxu1  ;;  %v7446_v7 = vld [vmem:[#allocation10_spill] sm:$0xff]  ;;  %v7447_v33 = vld [vmem:[#allocation4_spill] sm:$0xff] }
 0x286   : > { %v3558_v41 = vpop.f32.mrf.mxu0  ;;  %v3408_v51 = vadd.f32 %v3297_v61, %v3136_v17  ;;  %v2874_v35 = vadd.f32 %v7447_v33, %v7446_v7  ;;  %v3143_v34 = vadd.f32 %v7448_v5, %v2875_v3  ;;  %v7449_v61 = vld [vmem:[#allocation11_spill] sm:$0xff]  ;;  %v7460_v3 = vld [vmem:[#allocation20_spill] sm:$0xff] }
 0x287   : > { %3815 = vst [vmem:[%s6979_s16 + $0x30] sm:$0xff] %v3783_v39  ;;  %v3786_v58 = vmax.f32 %v3754_v18, 0.0  ;;  %v3753_v44 = vadd.f32 %v6963_v52, %v3714_v12  ;;  %v3717_v14 = vmul.f32 %v6953_v31, %v3678_v4  ;;  %v3677_v43 = vadd.f32 %v3558_v41, %v3406_v30  ;;  %v4953_v21 = vpop.f32.mrf.mxu1  ;;  %v7462_v7 = vld [vmem:[#allocation23_spill] sm:$0xff] }
 0x288   : > { %v5000_v9 = vpop.f32.mrf.mxu0  ;;  %v3411_v22 = vadd.f32 %v4953_v21, %v3139_v28  ;;  %v2877_v17 = vadd.f32 %v7450_v46, %v7449_v61  ;;  %v7465_v61 = vld [vmem:[#allocation43_spill] sm:$0xff] }
 0x289   : > { %3818 = vst [vmem:[%s6979_s16 + $0x48] sm:$0xff] %v3786_v58  ;;  %v3785_v60 = vmax.f32 %v3753_v44, 0.0  ;;  %v3756_v57 = vadd.f32 %v6963_v52, %v3717_v14  ;;  %v3716_v13 = vmul.f32 %v6953_v31, %v3677_v43  ;;  %v3680_v27 = vadd.f32 %v5000_v9, %v3409_v1  ;;  %v3307_v0 = vpop.f32.mrf.mxu1  ;;  %v7451_v1 = vld [vmem:[#allocation13_spill] sm:$0xff]  ;;  %v7453_v9 = vld [vmem:[#allocation12_spill] sm:$0xff] }
 0x28a   : > { %v3568_v19 = vpop.f32.mrf.mxu0  ;;  %v3410_v36 = vadd.f32 %v3307_v0, %v3138_v53  ;;  %v3142_v41 = vadd.f32 %v7451_v1, %v2874_v35  ;;  %v7463_v35 = vld [vmem:[#allocation21_spill] sm:$0xff] }
 0x28b   : > { %3817 = vst [vmem:[%s6979_s16 + $0x40] sm:$0xff] %v3785_v60  ;;  %v3788_v49 = vmax.f32 %v3756_v57, 0.0  ;;  %v3755_v59 = vadd.f32 %v6963_v52, %v3716_v13  ;;  %v3719_v47 = vmul.f32 %v6953_v31, %v3680_v27  ;;  %v3679_v42 = vadd.f32 %v3568_v19, %v3408_v51  ;;  %v4956_v10 = vpop.f32.mrf.mxu1  ;;  %v7452_v51 = vld [vmem:[#allocation14_spill] sm:$0xff]  ;;  %v7454_v57 = vld [vmem:[#allocation17_spill] sm:$0xff] }
 0x28c   : > { %v5003_v11 = vpop.f32.mrf.mxu0  ;;  %v3413_v48 = vadd.f32 %v4956_v10, %v3141_v8  ;;  %v2876_v60 = vadd.f32 %v7453_v9, %v7452_v51  ;;  %v3145_v13 = vadd.f32 %v7454_v57, %v2877_v17  ;;  %v7457_v10 = vld [vmem:[#allocation30_spill] sm:$0xff]  ;;  %v7468_v51 = vld [vmem:[#allocation31_spill] sm:$0xff] }
 0x28d   : > { %3820 = vst [vmem:[%s6979_s16 + $0x58] sm:$0xff] %v3788_v49  ;;  %v3787_v2 = vmax.f32 %v3755_v59, 0.0  ;;  %v3758_v45 = vadd.f32 %v6963_v52, %v3719_v47  ;;  %v3718_v55 = vmul.f32 %v6953_v31, %v3679_v42  ;;  %v3682_v54 = vadd.f32 %v5003_v11, %v3411_v22  ;;  %v3317_v37 = vpop.f32.mrf.mxu1  ;;  %v7455_v59 = vld [vmem:[#allocation15_spill] sm:$0xff]  ;;  %v7456_v47 = vld [vmem:[#allocation16_spill] sm:$0xff]  ;;  %v7466_v17 = vld [vmem:[#allocation6_spill] sm:$0xff] }
 0x28e   : > { %v3578_v6 = vpop.f32.mrf.mxu0  ;;  %v3412_v15 = vadd.f32 %v3317_v37, %v3140_v20  ;;  %v2879_v42 = vadd.f32 %v7456_v47, %v7455_v59  ;;  %v3144_v32 = vadd.f32 %v7457_v10, %v2876_v60  ;;  %v7458_v37 = vld [vmem:[#allocation18_spill] sm:$0xff]  ;;  %v7469_v60 = vld [vmem:[#allocation40_spill] sm:$0xff] }
 0x28f   : > { %3819 = vst [vmem:[%s6979_s16 + $0x50] sm:$0xff] %v3787_v2  ;;  %v3790_v26 = vmax.f32 %v3758_v45, 0.0  ;;  %v3757_v24 = vadd.f32 %v6963_v52, %v3718_v55  ;;  %v3721_v50 = vmul.f32 %v6953_v31, %v3682_v54  ;;  %v3681_v40 = vadd.f32 %v3578_v6, %v3410_v36  ;;  %v4959_v25 = vpop.f32.mrf.mxu1  ;;  %v7471_v59 = vld [vmem:[#allocation44_spill] sm:$0xff] }
 0x290   : > { %v5006_v30 = vpop.f32.mrf.mxu0  ;;  %v3415_v58 = vadd.f32 %v4959_v25, %v3143_v34  ;;  %v2878_v23 = vadd.f32 %v7459_v56, %v7458_v37  ;;  %v3147_v29 = vadd.f32 %v7460_v3, %v2879_v42  ;;  %v7461_v25 = vld [vmem:[#allocation19_spill] sm:$0xff]  ;;  %v7472_v42 = vld [vmem:[#allocation45_spill] sm:$0xff]  ;;  %v7474_v37 = vld [vmem:[#allocation26_spill] sm:$0xff] }
 0x291   : > { %3822 = vst [vmem:[%s6979_s16 + $0x68] sm:$0xff] %v3790_v26  ;;  %v3789_v62 = vmax.f32 %v3757_v24, 0.0  ;;  %v3760_v39 = vadd.f32 %v6963_v52, %v3721_v50  ;;  %v3720_v18 = vmul.f32 %v6953_v31, %v3681_v40  ;;  %v3684_v12 = vadd.f32 %v5006_v30, %v3413_v48  ;;  %v3327_v4 = vpop.f32.mrf.mxu1 }
 0x292   : > { %v3588_v44 = vpop.f32.mrf.mxu0  ;;  %v3414_v27 = vadd.f32 %v3327_v4, %v3142_v41  ;;  %v2881_v33 = vadd.f32 %v7462_v7, %v7461_v25  ;;  %v3146_v5 = vadd.f32 %v7463_v35, %v2878_v23  ;;  %v7464_v4 = vld [vmem:[#allocation24_spill] sm:$0xff]  ;;  %v7475_v23 = vld [vmem:[#allocation7_spill] sm:$0xff]  ;;  %v7477_v25 = vld [vmem:[#allocation34_spill] sm:$0xff] }
 0x293   : > { %3821 = vst [vmem:[%s6979_s16 + $0x60] sm:$0xff] %v3789_v62  ;;  %v3792_v14 = vmax.f32 %v3760_v39, 0.0  ;;  %v3759_v43 = vadd.f32 %v6963_v52, %v3720_v18  ;;  %v3723_v21 = vmul.f32 %v6953_v31, %v3684_v12  ;;  %v3683_v63 = vadd.f32 %v3588_v44, %v3412_v15  ;;  %v4962_v28 = vpop.f32.mrf.mxu1 }
 0x294   : > { %v5009_v0 = vpop.f32.mrf.mxu0  ;;  %v3417_v8 = vadd.f32 %v4962_v28, %v3145_v13  ;;  %v2880_v46 = vadd.f32 %v7465_v61, %v7464_v4  ;;  %v3149_v1 = vadd.f32 %v7466_v17, %v2881_v33  ;;  %v7467_v28 = vld [vmem:[#allocation25_spill] sm:$0xff]  ;;  %v7478_v33 = vld [vmem:[#allocation35_spill] sm:$0xff]  ;;  %v7480_v4 = vld [vmem:[#allocation46_spill] sm:$0xff] }
 0x295   : > { %3824 = vst [vmem:[%s6979_s16 + $0x78] sm:$0xff] %v3792_v14  ;;  %v3791_v16 = vmax.f32 %v3759_v43, 0.0  ;;  %v3762_v53 = vadd.f32 %v6963_v52, %v3723_v21  ;;  %v3722_v22 = vmul.f32 %v6953_v31, %v3683_v63  ;;  %v3686_v19 = vadd.f32 %v5009_v0, %v3415_v58  ;;  %v3337_v49 = vpop.f32.mrf.mxu1 }
 0x296   : > { %v3598_v36 = vpop.f32.mrf.mxu0  ;;  %v3416_v20 = vadd.f32 %v3337_v49, %v3144_v32  ;;  %v2883_v9 = vadd.f32 %v7468_v51, %v7467_v28  ;;  %v3148_v57 = vadd.f32 %v7469_v60, %v2880_v46  ;;  %v7470_v49 = vld [vmem:[#allocation28_spill] sm:$0xff]  ;;  %v7481_v46 = vld [vmem:[#allocation38_spill] sm:$0xff]  ;;  %v7483_v28 = vld [vmem:[#allocation37_spill] sm:$0xff] }
 0x297   : > { %3823 = vst [vmem:[%s6979_s16 + $0x70] sm:$0xff] %v3791_v16  ;;  %v3794_v11 = vmax.f32 %v3762_v53, 0.0  ;;  %v3761_v2 = vadd.f32 %v6963_v52, %v3722_v22  ;;  %v3725_v45 = vmul.f32 %v6953_v31, %v3686_v19  ;;  %v3685_v55 = vadd.f32 %v3598_v36, %v3414_v27  ;;  %v4965_v54 = vpop.f32.mrf.mxu1 }
 0x298   : > { %v5012_v48 = vpop.f32.mrf.mxu0  ;;  %v3419_v34 = vadd.f32 %v4965_v54, %v3147_v29  ;;  %v2882_v47 = vadd.f32 %v7471_v59, %v7470_v49  ;;  %v3151_v10 = vadd.f32 %v7472_v42, %v2883_v9  ;;  %v7473_v54 = vld [vmem:[#allocation29_spill] sm:$0xff] }
 0x299   : > { %3826 = vst [vmem:[%s6979_s16 + $0x88] sm:$0xff] %v3794_v11  ;;  %v3793_v6 = vmax.f32 %v3761_v2, 0.0  ;;  %v3764_v26 = vadd.f32 %v6963_v52, %v3725_v45  ;;  %v3724_v24 = vmul.f32 %v6953_v31, %v3685_v55  ;;  %v3688_v50 = vadd.f32 %v5012_v48, %v3417_v8  ;;  %v3347_v40 = vpop.f32.mrf.mxu1 }
 0x29a   : > { %v3608_v15 = vpop.f32.mrf.mxu0  ;;  %v3418_v41 = vadd.f32 %v3347_v40, %v3146_v5  ;;  %v2885_v56 = vadd.f32 %v7474_v37, %v7473_v54  ;;  %v3150_v3 = vadd.f32 %v7475_v23, %v2882_v47  ;;  %v7476_v40 = vld [vmem:[#allocation32_spill] sm:$0xff] }
 0x29b   : > { %3825 = vst [vmem:[%s6979_s16 + $0x80] sm:$0xff] %v3793_v6  ;;  %v3796_v30 = vmax.f32 %v3764_v26, 0.0  ;;  %v3763_v62 = vadd.f32 %v6963_v52, %v3724_v24  ;;  %v3727_v39 = vmul.f32 %v6953_v31, %v3688_v50  ;;  %v3687_v18 = vadd.f32 %v3608_v15, %v3416_v20  ;;  %v4968_v12 = vpop.f32.mrf.mxu1 }
 0x29c   : > { %v5015_v58 = vpop.f32.mrf.mxu0  ;;  %v3421_v13 = vadd.f32 %v4968_v12, %v3149_v1  ;;  %v2884_v7 = vadd.f32 %v7477_v25, %v7476_v40  ;;  %v3153_v35 = vadd.f32 %v7478_v33, %v2885_v56  ;;  %v7479_v12 = vld [vmem:[#allocation33_spill] sm:$0xff] }
 0x29d   : > { %3828 = vst [vmem:[%s6979_s16 + $0x98] sm:$0xff] %v3796_v30  ;;  %v3795_v44 = vmax.f32 %v3763_v62, 0.0  ;;  %v3766_v14 = vadd.f32 %v6963_v52, %v3727_v39  ;;  %v3726_v43 = vmul.f32 %v6953_v31, %v3687_v18  ;;  %v3690_v21 = vadd.f32 %v5015_v58, %v3419_v34  ;;  %v3357_v63 = vpop.f32.mrf.mxu1 }
 0x29e   : > { %v3618_v27 = vpop.f32.mrf.mxu0  ;;  %v3420_v32 = vadd.f32 %v3357_v63, %v3148_v57  ;;  %v2887_v61 = vadd.f32 %v7480_v4, %v7479_v12  ;;  %v3152_v17 = vadd.f32 %v7481_v46, %v2884_v7  ;;  %v7482_v63 = vld [vmem:[#allocation2_spill] sm:$0xff] }
 0x29f   : > { %3827 = vst [vmem:[%s6979_s16 + $0x90] sm:$0xff] %v3795_v44  ;;  %v3798_v0 = vmax.f32 %v3766_v14, 0.0  ;;  %v3765_v16 = vadd.f32 %v6963_v52, %v3726_v43  ;;  %v3729_v53 = vmul.f32 %v6953_v31, %v3690_v21  ;;  %v3689_v22 = vadd.f32 %v3618_v27, %v3418_v41  ;;  %v4971_v19 = vpop.f32.mrf.mxu1 }
 0x2a0   : > { %v5018_v8 = vpop.f32.mrf.mxu0  ;;  %v3423_v29 = vadd.f32 %v4971_v19, %v3151_v10  ;;  %v2886_v51 = vadd.f32 %v7483_v28, %v7482_v63  ;;  %v3155_v9 = vadd.f32 %v6940_v38, %v2887_v61 }
 0x2a1   : > { %3830 = vst [vmem:[%s6979_s16 + $0xa8] sm:$0xff] %v3798_v0  ;;  %v3797_v36 = vmax.f32 %v3765_v16, 0.0  ;;  %v3768_v11 = vadd.f32 %v6963_v52, %v3729_v53  ;;  %v3728_v2 = vmul.f32 %v6953_v31, %v3689_v22  ;;  %v3692_v45 = vadd.f32 %v5018_v8, %v3421_v13  ;;  %v3367_v55 = vpop.f32.mrf.mxu1  ;;  %v7484_v22 = vld [vmem:[#allocation36_spill] sm:$0xff] }
 0x2a2   : > { %v3628_v20 = vpop.f32.mrf.mxu0  ;;  %v3422_v5 = vadd.f32 %v3367_v55, %v3150_v3  ;;  %v3154_v19 = vadd.f32 %v7484_v22, %v2886_v51 }
 0x2a3   : > { %3829 = vst [vmem:[%s6979_s16 + $0xa0] sm:$0xff] %v3797_v36  ;;  %v3800_v48 = vmax.f32 %v3768_v11, 0.0  ;;  %v3767_v6 = vadd.f32 %v6963_v52, %v3728_v2  ;;  %v3731_v26 = vmul.f32 %v6953_v31, %v3692_v45  ;;  %v3691_v24 = vadd.f32 %v3628_v20, %v3420_v32  ;;  %v4974_v50 = vpop.f32.mrf.mxu1 }
 0x2a4   : > { %v5021_v34 = vpop.f32.mrf.mxu0  ;;  %v3425_v1 = vadd.f32 %v4974_v50, %v3153_v35 }
 0x2a5   : > { %3832 = vst [vmem:[%s6979_s16 + $0xb8] sm:$0xff] %v3800_v48  ;;  %v3799_v15 = vmax.f32 %v3767_v6, 0.0  ;;  %v3770_v30 = vadd.f32 %v6963_v52, %v3731_v26  ;;  %v3730_v62 = vmul.f32 %v6953_v31, %v3691_v24  ;;  %v3694_v39 = vadd.f32 %v5021_v34, %v3423_v29  ;;  %v3377_v18 = vpop.f32.mrf.mxu1 }
 0x2a6   : > { %v3638_v41 = vpop.f32.mrf.mxu0  ;;  %v3424_v60 = vadd.f32 %v3377_v18, %v3152_v17 }
 0x2a7   : > { %3831 = vst [vmem:[%s6979_s16 + $0xb0] sm:$0xff] %v3799_v15  ;;  %v3802_v58 = vmax.f32 %v3770_v30, 0.0  ;;  %v3769_v44 = vadd.f32 %v6963_v52, %v3730_v62  ;;  %v3733_v14 = vmul.f32 %v6953_v31, %v3694_v39  ;;  %v3693_v43 = vadd.f32 %v3638_v41, %v3422_v5  ;;  %v4977_v21 = vpop.f32.mrf.mxu1 }
 0x2a8   : > { %v5024_v57 = vpop.f32.mrf.mxu0  ;;  %v3427_v49 = vadd.f32 %v4977_v21, %v3155_v9 }
 0x2a9   : > { %3834 = vst [vmem:[%s6979_s16 + $0xc8] sm:$0xff] %v3802_v58  ;;  %v3801_v13 = vmax.f32 %v3769_v44, 0.0  ;;  %v3772_v27 = vadd.f32 %v6963_v52, %v3733_v14  ;;  %v3732_v0 = vmul.f32 %v6953_v31, %v3693_v43  ;;  %v3696_v16 = vadd.f32 %v5024_v57, %v3425_v1  ;;  %v3387_v53 = vpop.f32.mrf.mxu1 }
 0x2aa   : > { %v3648_v59 = vpop.f32.mrf.mxu0  ;;  %v3426_v32 = vadd.f32 %v3387_v53, %v3154_v19 }
 0x2ab   : > { %3833 = vst [vmem:[%s6979_s16 + $0xc0] sm:$0xff] %v3801_v13  ;;  %v3804_v47 = vmax.f32 %v3772_v27, 0.0  ;;  %v3771_v38 = vadd.f32 %v6963_v52, %v3732_v0  ;;  %v3735_v42 = vmul.f32 %v6953_v31, %v3696_v16  ;;  %v3695_v10 = vadd.f32 %v3648_v59, %v3424_v60 }
 0x2ac   : > { %v5027_v8 = vpop.f32.mrf.mxu0 }
 0x2ad   : > { %3836 = vst [vmem:[%s6979_s16 + $0xd8] sm:$0xff] %v3804_v47  ;;  %v3803_v36 = vmax.f32 %v3771_v38, 0.0  ;;  %v3774_v11 = vadd.f32 %v6963_v52, %v3735_v42  ;;  %v3734_v2 = vmul.f32 %v6953_v31, %v3695_v10  ;;  %v3698_v45 = vadd.f32 %v5027_v8, %v3427_v49 }
 0x2ae   : > { %v3658_v55 = vpop.f32.mrf.mxu0 }
 0x2af   : > { %3835 = vst [vmem:[%s6979_s16 + $0xd0] sm:$0xff] %v3803_v36  ;;  %v3806_v54 = vmax.f32 %v3774_v11, 0.0  ;;  %v3773_v37 = vadd.f32 %v6963_v52, %v3734_v2  ;;  %v3737_v56 = vmul.f32 %v6953_v31, %v3698_v45  ;;  %v3697_v23 = vadd.f32 %v3658_v55, %v3426_v32 }
 0x2b1   : > { %3838 = vst [vmem:[%s6979_s16 + $0xe8] sm:$0xff] %v3806_v54  ;;  %v3805_v3 = vmax.f32 %v3773_v37, 0.0  ;;  %v3776_v29 = vadd.f32 %v6963_v52, %v3737_v56  ;;  %v3736_v20 = vmul.f32 %v6953_v31, %v3697_v23 }
 0x2b3   : > { %3837 = vst [vmem:[%s6979_s16 + $0xe0] sm:$0xff] %v3805_v3  ;;  %v3808_v48 = vmax.f32 %v3776_v29, 0.0  ;;  %v3775_v6 = vadd.f32 %v6963_v52, %v3736_v20 }
 0x2b5   : > { %3840 = vst [vmem:[%s6979_s16 + $0xf8] sm:$0xff] %v3808_v48  ;;  %v3807_v26 = vmax.f32 %v3775_v6, 0.0 }
 0x2b7   : > { %3839 = vst [vmem:[%s6979_s16 + $0xf0] sm:$0xff] %v3807_v26 }
 0x2b8 PF: > { %s17_s26 = sadd.s32 1, %s5082_s26   ;;  %s7485_s24 = smov %s5078_s25 }
 0x2b9   : > { %p14_p5 = scmp.ge.s32.totalorder %s17_s26, 4   ;;  %s7486_s25 = smov %s7488_s27 }
 0x2bb   :  { %16 = sbr.rel (!%p14_p5) target bundleno = 2 (0x2), region = 95 }

</bundles_post_ra>
